<compile_context>
chip_gen: v7x
topology: tpu7x:2x2x1
jax: 0.10.0
libtpu: 0.0.40
codegen_flags: <defaults>
</compile_context>

<pallas_src>
import numpy as np

import jax
import jax.numpy as jnp
from jax.experimental import pallas as pl
from jax.experimental.pallas import tpu as pltpu


# ----------------------------------------------------------------------------
# Static (trace-time) bilinear interpolation weights, matching
# F.interpolate(mode='bilinear', align_corners=False) along one axis.
# ----------------------------------------------------------------------------
def _bilinear_taps(out_size: int, in_size: int):
    scale = in_size / out_size
    dst = np.arange(out_size, dtype=np.float64)
    src = np.maximum((dst + 0.5) * scale - 0.5, 0.0)
    i0 = np.clip(np.floor(src).astype(np.int64), 0, in_size - 1)
    i1 = np.minimum(i0 + 1, in_size - 1)
    frac = (src - i0).astype(np.float32)
    return i0, i1, frac


def _bilinear_matrix(out_size: int, in_size: int) -> np.ndarray:
    """(out_size, in_size) dense 1-D interpolation matrix."""
    i0, i1, frac = _bilinear_taps(out_size, in_size)
    w = np.zeros((out_size, in_size), dtype=np.float32)
    rows = np.arange(out_size)
    np.add.at(w, (rows, i0), 1.0 - frac)
    np.add.at(w, (rows, i1), frac)
    return w


def _extreme_matrix(out_size: int, in_size: int) -> np.ndarray:
    """(n_ext, in_size) matrix whose rows are the extreme-frac interpolation
    rows per knot interval.  min/max over (extreme_matrix @ x) equals the exact
    min/max over the full 1-D interpolation of x (affine in frac => extremes
    at frac endpoints).  n_ext <= 2 * in_size."""
    i0, i1, frac = _bilinear_taps(out_size, in_size)
    rows = []
    for k in np.unique(i0):
        sel = frac[i0 == k]
        j = int(min(k + 1, in_size - 1))
        for f in sorted({float(sel.min()), float(sel.max())}):
            r = np.zeros(in_size, dtype=np.float32)
            r[k] += 1.0 - f
            r[j] += f
            rows.append(r)
    return np.stack(rows, axis=0).astype(np.float32)


# ----------------------------------------------------------------------------
# Fused resize + normalize kernel (single pass).
# ----------------------------------------------------------------------------
def _resize_norm_kernel(stats_ref, wh_ref, xw_ref, o_ref):
    """One height tile: y = Wh_tile @ xw[c]; store (y - mi) * scale per channel."""
    mi = stats_ref[0]
    scale = stats_ref[1]
    wh = wh_ref[...]                                     # (tile_h, H_in)
    c = o_ref.shape[0]
    for ci in range(c):                                  # static unroll (small C)
        y = jnp.dot(wh, xw_ref[ci],
                    preferred_element_type=jnp.float32)  # (tile_h, W_out)
        o_ref[ci] = (y - mi) * scale


def postprocess_image(result: jnp.ndarray, im_size, tile_h: int = 512) -> jnp.ndarray:
    """result: (1, C, H_in, W_in)  ->  (1, C, H_out, W_out)  (float32)."""
    n, c, h_in, w_in = result.shape
    assert n == 1
    h_out, w_out = im_size
    assert h_out % tile_h == 0 and tile_h % 8 == 0 and w_out % 128 == 0

    x = result[0].astype(jnp.float32)                     # (C, H_in, W_in)

    wh = jnp.asarray(_bilinear_matrix(h_out, h_in))       # (H_out, H_in)
    wwt = jnp.asarray(_bilinear_matrix(w_out, w_in).T)    # (W_in, W_out)
    w_ext = jnp.asarray(_extreme_matrix(h_out, h_in))     # (n_ext<=2*H_in, H_in)

    # Tiny width contraction once (C, H_in, W_out); lane-dense input for the
    # kernel's single (tile_h, H_in)@(H_in, W_out) matmul per channel.
    xw = jnp.einsum("chw,wb->chb", x, wwt)

    # Exact global min/max without materializing the resized image: reduce the
    # extreme-frac rows of the height interpolation (<= 2*H_in rows per chan).
    ext = jnp.einsum("eh,chb->ceb", w_ext, xw)            # (C, n_ext, W_out)
    mi = jnp.min(ext)
    ma = jnp.max(ext)
    scale = 255.0 / jnp.maximum(ma - mi, 1e-12)           # constant-image guard
    stats = jnp.stack([mi, scale])                        # flat f32[2] -> SMEM

    n_h = h_out // tile_h                                 # 2 steps (v7x: 1/TC)

    out = pl.pallas_call(
        _resize_norm_kernel,
        out_shape=jax.ShapeDtypeStruct((c, h_out, w_out), jnp.float32),
        grid_spec=pltpu.PrefetchScalarGridSpec(
            num_scalar_prefetch=0,
            grid=(n_h,),
            in_specs=[
                pl.BlockSpec(memory_space=pltpu.MemorySpace.SMEM),      # stats
                pl.BlockSpec((tile_h, h_in), lambda hi: (hi, 0)),       # wh tile
                pl.BlockSpec((c, h_in, w_out), lambda hi: (0, 0, 0)),   # xw (all)
            ],
            out_specs=pl.BlockSpec((c, tile_h, w_out), lambda hi: (0, hi, 0)),
        ),
        compiler_params=pltpu.CompilerParams(
            dimension_semantics=("parallel",),
            vmem_limit_bytes=32 * 1024 * 1024),
    )(stats, wh, xw)

    return out[None]                                      # torch.unsqueeze(., 0)


class WrapperPallas:
    """Mirror of the PyTorch `Wrapper` module."""

    def __init__(self):
        # TODO(synk): inner model is external; deterministic 1x1-conv + sigmoid stand-in.
        key = jax.random.PRNGKey(42)
        self.model_w = 0.1 * jax.random.normal(key, (1, 3), dtype=jnp.float32)

    def model(self, x):
        # x: (1, 3, H, W) -> (1, 1, H, W)
        y = jnp.einsum("oc,nchw->nohw", self.model_w, x)
        return jax.nn.sigmoid(y)

    def __call__(self, orig_im_pt):
        model_input_size = (1024, 1024)
        result = self.model(orig_im_pt)
        result_image = postprocess_image(result, model_input_size)
        return result_image


if __name__ == "__main__":
    key = jax.random.PRNGKey(0)
    orig_im = jax.random.uniform(key, (1, 3, 16, 16), dtype=jnp.float32,
                                 minval=0.0, maxval=255.0)

    wrapper = WrapperPallas()
    out = wrapper(orig_im)
    out = jax.block_until_ready(out)
    assert out.shape == (1, 1, 1024, 1024), out.shape
    assert out.dtype == jnp.float32

    # Pure-JAX reference for the postprocess path (same bilinear matrices).
    result = wrapper.model(orig_im)[0]                     # (C, H_in, W_in)
    wh_ref = jnp.asarray(_bilinear_matrix(1024, result.shape[1]))
    wwt_ref = jnp.asarray(_bilinear_matrix(1024, result.shape[2]).T)
    res = jnp.einsum("ah,chw,wb->cab", wh_ref, result, wwt_ref)
    mi_r, ma_r = jnp.min(res), jnp.max(res)
    ref = ((res - mi_r) / (ma_r - mi_r) * 255.0)[None]
    err = float(jnp.max(jnp.abs(out - ref)))
    assert err < 5e-2, err

    print("KERNEL_OK")
</pallas_src>

<mosaic_0001>
module attributes {stable_mosaic.version = 11 : i64} {
  func.func @_resize_norm_kernel(%arg0: i32, %arg1: memref<2xf32, #tpu.memory_space<smem>>, %arg2: memref<512x16xf32, #tpu.memory_space<vmem>>, %arg3: memref<1x16x1024xf32, #tpu.memory_space<vmem>>, %arg4: memref<1x512x1024xf32, #tpu.memory_space<vmem>>) attributes {dimension_semantics = [#tpu.dimension_semantics<parallel>], iteration_bounds = array<i64: 2>, scalar_prefetch = 0 : i64, scratch_operands = 0 : i64, tpu.core_type = #tpu.core_type<tc>, window_params = [{transform_indices = @transform_0, window_bounds = array<i64: 2>}, {transform_indices = @transform_1, window_bounds = array<i64: 512, 16>}, {pipeline_mode = #tpu.pipeline_mode<synchronous>, transform_indices = @transform_2, window_bounds = array<i64: 1, 16, 1024>}, {transform_indices = @transform_3, window_bounds = array<i64: 1, 512, 1024>}]} {
    %c0 = arith.constant 0 : index
    %0 = memref.load %arg1[%c0] : memref<2xf32, #tpu.memory_space<smem>>
    %c1 = arith.constant 1 : index
    %1 = memref.load %arg1[%c1] : memref<2xf32, #tpu.memory_space<smem>>
    %c0_0 = arith.constant 0 : index
    %c0_1 = arith.constant 0 : index
    %2 = vector.load %arg2[%c0_0, %c0_1] : memref<512x16xf32, #tpu.memory_space<vmem>>, vector<512x16xf32>
    %c0_2 = arith.constant 0 : index
    %c0_3 = arith.constant 0 : index
    %c0_4 = arith.constant 0 : index
    %3 = vector.load %arg3[%c0_2, %c0_3, %c0_4] : memref<1x16x1024xf32, #tpu.memory_space<vmem>>, vector<1x16x1024xf32>
    %4 = vector.shape_cast %3 : vector<1x16x1024xf32> to vector<16x1024xf32>
    %cst = arith.constant dense<0.000000e+00> : vector<512x1024xf32>
    %5 = tpu.matmul %2, %4, %cst {dimension_numbers = #tpu.dot_dimension_numbers<[1], [0], [0], [1], [0, 0, 1, 1], [], []>} : vector<512x16xf32>, vector<16x1024xf32>, vector<512x1024xf32> -> vector<512x1024xf32>
    %6 = vector.broadcast %0 : f32 to vector<512x1024xf32>
    %7 = arith.subf %5, %6 : vector<512x1024xf32>
    %8 = vector.broadcast %1 : f32 to vector<512x1024xf32>
    %9 = arith.mulf %7, %8 : vector<512x1024xf32>
    %c0_5 = arith.constant 0 : index
    %c0_6 = arith.constant 0 : index
    %c0_7 = arith.constant 0 : index
    %10 = vector.load %arg4[%c0_5, %c0_6, %c0_7] : memref<1x512x1024xf32, #tpu.memory_space<vmem>>, vector<1x512x1024xf32>
    %11 = vector.shape_cast %10 : vector<1x512x1024xf32> to vector<512x1024xf32>
    %12 = vector.shape_cast %9 : vector<512x1024xf32> to vector<1x512x1024xf32>
    tpu.vector_store %arg4[%c0_5, %c0_6, %c0_7], %12 {strides = array<i32>} : memref<1x512x1024xf32, #tpu.memory_space<vmem>>, vector<1x512x1024xf32>,
    return
  }
  func.func @transform_0(%arg0: i32) -> i32 {
    %c0_i32 = arith.constant 0 : i32
    %c0_i32_0 = arith.constant 0 : i32
    return %c0_i32 : i32
  }
  func.func @transform_1(%arg0: i32) -> (i32, i32) {
    %c0_i32 = arith.constant 0 : i32
    %c0_i32_0 = arith.constant 0 : i32
    return %arg0, %c0_i32 : i32, i32
  }
  func.func @transform_2(%arg0: i32) -> (i32, i32, i32) {
    %c0_i32 = arith.constant 0 : i32
    %c0_i32_0 = arith.constant 0 : i32
    %c0_i32_1 = arith.constant 0 : i32
    %c0_i32_2 = arith.constant 0 : i32
    return %c0_i32, %c0_i32_0, %c0_i32_1 : i32, i32, i32
  }
  func.func @transform_3(%arg0: i32) -> (i32, i32, i32) {
    %c0_i32 = arith.constant 0 : i32
    %c0_i32_0 = arith.constant 0 : i32
    %c0_i32_1 = arith.constant 0 : i32
    return %c0_i32, %arg0, %c0_i32_0 : i32, i32, i32
  }
}

</mosaic_0001>

<bundles_post_ra>
// kernel: tpu_custom_call.1
= control target key start
LH: loop header
LB: loop body
LE: loop exit
PB: predicated region body
PF: predicated region fallthrough
CT: control target
= control target key end

     0   :  { %8 = vsyncpa [#allocation5], 0  ;;  %s6835_s0 = inlined_call_operand.hbm [shape: f32[2], index: 0, kind: input, shape index: {}]   ;;  %s6836_s1 = inlined_call_operand.vmem [shape: f32[1024,16], index: 1, kind: input, shape index: {}]   ;;  %s6837_s2 = inlined_call_operand.hbm [shape: f32[1,16,1024], index: 2, kind: input, shape index: {}]   ;;  %s6838_s3 = inlined_call_operand.hbm [shape: f32[1,1024,1024], index: 3, kind: output, shape index: {}]  }
   0x1   :  { %9 = vsyncpa [#allocation3], 0 }
   0x2   :  { %10 = vsyncpa [#allocation4], 0 }
   0x3   :  { %12 = vsyncpa [#allocation4 + $0x1], 0  ;;  %s4470_s12 = smov 0   ;;  %s4472_s13 = smov 0  }
   0x4   :  { %s4474_s14 = smov 0   ;;  %s4476_s15 = smov 0  }
   0x5 LB: > { %s4491_s16 = sadd.s32 4294967295, %s4440_s15   ;;  %s3909_s17 = sadd.s32 4294967294, %s4440_s15   ;;  %s4440_s15 = sphi %s4476_s15, %s6852_s15   ;;  %s4436_s14 = sphi %s4474_s14, %s6851_s14   ;;  %s4432_s13 = sphi %s4472_s13, %s6850_s13   ;;  %s4428_s12 = sphi %s4470_s12, %s6849_s12  }
   0x6   : > { %s4495_s18 = sadd.s32 1, %s4440_s15   ;;  %s93_s19 = sadd.s32 1, %s4436_s14 }
   0x7   : > { %s90_s20 = ssub.s32 %s4440_s15, %s4495_s18  ;;  %p103_p0 = scmp.ne.s32.totalorder %s4436_s14, %s4432_s13 }
   0x8   : > { %p91_p1 = scmp.eq.s32.totalorder %s90_s20, 0  ;;  %p104_p2 = scmp.eq.s32.totalorder %s4491_s16, 1 }
   0x9   : > { %p109_p3 = scmp.ne.s32.totalorder %s4432_s13, %s4428_s12  ;;  %p110_p4 = scmp.eq.s32.totalorder %s3909_s17, 1 }
   0xa   : > { %s4506_s21 = scalar_select %p91_p1, %s4436_s14, %s93_s19  }
   0xb   : > { %p4508_p5 = por %p104_p2, %p103_p0  ;;  %p4512_p6 = por %p110_p4, %p109_p3 }
   0xc   : > { %p3910_p7 = scmp.ge.s32.totalorder %s4440_s15, 1  ;;  %p117_p8 = scmp.lt.s32.totalorder %s4440_s15, 3 }
   0xd   : > { %s6841_s23 = scalar_select %p4512_p6, 1, 0 }
   0xe   : > { %p4518_p9 = pnand %p3910_p7, %p117_p8  ;;  %p6839_p10 = scmp.eq.s32.totalorder %s4491_s16, 0 }
   0xf   : > { %s4442_s25 = smov [#allocation6]   ;;  %s4329_s30 = scalar_lea.hbm %s6835_s0, 16 }
  0x10   : > { %p4211_p11 = pneg %p4518_p9  ;;  %s138_s26 = sshll.u32 %s4442_s25, 4  ;;  %s4531_s26 = int_to_ptr.vmem [resolvable:$true] %s138_s26 }
  0x11   : > { %p4330_p13 = scmp.ne.s32.totalorder %s6835_s0, %s4329_s30  ;;  %p4336_p3 = scmp.lt.u32.totalorder %s4329_s30, %s6835_s0 }
  0x12   : > { %p4527_p12 = pnand %p6839_p10, %p4211_p11 }
  0x14   : > { %p4331_p0 = pneg %p4527_p12 }
  0x16   : > { %p4332_p1 = pnand %p4331_p0, %p4330_p13 }
  0x18   : > { %p4333_p2 = pneg %p4332_p1 }
  0x1a   : > { %p4338_p4 = pnand %p4336_p3, %p4333_p2 }
  0x1c   : > { %4341 = shalt.err (!%p4338_p4)
}
  0x1d   : > { %s4443_s8 = smov [#allocation2]   ;;  %s4342_s19 = scalar_lea.hbm %s6837_s2, 2048 }
  0x1e   : > { %4214 = dma.hbm_to_smem (!%p4527_p12), %s6835_s0, 16, %s4443_s8, [#allocation5]  }
  0x1f   : > { %p4343_p7 = scmp.ne.s32.totalorder %s6837_s2, %s4342_s19  ;;  %p4349_p13 = scmp.lt.u32.totalorder %s4342_s19, %s6837_s2 }
  0x21   : > { %p4345_p8 = pnand %p4343_p7, %p4331_p0 }
  0x23   : > { %p4346_p11 = pneg %p4345_p8 }
  0x25   : > { %p4351_p1 = pnand %p4349_p13, %p4346_p11 }
  0x27   : > { %4354 = shalt.err (!%p4351_p1)
}
  0x28   : > { %s4355_s30 = scalar_lea.vmem %s4531_s26, 2048  ;;  %p4363_p10 = scmp.lt.s32.totalorder %s4531_s26, %s4531_s26 }
  0x29   : > { %p4356_p2 = scmp.ne.s32.totalorder %s4531_s26, %s4355_s30  ;;  %p4364_p7 = scmp.lt.s32.totalorder %s4355_s30, %s4355_s30 }
  0x2b   : > { %p4358_p3 = pnand %p4356_p2, %p4331_p0  ;;  %p4365_p8 = por %p4364_p7, %p4363_p10 }
  0x2d   : > { %p4359_p4 = pneg %p4358_p3 }
  0x2f   : > { %p4366_p6 = pnand %p4365_p8, %p4359_p4 }
  0x31   : > { %4369 = shalt.err (!%p4366_p6)
}
  0x32   : > { %s4444_s4 = smov 1024   ;;  %s4445_s5 = smov 64  }
  0x33   : > { %4217 = dma.hbm_to_vmem [thread:$0]  (!%p4527_p12), %s6837_s2, 2048, %s4531_s26, [#allocation3], %s4444_s4, %s4444_s4, %s4445_s5  }
  0x34   : > { %163 = sbr.rel (%p4518_p9) target bundleno = 815 (0x32f), region = 32  ;;  %p6844_p0 = scmp.eq.s32.totalorder (!%p4518_p9), %s4491_s16, 0 }
  0x3b   : > { %4415 = dma.done.wait (%p6844_p0), [#allocation5], 16   ;;  %p6845_p11 = pmov %p6844_p0 }
  0x3c   : > { %p6846_p6 = pmov %p6844_p0 }
  0x3d   : > { %4417 = vsyncadd (%p6845_p11), [#allocation5], 4294967280 }
  0x3e   : > { %4419 = dma.done.wait (%p6846_p6), [#allocation3], 2048   ;;  %p6847_p10 = pmov %p6844_p0 }
  0x40   : > { %4421 = vsyncadd (%p6847_p10), [#allocation3], 4294965248 }
  0x41   : > { %173 = sfence }
  0x42   : > { %v266_v0 = vld [vmem:[#allocation6 + $0x8] sm:$0xff]  ;;  %v268_v2 = vld [vmem:[#allocation6 + $0x18] sm:$0xff]  ;;  %s3918_s26 = sshll.u32 %s4491_s16, 6  ;;  %v265_v5 = vld [vmem:[#allocation6] sm:$0xff]  ;;  %v4446_v7 = vmov 0.0   ;;  %vm281_vm0 = vcmask 130048  }
  0x43   : > { %v274_v1 = vld [vmem:[#allocation6 + $0x48] sm:$0xff]  ;;  %v276_v4 = vld [vmem:[#allocation6 + $0x58] sm:$0xff]  ;;  %v273_v6 = vld [vmem:[#allocation6 + $0x40] sm:$0xff]  ;;  %538 = vmatprep.mubr.f32.mxu0 %v4446_v7  ;;  %987 = vmatprep.mubr.f32.mxu1 %v4446_v7  ;;  %p193_p9 = scmp.lt.s32.totalorder %s3918_s26, 127  ;;  %s199_s10 = sld [smem:[#allocation2]] }
  0x44   : > { %v4185_v3 = vpack.c.bf16 %v274_v1, %v266_v0  ;;  %v4189_v8 = vpack.c.bf16 %v276_v4, %v268_v2  ;;  %v4187_v9 = vpack.c.bf16 %v273_v6, %v265_v5  ;;  %v267_v10 = vld [vmem:[#allocation6 + $0x10] sm:$0xff]  ;;  %v270_v12 = vld [vmem:[#allocation6 + $0x28] sm:$0xff]  ;;  %v272_v15 = vld [vmem:[#allocation6 + $0x38] sm:$0xff]  ;;  %s3920_s11 = sld [smem:[#allocation2 + $0x1]]  ;;  %s189_s17 = sand.u32 1, %s4432_s13  }
  0x45   : > { %v275_v11 = vld [vmem:[#allocation6 + $0x50] sm:$0xff]  ;;  %v278_v14 = vld [vmem:[#allocation6 + $0x68] sm:$0xff]  ;;  %v280_v16 = vld [vmem:[#allocation6 + $0x78] sm:$0xff]  ;;  %s6854_s26 = smov (!%p193_p9, %s3918_s26), 127  ;;  %s3917_s19 = sshll.u32 %s189_s17, 12 }
  0x46   : > { %4186 = vmatprep.subr.bf16.mxu0 %v4185_v3  ;;  %v4191_v13 = vpack.c.bf16 %v275_v11, %v267_v10  ;;  %4190 = vmatprep.subr.bf16.mxu1 %v4189_v8  ;;  %v4193_v17 = vpack.c.bf16 %v278_v14, %v270_v12  ;;  %v4197_v18 = vpack.c.bf16 %v280_v16, %v272_v15  ;;  %v269_v19 = vld [vmem:[#allocation6 + $0x20] sm:$0xff]  ;;  %v271_v21 = vld [vmem:[#allocation6 + $0x30] sm:$0xff]  ;;  %s3919_s24 = sshll.u32 %s6854_s26, 3  ;;  %s4885_s20 = scalar_lea.vmem [#allocation7], %s3917_s19 }
  0x47   : > { %4188 = vmatpush1.bf16.msra.mxu0 %v4187_v9  ;;  %v277_v20 = vld [vmem:[#allocation6 + $0x60] sm:$0xff]  ;;  %v279_v23 = vld [vmem:[#allocation6 + $0x70] sm:$0xff]  ;;  %s4593_s9 = scalar_lea.vmem %s6836_s1, %s3919_s24  ;;  %s4184_s25 = sshll.u32 %s4491_s16, 16 }
  0x48   : > { %4192 = vmatpush1.bf16.msra.mxu1 %v4191_v13  ;;  %v4195_v22 = vpack.c.bf16 %v277_v20, %v269_v19  ;;  %4194 = vmatprep.subr.bf16.mxu0 %v4193_v17  ;;  %v4199_v24 = vpack.c.bf16 %v279_v23, %v271_v21  ;;  %v4596_v25 = vld [vmem:[%s4593_s9] sm:$0xff]  ;;  %v202_v26 = vld [vmem:[%s4593_s9 + $0x8] sm:$0xff]  ;;  %v203_v27 = vld [vmem:[%s4593_s9 + $0x10] sm:$0xff]  ;;  %s3823_s28 = sshll.u32 %s4885_s20, 4  ;;  %s6782_s30 = scalar_lea.hbm %s6838_s3, %s4184_s25  ;;  %s6784_s28 = int_to_ptr.vmem [resolvable:$true] %s3823_s28 }
  0x49   : > { %4198 = vmatprep.subr.bf16.mxu1 %v4197_v18  ;;  %v204_v28 = vld [vmem:[%s4593_s9 + $0x18] sm:$0xff]  ;;  %v205_v29 = vld [vmem:[%s4593_s9 + $0x20] sm:$0xff]  ;;  %v206_v30 = vld [vmem:[%s4593_s9 + $0x28] sm:$0xff]  ;;  %v4863_v15 = vstv %s199_s10  ;;  %s6794_s4 = scalar_lea.sflag [#allocation4], %s189_s17  ;;  %s4370_s5 = scalar_lea.vmem %s6784_s28, 65536 }
  0x4a   : > { %3921 = vmatmul.mubr.msk.f32.vlgmr.msra.gmra.mrb[0].mxu0 %vm281_vm0, %v4596_v25  ;;  %v207_v31 = vld [vmem:[%s4593_s9 + $0x30] sm:$0xff]  ;;  %v208_v32 = vld [vmem:[%s4593_s9 + $0x38] sm:$0xff]  ;;  %v209_v33 = vld [vmem:[%s4593_s9 + $0x40] sm:$0xff]  ;;  %v4870_v18 = vstv %s3920_s11  ;;  %p4371_p12 = scmp.ne.s32.totalorder %s6784_s28, %s4370_s5  ;;  %s4447_s6 = smov [#allocation7]  }
  0x4b   : > { %3985 = vmatmul.mubr.msk.f32.vlgmr.msra.gmra.mrb[0].mxu1 %vm281_vm0, %v4596_v25  ;;  %4196 = vmatpush1.bf16.msra.mxu0 %v4195_v22  ;;  %v210_v34 = vld [vmem:[%s4593_s9 + $0x48] sm:$0xff]  ;;  %v211_v35 = vld [vmem:[%s4593_s9 + $0x50] sm:$0xff]  ;;  %v212_v36 = vld [vmem:[%s4593_s9 + $0x58] sm:$0xff]  ;;  %s4374_s7 = sshll.u32 %s4447_s6, 4  ;;  %s4375_s7 = int_to_ptr.vmem [resolvable:$false] %s4374_s7 }
  0x4c   : > { %4200 = vmatpush1.bf16.msra.mxu1 %v4199_v24  ;;  %544 = vmatprep.mubr.f32.mxu0 %v4446_v7  ;;  %v213_v37 = vld [vmem:[%s4593_s9 + $0x60] sm:$0xff]  ;;  %v214_v38 = vld [vmem:[%s4593_s9 + $0x68] sm:$0xff]  ;;  %v215_v39 = vld [vmem:[%s4593_s9 + $0x70] sm:$0xff]  ;;  %p4372_p13 = pnand %p4371_p12, %p4508_p5  ;;  %s4376_s26 = scalar_lea.vmem %s4375_s7, 131072 }
  0x4d   : > { %993 = vmatprep.mubr.f32.mxu1 %v4446_v7  ;;  %v216_v40 = vld [vmem:[%s4593_s9 + $0x78] sm:$0xff]  ;;  %v217_v41 = vld [vmem:[%s4593_s9 + $0x80] sm:$0xff]  ;;  %v218_v42 = vld [vmem:[%s4593_s9 + $0x88] sm:$0xff]  ;;  %p4377_p2 = scmp.lt.s32.totalorder %s6784_s28, %s4375_s7  ;;  %p4378_p3 = scmp.lt.s32.totalorder %s4376_s26, %s4370_s5 }
  0x4e   : > { %3922 = vmatmul.mubr.msk.f32.gmra.mrb[2].mxu0 %vm281_vm0, %v202_v26  ;;  %v219_v43 = vld [vmem:[%s4593_s9 + $0x90] sm:$0xff]  ;;  %v220_v44 = vld [vmem:[%s4593_s9 + $0x98] sm:$0xff]  ;;  %v221_v45 = vld [vmem:[%s4593_s9 + $0xa0] sm:$0xff]  ;;  %p4373_p1 = pneg %p4372_p13 }
  0x4f   : > { %3986 = vmatmul.mubr.msk.f32.gmra.mrb[2].mxu1 %vm281_vm0, %v202_v26  ;;  %550 = vmatprep.mubr.f32.mxu0 %v4446_v7  ;;  %v222_v46 = vld [vmem:[%s4593_s9 + $0xa8] sm:$0xff]  ;;  %v223_v47 = vld [vmem:[%s4593_s9 + $0xb0] sm:$0xff]  ;;  %v224_v48 = vld [vmem:[%s4593_s9 + $0xb8] sm:$0xff]  ;;  %p4379_p4 = por %p4378_p3, %p4377_p2 }
  0x50   : > { %999 = vmatprep.mubr.f32.mxu1 %v4446_v7  ;;  %v225_v49 = vld [vmem:[%s4593_s9 + $0xc0] sm:$0xff]  ;;  %v226_v50 = vld [vmem:[%s4593_s9 + $0xc8] sm:$0xff]  ;;  %v227_v51 = vld [vmem:[%s4593_s9 + $0xd0] sm:$0xff] }
  0x51   : > { %v228_v52 = vld [vmem:[%s4593_s9 + $0xd8] sm:$0xff]  ;;  %v229_v53 = vld [vmem:[%s4593_s9 + $0xe0] sm:$0xff]  ;;  %v230_v54 = vld [vmem:[%s4593_s9 + $0xe8] sm:$0xff]  ;;  %p4380_p7 = pnand %p4379_p4, %p4373_p1 }
  0x52   : > { %3923 = vmatmul.mubr.msk.f32.gmra.mrb[4].mxu0 %vm281_vm0, %v203_v27  ;;  %v231_v55 = vld [vmem:[%s4593_s9 + $0xf0] sm:$0xff]  ;;  %v232_v56 = vld [vmem:[%s4593_s9 + $0xf8] sm:$0xff]  ;;  %v233_v57 = vld [vmem:[%s4593_s9 + $0x100] sm:$0xff] }
  0x53   : > { %3987 = vmatmul.mubr.msk.f32.gmra.mrb[4].mxu1 %vm281_vm0, %v203_v27  ;;  %556 = vmatprep.mubr.f32.mxu0 %v4446_v7  ;;  %v234_v58 = vld [vmem:[%s4593_s9 + $0x108] sm:$0xff]  ;;  %v235_v59 = vld [vmem:[%s4593_s9 + $0x110] sm:$0xff]  ;;  %v236_v60 = vld [vmem:[%s4593_s9 + $0x118] sm:$0xff] }
  0x54   : > { %1005 = vmatprep.mubr.f32.mxu1 %v4446_v7  ;;  %v237_v61 = vld [vmem:[%s4593_s9 + $0x120] sm:$0xff]  ;;  %v238_v62 = vld [vmem:[%s4593_s9 + $0x128] sm:$0xff]  ;;  %v239_v63 = vld [vmem:[%s4593_s9 + $0x130] sm:$0xff] }
  0x55   : > { %v240_v0 = vld [vmem:[%s4593_s9 + $0x138] sm:$0xff]  ;;  %v241_v1 = vld [vmem:[%s4593_s9 + $0x140] sm:$0xff]  ;;  %v242_v2 = vld [vmem:[%s4593_s9 + $0x148] sm:$0xff] }
  0x56   : > { %3924 = vmatmul.mubr.msk.f32.gmra.mrb[6].mxu0 %vm281_vm0, %v204_v28  ;;  %v243_v3 = vld [vmem:[%s4593_s9 + $0x150] sm:$0xff]  ;;  %v244_v4 = vld [vmem:[%s4593_s9 + $0x158] sm:$0xff]  ;;  %v245_v5 = vld [vmem:[%s4593_s9 + $0x160] sm:$0xff] }
  0x57   : > { %3988 = vmatmul.mubr.msk.f32.gmra.mrb[6].mxu1 %vm281_vm0, %v204_v28  ;;  %562 = vmatprep.mubr.f32.mxu0 %v4446_v7  ;;  %v246_v6 = vld [vmem:[%s4593_s9 + $0x168] sm:$0xff]  ;;  %v247_v8 = vld [vmem:[%s4593_s9 + $0x170] sm:$0xff]  ;;  %v248_v9 = vld [vmem:[%s4593_s9 + $0x178] sm:$0xff] }
  0x58   : > { %1011 = vmatprep.mubr.f32.mxu1 %v4446_v7  ;;  %v249_v10 = vld [vmem:[%s4593_s9 + $0x180] sm:$0xff]  ;;  %v250_v11 = vld [vmem:[%s4593_s9 + $0x188] sm:$0xff]  ;;  %v251_v12 = vld [vmem:[%s4593_s9 + $0x190] sm:$0xff] }
  0x59   : > { %v252_v13 = vld [vmem:[%s4593_s9 + $0x198] sm:$0xff]  ;;  %v253_v14 = vld [vmem:[%s4593_s9 + $0x1a0] sm:$0xff]  ;;  %v254_v16 = vld [vmem:[%s4593_s9 + $0x1a8] sm:$0xff] }
  0x5a   : > { %3925 = vmatmul.mubr.msk.f32.gmra.mrb[8].mxu0 %vm281_vm0, %v205_v29  ;;  %v255_v27 = vld [vmem:[%s4593_s9 + $0x1b0] sm:$0xff] }
  0x5b   : > { %3989 = vmatmul.mubr.msk.f32.gmra.mrb[8].mxu1 %vm281_vm0, %v205_v29  ;;  %568 = vmatprep.mubr.f32.mxu0 %v4446_v7 }
  0x5c   : > { %1017 = vmatprep.mubr.f32.mxu1 %v4446_v7 }
  0x5e   : > { %3926 = vmatmul.mubr.msk.f32.gmra.mrb[10].mxu0 %vm281_vm0, %v206_v30 }
  0x5f   : > { %3990 = vmatmul.mubr.msk.f32.gmra.mrb[10].mxu1 %vm281_vm0, %v206_v30  ;;  %574 = vmatprep.mubr.f32.mxu0 %v4446_v7 }
  0x60   : > { %1023 = vmatprep.mubr.f32.mxu1 %v4446_v7 }
  0x62   : > { %3927 = vmatmul.mubr.msk.f32.gmra.mrb[12].mxu0 %vm281_vm0, %v207_v31 }
  0x63   : > { %3991 = vmatmul.mubr.msk.f32.gmra.mrb[12].mxu1 %vm281_vm0, %v207_v31  ;;  %580 = vmatprep.mubr.f32.mxu0 %v4446_v7 }
  0x64   : > { %1029 = vmatprep.mubr.f32.mxu1 %v4446_v7 }
  0x66   : > { %3928 = vmatmul.mubr.msk.f32.gmra.mrb[14].mxu0 %vm281_vm0, %v208_v32 }
  0x67   : > { %3992 = vmatmul.mubr.msk.f32.gmra.mrb[14].mxu1 %vm281_vm0, %v208_v32  ;;  %586 = vmatprep.mubr.f32.mxu0 %v4446_v7 }
  0x68   : > { %1035 = vmatprep.mubr.f32.mxu1 %v4446_v7 }
  0x6a   : > { %3929 = vmatmul.mubr.msk.f32.gmra.mrb[16].mxu0 %vm281_vm0, %v209_v33 }
  0x6b   : > { %3993 = vmatmul.mubr.msk.f32.gmra.mrb[16].mxu1 %vm281_vm0, %v209_v33  ;;  %592 = vmatprep.mubr.f32.mxu0 %v4446_v7 }
  0x6c   : > { %1041 = vmatprep.mubr.f32.mxu1 %v4446_v7 }
  0x6e   : > { %3930 = vmatmul.mubr.msk.f32.gmra.mrb[18].mxu0 %vm281_vm0, %v210_v34 }
  0x6f   : > { %3994 = vmatmul.mubr.msk.f32.gmra.mrb[18].mxu1 %vm281_vm0, %v210_v34  ;;  %598 = vmatprep.mubr.f32.mxu0 %v4446_v7 }
  0x70   : > { %1047 = vmatprep.mubr.f32.mxu1 %v4446_v7 }
  0x72   : > { %3931 = vmatmul.mubr.msk.f32.gmra.mrb[20].mxu0 %vm281_vm0, %v211_v35 }
  0x73   : > { %3995 = vmatmul.mubr.msk.f32.gmra.mrb[20].mxu1 %vm281_vm0, %v211_v35  ;;  %604 = vmatprep.mubr.f32.mxu0 %v4446_v7 }
  0x74   : > { %1053 = vmatprep.mubr.f32.mxu1 %v4446_v7 }
  0x76   : > { %3932 = vmatmul.mubr.msk.f32.gmra.mrb[22].mxu0 %vm281_vm0, %v212_v36 }
  0x77   : > { %3996 = vmatmul.mubr.msk.f32.gmra.mrb[22].mxu1 %vm281_vm0, %v212_v36  ;;  %610 = vmatprep.mubr.f32.mxu0 %v4446_v7 }
  0x78   : > { %1059 = vmatprep.mubr.f32.mxu1 %v4446_v7 }
  0x7a   : > { %3933 = vmatmul.mubr.msk.f32.gmra.mrb[24].mxu0 %vm281_vm0, %v213_v37 }
  0x7b   : > { %3997 = vmatmul.mubr.msk.f32.gmra.mrb[24].mxu1 %vm281_vm0, %v213_v37  ;;  %616 = vmatprep.mubr.f32.mxu0 %v4446_v7 }
  0x7c   : > { %1065 = vmatprep.mubr.f32.mxu1 %v4446_v7 }
  0x7e   : > { %3934 = vmatmul.mubr.msk.f32.gmra.mrb[26].mxu0 %vm281_vm0, %v214_v38 }
  0x7f   : > { %3998 = vmatmul.mubr.msk.f32.gmra.mrb[26].mxu1 %vm281_vm0, %v214_v38  ;;  %622 = vmatprep.mubr.f32.mxu0 %v4446_v7 }
  0x80   : > { %1071 = vmatprep.mubr.f32.mxu1 %v4446_v7 }
  0x82   : > { %3935 = vmatmul.mubr.msk.f32.gmra.mrb[28].mxu0 %vm281_vm0, %v215_v39 }
  0x83   : > { %3999 = vmatmul.mubr.msk.f32.gmra.mrb[28].mxu1 %vm281_vm0, %v215_v39  ;;  %628 = vmatprep.mubr.f32.mxu0 %v4446_v7 }
  0x84   : > { %1077 = vmatprep.mubr.f32.mxu1 %v4446_v7 }
  0x86   : > { %3936 = vmatmul.mubr.msk.f32.gmra.mrb[30].mxu0 %vm281_vm0, %v216_v40 }
  0x87   : > { %4000 = vmatmul.mubr.msk.f32.gmra.mrb[30].mxu1 %vm281_vm0, %v216_v40  ;;  %634 = vmatprep.mubr.f32.mxu0 %v4446_v7  ;;  %v256_v40 = vld [vmem:[%s4593_s9 + $0x1b8] sm:$0xff] }
  0x88   : > { %1083 = vmatprep.mubr.f32.mxu1 %v4446_v7 }
  0x8a   : > { %3937 = vmatmul.mubr.msk.f32.gmra.mrb[32].mxu0 %vm281_vm0, %v217_v41 }
  0x8b   : > { %4001 = vmatmul.mubr.msk.f32.gmra.mrb[32].mxu1 %vm281_vm0, %v217_v41  ;;  %640 = vmatprep.mubr.f32.mxu0 %v4446_v7 }
  0x8c   : > { %1089 = vmatprep.mubr.f32.mxu1 %v4446_v7 }
  0x8e   : > { %3938 = vmatmul.mubr.msk.f32.gmra.mrb[34].mxu0 %vm281_vm0, %v218_v42 }
  0x8f   : > { %4002 = vmatmul.mubr.msk.f32.gmra.mrb[34].mxu1 %vm281_vm0, %v218_v42  ;;  %646 = vmatprep.mubr.f32.mxu0 %v4446_v7 }
  0x90   : > { %1095 = vmatprep.mubr.f32.mxu1 %v4446_v7 }
  0x92   : > { %3939 = vmatmul.mubr.msk.f32.gmra.mrb[36].mxu0 %vm281_vm0, %v219_v43 }
  0x93   : > { %4003 = vmatmul.mubr.msk.f32.gmra.mrb[36].mxu1 %vm281_vm0, %v219_v43  ;;  %652 = vmatprep.mubr.f32.mxu0 %v4446_v7 }
  0x94   : > { %1101 = vmatprep.mubr.f32.mxu1 %v4446_v7 }
  0x96   : > { %3940 = vmatmul.mubr.msk.f32.gmra.mrb[38].mxu0 %vm281_vm0, %v220_v44 }
  0x97   : > { %4004 = vmatmul.mubr.msk.f32.gmra.mrb[38].mxu1 %vm281_vm0, %v220_v44  ;;  %658 = vmatprep.mubr.f32.mxu0 %v4446_v7 }
  0x98   : > { %1107 = vmatprep.mubr.f32.mxu1 %v4446_v7 }
  0x9a   : > { %3941 = vmatmul.mubr.msk.f32.gmra.mrb[40].mxu0 %vm281_vm0, %v221_v45 }
  0x9b   : > { %4005 = vmatmul.mubr.msk.f32.gmra.mrb[40].mxu1 %vm281_vm0, %v221_v45  ;;  %664 = vmatprep.mubr.f32.mxu0 %v4446_v7 }
  0x9c   : > { %1113 = vmatprep.mubr.f32.mxu1 %v4446_v7 }
  0x9e   : > { %3942 = vmatmul.mubr.msk.f32.gmra.mrb[42].mxu0 %vm281_vm0, %v222_v46 }
  0x9f   : > { %4006 = vmatmul.mubr.msk.f32.gmra.mrb[42].mxu1 %vm281_vm0, %v222_v46  ;;  %670 = vmatprep.mubr.f32.mxu0 %v4446_v7 }
  0xa0   : > { %1119 = vmatprep.mubr.f32.mxu1 %v4446_v7 }
  0xa2   : > { %3943 = vmatmul.mubr.msk.f32.gmra.mrb[44].mxu0 %vm281_vm0, %v223_v47 }
  0xa3   : > { %4007 = vmatmul.mubr.msk.f32.gmra.mrb[44].mxu1 %vm281_vm0, %v223_v47  ;;  %676 = vmatprep.mubr.f32.mxu0 %v4446_v7 }
  0xa4   : > { %1125 = vmatprep.mubr.f32.mxu1 %v4446_v7 }
  0xa6   : > { %3944 = vmatmul.mubr.msk.f32.gmra.mrb[46].mxu0 %vm281_vm0, %v224_v48 }
  0xa7   : > { %4008 = vmatmul.mubr.msk.f32.gmra.mrb[46].mxu1 %vm281_vm0, %v224_v48  ;;  %682 = vmatprep.mubr.f32.mxu0 %v4446_v7 }
  0xa8   : > { %1131 = vmatprep.mubr.f32.mxu1 %v4446_v7 }
  0xaa   : > { %3945 = vmatmul.mubr.msk.f32.gmra.mrb[48].mxu0 %vm281_vm0, %v225_v49 }
  0xab   : > { %4009 = vmatmul.mubr.msk.f32.gmra.mrb[48].mxu1 %vm281_vm0, %v225_v49  ;;  %688 = vmatprep.mubr.f32.mxu0 %v4446_v7 }
  0xac   : > { %1137 = vmatprep.mubr.f32.mxu1 %v4446_v7 }
  0xae   : > { %3946 = vmatmul.mubr.msk.f32.gmra.mrb[50].mxu0 %vm281_vm0, %v226_v50 }
  0xaf   : > { %4010 = vmatmul.mubr.msk.f32.gmra.mrb[50].mxu1 %vm281_vm0, %v226_v50  ;;  %694 = vmatprep.mubr.f32.mxu0 %v4446_v7 }
  0xb0   : > { %1143 = vmatprep.mubr.f32.mxu1 %v4446_v7 }
  0xb2   : > { %3947 = vmatmul.mubr.msk.f32.gmra.mrb[52].mxu0 %vm281_vm0, %v227_v51 }
  0xb3   : > { %4011 = vmatmul.mubr.msk.f32.gmra.mrb[52].mxu1 %vm281_vm0, %v227_v51  ;;  %700 = vmatprep.mubr.f32.mxu0 %v4446_v7 }
  0xb4   : > { %1149 = vmatprep.mubr.f32.mxu1 %v4446_v7 }
  0xb6   : > { %3948 = vmatmul.mubr.msk.f32.gmra.mrb[54].mxu0 %vm281_vm0, %v228_v52 }
  0xb7   : > { %4012 = vmatmul.mubr.msk.f32.gmra.mrb[54].mxu1 %vm281_vm0, %v228_v52  ;;  %706 = vmatprep.mubr.f32.mxu0 %v4446_v7 }
  0xb8   : > { %1155 = vmatprep.mubr.f32.mxu1 %v4446_v7 }
  0xba   : > { %3949 = vmatmul.mubr.msk.f32.gmra.mrb[56].mxu0 %vm281_vm0, %v229_v53 }
  0xbb   : > { %4013 = vmatmul.mubr.msk.f32.gmra.mrb[56].mxu1 %vm281_vm0, %v229_v53  ;;  %712 = vmatprep.mubr.f32.mxu0 %v4446_v7  ;;  %v257_v53 = vld [vmem:[%s4593_s9 + $0x1c0] sm:$0xff] }
  0xbc   : > { %1161 = vmatprep.mubr.f32.mxu1 %v4446_v7 }
  0xbe   : > { %3950 = vmatmul.mubr.msk.f32.gmra.mrb[58].mxu0 %vm281_vm0, %v230_v54 }
  0xbf   : > { %4014 = vmatmul.mubr.msk.f32.gmra.mrb[58].mxu1 %vm281_vm0, %v230_v54  ;;  %718 = vmatprep.mubr.f32.mxu0 %v4446_v7 }
  0xc0   : > { %1167 = vmatprep.mubr.f32.mxu1 %v4446_v7 }
  0xc2   : > { %3951 = vmatmul.mubr.msk.f32.gmra.mrb[60].mxu0 %vm281_vm0, %v231_v55 }
  0xc3   : > { %4015 = vmatmul.mubr.msk.f32.gmra.mrb[60].mxu1 %vm281_vm0, %v231_v55  ;;  %724 = vmatprep.mubr.f32.mxu0 %v4446_v7 }
  0xc4   : > { %1173 = vmatprep.mubr.f32.mxu1 %v4446_v7 }
  0xc6   : > { %3952 = vmatmul.mubr.msk.f32.gmra.mrb[62].mxu0 %vm281_vm0, %v232_v56 }
  0xc7   : > { %4016 = vmatmul.mubr.msk.f32.gmra.mrb[62].mxu1 %vm281_vm0, %v232_v56  ;;  %730 = vmatprep.mubr.f32.mxu0 %v4446_v7 }
  0xc8   : > { %1179 = vmatprep.mubr.f32.mxu1 %v4446_v7 }
  0xca   : > { %3953 = vmatmul.mubr.msk.f32.gmra.mrb[64].mxu0 %vm281_vm0, %v233_v57 }
  0xcb   : > { %4017 = vmatmul.mubr.msk.f32.gmra.mrb[64].mxu1 %vm281_vm0, %v233_v57  ;;  %736 = vmatprep.mubr.f32.mxu0 %v4446_v7 }
  0xcc   : > { %1185 = vmatprep.mubr.f32.mxu1 %v4446_v7 }
  0xce   : > { %3954 = vmatmul.mubr.msk.f32.gmra.mrb[66].mxu0 %vm281_vm0, %v234_v58 }
  0xcf   : > { %4018 = vmatmul.mubr.msk.f32.gmra.mrb[66].mxu1 %vm281_vm0, %v234_v58  ;;  %742 = vmatprep.mubr.f32.mxu0 %v4446_v7 }
  0xd0   : > { %1191 = vmatprep.mubr.f32.mxu1 %v4446_v7 }
  0xd2   : > { %3955 = vmatmul.mubr.msk.f32.gmra.mrb[68].mxu0 %vm281_vm0, %v235_v59 }
  0xd3   : > { %4019 = vmatmul.mubr.msk.f32.gmra.mrb[68].mxu1 %vm281_vm0, %v235_v59  ;;  %748 = vmatprep.mubr.f32.mxu0 %v4446_v7 }
  0xd4   : > { %1197 = vmatprep.mubr.f32.mxu1 %v4446_v7 }
  0xd6   : > { %3956 = vmatmul.mubr.msk.f32.gmra.mrb[70].mxu0 %vm281_vm0, %v236_v60 }
  0xd7   : > { %4020 = vmatmul.mubr.msk.f32.gmra.mrb[70].mxu1 %vm281_vm0, %v236_v60  ;;  %754 = vmatprep.mubr.f32.mxu0 %v4446_v7 }
  0xd8   : > { %1203 = vmatprep.mubr.f32.mxu1 %v4446_v7 }
  0xda   : > { %3957 = vmatmul.mubr.msk.f32.gmra.mrb[72].mxu0 %vm281_vm0, %v237_v61 }
  0xdb   : > { %4021 = vmatmul.mubr.msk.f32.gmra.mrb[72].mxu1 %vm281_vm0, %v237_v61  ;;  %760 = vmatprep.mubr.f32.mxu0 %v4446_v7 }
  0xdc   : > { %1209 = vmatprep.mubr.f32.mxu1 %v4446_v7 }
  0xde   : > { %3958 = vmatmul.mubr.msk.f32.gmra.mrb[74].mxu0 %vm281_vm0, %v238_v62 }
  0xdf   : > { %4022 = vmatmul.mubr.msk.f32.gmra.mrb[74].mxu1 %vm281_vm0, %v238_v62  ;;  %766 = vmatprep.mubr.f32.mxu0 %v4446_v7 }
  0xe0   : > { %1215 = vmatprep.mubr.f32.mxu1 %v4446_v7 }
  0xe2   : > { %3959 = vmatmul.mubr.msk.f32.gmra.mrb[76].mxu0 %vm281_vm0, %v239_v63 }
  0xe3   : > { %4023 = vmatmul.mubr.msk.f32.gmra.mrb[76].mxu1 %vm281_vm0, %v239_v63  ;;  %772 = vmatprep.mubr.f32.mxu0 %v4446_v7 }
  0xe4   : > { %1221 = vmatprep.mubr.f32.mxu1 %v4446_v7 }
  0xe6   : > { %3960 = vmatmul.mubr.msk.f32.gmra.mrb[78].mxu0 %vm281_vm0, %v240_v0 }
  0xe7   : > { %4024 = vmatmul.mubr.msk.f32.gmra.mrb[78].mxu1 %vm281_vm0, %v240_v0  ;;  %778 = vmatprep.mubr.f32.mxu0 %v4446_v7 }
  0xe8   : > { %1227 = vmatprep.mubr.f32.mxu1 %v4446_v7 }
  0xea   : > { %3961 = vmatmul.mubr.msk.f32.gmra.mrb[80].mxu0 %vm281_vm0, %v241_v1 }
  0xeb   : > { %4025 = vmatmul.mubr.msk.f32.gmra.mrb[80].mxu1 %vm281_vm0, %v241_v1  ;;  %784 = vmatprep.mubr.f32.mxu0 %v4446_v7 }
  0xec   : > { %1233 = vmatprep.mubr.f32.mxu1 %v4446_v7 }
  0xee   : > { %3962 = vmatmul.mubr.msk.f32.gmra.mrb[82].mxu0 %vm281_vm0, %v242_v2 }
  0xef   : > { %4026 = vmatmul.mubr.msk.f32.gmra.mrb[82].mxu1 %vm281_vm0, %v242_v2  ;;  %790 = vmatprep.mubr.f32.mxu0 %v4446_v7  ;;  %v258_v2 = vld [vmem:[%s4593_s9 + $0x1c8] sm:$0xff] }
  0xf0   : > { %1239 = vmatprep.mubr.f32.mxu1 %v4446_v7 }
  0xf2   : > { %3963 = vmatmul.mubr.msk.f32.gmra.mrb[84].mxu0 %vm281_vm0, %v243_v3 }
  0xf3   : > { %4027 = vmatmul.mubr.msk.f32.gmra.mrb[84].mxu1 %vm281_vm0, %v243_v3  ;;  %796 = vmatprep.mubr.f32.mxu0 %v4446_v7 }
  0xf4   : > { %1245 = vmatprep.mubr.f32.mxu1 %v4446_v7 }
  0xf6   : > { %3964 = vmatmul.mubr.msk.f32.gmra.mrb[86].mxu0 %vm281_vm0, %v244_v4 }
  0xf7   : > { %4028 = vmatmul.mubr.msk.f32.gmra.mrb[86].mxu1 %vm281_vm0, %v244_v4  ;;  %802 = vmatprep.mubr.f32.mxu0 %v4446_v7 }
  0xf8   : > { %1251 = vmatprep.mubr.f32.mxu1 %v4446_v7 }
  0xfa   : > { %3965 = vmatmul.mubr.msk.f32.gmra.mrb[88].mxu0 %vm281_vm0, %v245_v5 }
  0xfb   : > { %4029 = vmatmul.mubr.msk.f32.gmra.mrb[88].mxu1 %vm281_vm0, %v245_v5  ;;  %808 = vmatprep.mubr.f32.mxu0 %v4446_v7 }
  0xfc   : > { %1257 = vmatprep.mubr.f32.mxu1 %v4446_v7 }
  0xfe   : > { %3966 = vmatmul.mubr.msk.f32.gmra.mrb[90].mxu0 %vm281_vm0, %v246_v6 }
  0xff   : > { %4030 = vmatmul.mubr.msk.f32.gmra.mrb[90].mxu1 %vm281_vm0, %v246_v6  ;;  %814 = vmatprep.mubr.f32.mxu0 %v4446_v7 }
 0x100   : > { %1263 = vmatprep.mubr.f32.mxu1 %v4446_v7 }
 0x102   : > { %3967 = vmatmul.mubr.msk.f32.gmra.mrb[92].mxu0 %vm281_vm0, %v247_v8 }
 0x103   : > { %4031 = vmatmul.mubr.msk.f32.gmra.mrb[92].mxu1 %vm281_vm0, %v247_v8  ;;  %820 = vmatprep.mubr.f32.mxu0 %v4446_v7 }
 0x104   : > { %1269 = vmatprep.mubr.f32.mxu1 %v4446_v7 }
 0x106   : > { %3968 = vmatmul.mubr.msk.f32.gmra.mrb[94].mxu0 %vm281_vm0, %v248_v9 }
 0x107   : > { %4032 = vmatmul.mubr.msk.f32.gmra.mrb[94].mxu1 %vm281_vm0, %v248_v9  ;;  %826 = vmatprep.mubr.f32.mxu0 %v4446_v7 }
 0x108   : > { %1275 = vmatprep.mubr.f32.mxu1 %v4446_v7 }
 0x10a   : > { %3969 = vmatmul.mubr.msk.f32.gmra.mrb[96].mxu0 %vm281_vm0, %v249_v10 }
 0x10b   : > { %4033 = vmatmul.mubr.msk.f32.gmra.mrb[96].mxu1 %vm281_vm0, %v249_v10  ;;  %832 = vmatprep.mubr.f32.mxu0 %v4446_v7 }
 0x10c   : > { %1281 = vmatprep.mubr.f32.mxu1 %v4446_v7 }
 0x10e   : > { %3970 = vmatmul.mubr.msk.f32.gmra.mrb[98].mxu0 %vm281_vm0, %v250_v11 }
 0x10f   : > { %4034 = vmatmul.mubr.msk.f32.gmra.mrb[98].mxu1 %vm281_vm0, %v250_v11  ;;  %838 = vmatprep.mubr.f32.mxu0 %v4446_v7 }
 0x110   : > { %1287 = vmatprep.mubr.f32.mxu1 %v4446_v7 }
 0x112   : > { %3971 = vmatmul.mubr.msk.f32.gmra.mrb[100].mxu0 %vm281_vm0, %v251_v12 }
 0x113   : > { %4035 = vmatmul.mubr.msk.f32.gmra.mrb[100].mxu1 %vm281_vm0, %v251_v12  ;;  %844 = vmatprep.mubr.f32.mxu0 %v4446_v7 }
 0x114   : > { %1293 = vmatprep.mubr.f32.mxu1 %v4446_v7 }
 0x116   : > { %3972 = vmatmul.mubr.msk.f32.gmra.mrb[102].mxu0 %vm281_vm0, %v252_v13 }
 0x117   : > { %4036 = vmatmul.mubr.msk.f32.gmra.mrb[102].mxu1 %vm281_vm0, %v252_v13  ;;  %850 = vmatprep.mubr.f32.mxu0 %v4446_v7 }
 0x118   : > { %1299 = vmatprep.mubr.f32.mxu1 %v4446_v7 }
 0x11a   : > { %3973 = vmatmul.mubr.msk.f32.gmra.mrb[104].mxu0 %vm281_vm0, %v253_v14 }
 0x11b   : > { %4037 = vmatmul.mubr.msk.f32.gmra.mrb[104].mxu1 %vm281_vm0, %v253_v14  ;;  %856 = vmatprep.mubr.f32.mxu0 %v4446_v7 }
 0x11c   : > { %1305 = vmatprep.mubr.f32.mxu1 %v4446_v7 }
 0x11d   : > { %v540_v17 = vpop.f32.mrb[0].mxu0 }
 0x11e   : > { %v989_v19 = vpop.f32.mrb[0].mxu1  ;;  %v2271_v20 = vsub.f32 %v540_v17, %v4863_v15  ;;  %v542_v22 = vpop.f32.mrb[1].mxu0  ;;  %3974 = vmatmul.mubr.msk.f32.gmra.mrb[106].mxu0 %vm281_vm0, %v254_v16  ;;  %v259_v17 = vld [vmem:[%s4593_s9 + $0x1d0] sm:$0xff] }
 0x11f   : > { %v2273_v21 = vsub.f32 %v989_v19, %v4863_v15  ;;  %v991_v23 = vpop.f32.mrb[1].mxu1  ;;  %4038 = vmatmul.mubr.msk.f32.gmra.mrb[106].mxu1 %vm281_vm0, %v254_v16  ;;  %v2272_v24 = vsub.f32 %v542_v22, %v4863_v15  ;;  %862 = vmatprep.mubr.f32.mxu0 %v4446_v7 }
 0x120   : > { %v2274_v26 = vsub.f32 %v991_v23, %v4863_v15  ;;  %1311 = vmatprep.mubr.f32.mxu1 %v4446_v7  ;;  %v2784_v28 = vmul.f32 %v4870_v18, %v2271_v20 }
 0x121   : > { %v2786_v29 = vmul.f32 %v4870_v18, %v2273_v21  ;;  %v2785_v30 = vmul.f32 %v4870_v18, %v2272_v24  ;;  %v546_v32 = vpop.f32.mrb[2].mxu0 }
 0x122   : > { %v2787_v31 = vmul.f32 %v4870_v18, %v2274_v26  ;;  %v995_v33 = vpop.f32.mrb[2].mxu1  ;;  %3296 = vst [vmem:[%s4885_s20] sm:$0xff] %v2784_v28  ;;  %v2279_v34 = vsub.f32 %v546_v32, %v4863_v15  ;;  %v548_v36 = vpop.f32.mrb[3].mxu0  ;;  %3975 = vmatmul.mubr.msk.f32.gmra.mrb[108].mxu0 %vm281_vm0, %v255_v27  ;;  %v260_v32 = vld [vmem:[%s4593_s9 + $0x1d8] sm:$0xff] }
 0x123   : > { %3298 = vst [vmem:[%s4885_s20 + $0x10] sm:$0xff] %v2786_v29  ;;  %v2281_v35 = vsub.f32 %v995_v33, %v4863_v15  ;;  %v997_v37 = vpop.f32.mrb[3].mxu1  ;;  %4039 = vmatmul.mubr.msk.f32.gmra.mrb[108].mxu1 %vm281_vm0, %v255_v27  ;;  %3297 = vst [vmem:[%s4885_s20 + $0x8] sm:$0xff] %v2785_v30  ;;  %v2280_v38 = vsub.f32 %v548_v36, %v4863_v15  ;;  %868 = vmatprep.mubr.f32.mxu0 %v4446_v7 }
 0x124   : > { %3299 = vst [vmem:[%s4885_s20 + $0x18] sm:$0xff] %v2787_v31  ;;  %v2282_v39 = vsub.f32 %v997_v37, %v4863_v15  ;;  %1317 = vmatprep.mubr.f32.mxu1 %v4446_v7  ;;  %v2792_v41 = vmul.f32 %v4870_v18, %v2279_v34 }
 0x125   : > { %v2794_v42 = vmul.f32 %v4870_v18, %v2281_v35  ;;  %v2793_v43 = vmul.f32 %v4870_v18, %v2280_v38  ;;  %v552_v45 = vpop.f32.mrb[4].mxu0 }
 0x126   : > { %v2795_v44 = vmul.f32 %v4870_v18, %v2282_v39  ;;  %v1001_v46 = vpop.f32.mrb[4].mxu1  ;;  %3304 = vst [vmem:[%s4885_s20 + $0x40] sm:$0xff] %v2792_v41  ;;  %v2287_v47 = vsub.f32 %v552_v45, %v4863_v15  ;;  %v554_v49 = vpop.f32.mrb[5].mxu0  ;;  %3976 = vmatmul.mubr.msk.f32.gmra.mrb[110].mxu0 %vm281_vm0, %v256_v40  ;;  %v261_v45 = vld [vmem:[%s4593_s9 + $0x1e0] sm:$0xff] }
 0x127   : > { %3306 = vst [vmem:[%s4885_s20 + $0x50] sm:$0xff] %v2794_v42  ;;  %v2289_v48 = vsub.f32 %v1001_v46, %v4863_v15  ;;  %v1003_v50 = vpop.f32.mrb[5].mxu1  ;;  %4040 = vmatmul.mubr.msk.f32.gmra.mrb[110].mxu1 %vm281_vm0, %v256_v40  ;;  %3305 = vst [vmem:[%s4885_s20 + $0x48] sm:$0xff] %v2793_v43  ;;  %v2288_v51 = vsub.f32 %v554_v49, %v4863_v15  ;;  %874 = vmatprep.mubr.f32.mxu0 %v4446_v7 }
 0x128   : > { %3307 = vst [vmem:[%s4885_s20 + $0x58] sm:$0xff] %v2795_v44  ;;  %v2290_v52 = vsub.f32 %v1003_v50, %v4863_v15  ;;  %1323 = vmatprep.mubr.f32.mxu1 %v4446_v7  ;;  %v2800_v54 = vmul.f32 %v4870_v18, %v2287_v47 }
 0x129   : > { %v2802_v55 = vmul.f32 %v4870_v18, %v2289_v48  ;;  %v2801_v56 = vmul.f32 %v4870_v18, %v2288_v51  ;;  %v558_v58 = vpop.f32.mrb[6].mxu0 }
 0x12a   : > { %v2803_v57 = vmul.f32 %v4870_v18, %v2290_v52  ;;  %v1007_v59 = vpop.f32.mrb[6].mxu1  ;;  %3312 = vst [vmem:[%s4885_s20 + $0x80] sm:$0xff] %v2800_v54  ;;  %v2295_v60 = vsub.f32 %v558_v58, %v4863_v15  ;;  %v560_v62 = vpop.f32.mrb[7].mxu0  ;;  %3977 = vmatmul.mubr.msk.f32.gmra.mrb[112].mxu0 %vm281_vm0, %v257_v53  ;;  %v262_v58 = vld [vmem:[%s4593_s9 + $0x1e8] sm:$0xff] }
 0x12b   : > { %3314 = vst [vmem:[%s4885_s20 + $0x90] sm:$0xff] %v2802_v55  ;;  %v2297_v61 = vsub.f32 %v1007_v59, %v4863_v15  ;;  %v1009_v63 = vpop.f32.mrb[7].mxu1  ;;  %4041 = vmatmul.mubr.msk.f32.gmra.mrb[112].mxu1 %vm281_vm0, %v257_v53  ;;  %3313 = vst [vmem:[%s4885_s20 + $0x88] sm:$0xff] %v2801_v56  ;;  %v2296_v0 = vsub.f32 %v560_v62, %v4863_v15  ;;  %880 = vmatprep.mubr.f32.mxu0 %v4446_v7 }
 0x12c   : > { %3315 = vst [vmem:[%s4885_s20 + $0x98] sm:$0xff] %v2803_v57  ;;  %v2298_v1 = vsub.f32 %v1009_v63, %v4863_v15  ;;  %1329 = vmatprep.mubr.f32.mxu1 %v4446_v7  ;;  %v2808_v3 = vmul.f32 %v4870_v18, %v2295_v60 }
 0x12d   : > { %v2810_v4 = vmul.f32 %v4870_v18, %v2297_v61  ;;  %v2809_v5 = vmul.f32 %v4870_v18, %v2296_v0  ;;  %v564_v8 = vpop.f32.mrb[8].mxu0 }
 0x12e   : > { %v2811_v6 = vmul.f32 %v4870_v18, %v2298_v1  ;;  %v1013_v9 = vpop.f32.mrb[8].mxu1  ;;  %3320 = vst [vmem:[%s4885_s20 + $0xc0] sm:$0xff] %v2808_v3  ;;  %v2303_v10 = vsub.f32 %v564_v8, %v4863_v15  ;;  %v566_v12 = vpop.f32.mrb[9].mxu0  ;;  %3978 = vmatmul.mubr.msk.f32.gmra.mrb[114].mxu0 %vm281_vm0, %v258_v2  ;;  %v263_v8 = vld [vmem:[%s4593_s9 + $0x1f0] sm:$0xff] }
 0x12f   : > { %3322 = vst [vmem:[%s4885_s20 + $0xd0] sm:$0xff] %v2810_v4  ;;  %v2305_v11 = vsub.f32 %v1013_v9, %v4863_v15  ;;  %v1015_v13 = vpop.f32.mrb[9].mxu1  ;;  %4042 = vmatmul.mubr.msk.f32.gmra.mrb[114].mxu1 %vm281_vm0, %v258_v2  ;;  %3321 = vst [vmem:[%s4885_s20 + $0xc8] sm:$0xff] %v2809_v5  ;;  %v2304_v14 = vsub.f32 %v566_v12, %v4863_v15  ;;  %886 = vmatprep.mubr.f32.mxu0 %v4446_v7 }
 0x130   : > { %3323 = vst [vmem:[%s4885_s20 + $0xd8] sm:$0xff] %v2811_v6  ;;  %v2306_v16 = vsub.f32 %v1015_v13, %v4863_v15  ;;  %1335 = vmatprep.mubr.f32.mxu1 %v4446_v7  ;;  %v2816_v19 = vmul.f32 %v4870_v18, %v2303_v10 }
 0x131   : > { %v2818_v20 = vmul.f32 %v4870_v18, %v2305_v11  ;;  %v2817_v21 = vmul.f32 %v4870_v18, %v2304_v14  ;;  %v570_v23 = vpop.f32.mrb[10].mxu0 }
 0x132   : > { %v2819_v22 = vmul.f32 %v4870_v18, %v2306_v16  ;;  %v1019_v24 = vpop.f32.mrb[10].mxu1  ;;  %3328 = vst [vmem:[%s4885_s20 + $0x100] sm:$0xff] %v2816_v19  ;;  %v2311_v26 = vsub.f32 %v570_v23, %v4863_v15  ;;  %v572_v28 = vpop.f32.mrb[11].mxu0  ;;  %3979 = vmatmul.mubr.msk.f32.gmra.mrb[116].mxu0 %vm281_vm0, %v259_v17  ;;  %v264_v23 = vld [vmem:[%s4593_s9 + $0x1f8] sm:$0xff] }
 0x133   : > { %3330 = vst [vmem:[%s4885_s20 + $0x110] sm:$0xff] %v2818_v20  ;;  %v2313_v27 = vsub.f32 %v1019_v24, %v4863_v15  ;;  %v1021_v29 = vpop.f32.mrb[11].mxu1  ;;  %4043 = vmatmul.mubr.msk.f32.gmra.mrb[116].mxu1 %vm281_vm0, %v259_v17  ;;  %3329 = vst [vmem:[%s4885_s20 + $0x108] sm:$0xff] %v2817_v21  ;;  %v2312_v30 = vsub.f32 %v572_v28, %v4863_v15  ;;  %892 = vmatprep.mubr.f32.mxu0 %v4446_v7 }
 0x134   : > { %3331 = vst [vmem:[%s4885_s20 + $0x118] sm:$0xff] %v2819_v22  ;;  %v2314_v31 = vsub.f32 %v1021_v29, %v4863_v15  ;;  %1341 = vmatprep.mubr.f32.mxu1 %v4446_v7  ;;  %v2824_v33 = vmul.f32 %v4870_v18, %v2311_v26 }
 0x135   : > { %v2826_v34 = vmul.f32 %v4870_v18, %v2313_v27  ;;  %v2825_v35 = vmul.f32 %v4870_v18, %v2312_v30  ;;  %v576_v37 = vpop.f32.mrb[12].mxu0 }
 0x136   : > { %v2827_v36 = vmul.f32 %v4870_v18, %v2314_v31  ;;  %v1025_v38 = vpop.f32.mrb[12].mxu1  ;;  %3336 = vst [vmem:[%s4885_s20 + $0x140] sm:$0xff] %v2824_v33  ;;  %v2319_v39 = vsub.f32 %v576_v37, %v4863_v15  ;;  %v578_v41 = vpop.f32.mrb[13].mxu0  ;;  %3980 = vmatmul.mubr.msk.f32.gmra.mrb[118].mxu0 %vm281_vm0, %v260_v32 }
 0x137   : > { %3338 = vst [vmem:[%s4885_s20 + $0x150] sm:$0xff] %v2826_v34  ;;  %v2321_v40 = vsub.f32 %v1025_v38, %v4863_v15  ;;  %v1027_v42 = vpop.f32.mrb[13].mxu1  ;;  %4044 = vmatmul.mubr.msk.f32.gmra.mrb[118].mxu1 %vm281_vm0, %v260_v32  ;;  %3337 = vst [vmem:[%s4885_s20 + $0x148] sm:$0xff] %v2825_v35  ;;  %v2320_v43 = vsub.f32 %v578_v41, %v4863_v15  ;;  %898 = vmatprep.mubr.f32.mxu0 %v4446_v7 }
 0x138   : > { %3339 = vst [vmem:[%s4885_s20 + $0x158] sm:$0xff] %v2827_v36  ;;  %v2322_v44 = vsub.f32 %v1027_v42, %v4863_v15  ;;  %1347 = vmatprep.mubr.f32.mxu1 %v4446_v7  ;;  %v2832_v46 = vmul.f32 %v4870_v18, %v2319_v39 }
 0x139   : > { %v2834_v47 = vmul.f32 %v4870_v18, %v2321_v40  ;;  %v2833_v48 = vmul.f32 %v4870_v18, %v2320_v43  ;;  %v582_v50 = vpop.f32.mrb[14].mxu0 }
 0x13a   : > { %v2835_v49 = vmul.f32 %v4870_v18, %v2322_v44  ;;  %v1031_v51 = vpop.f32.mrb[14].mxu1  ;;  %3344 = vst [vmem:[%s4885_s20 + $0x180] sm:$0xff] %v2832_v46  ;;  %v2327_v52 = vsub.f32 %v582_v50, %v4863_v15  ;;  %v584_v54 = vpop.f32.mrb[15].mxu0  ;;  %3981 = vmatmul.mubr.msk.f32.gmra.mrb[120].mxu0 %vm281_vm0, %v261_v45 }
 0x13b   : > { %3346 = vst [vmem:[%s4885_s20 + $0x190] sm:$0xff] %v2834_v47  ;;  %v2329_v53 = vsub.f32 %v1031_v51, %v4863_v15  ;;  %v1033_v55 = vpop.f32.mrb[15].mxu1  ;;  %4045 = vmatmul.mubr.msk.f32.gmra.mrb[120].mxu1 %vm281_vm0, %v261_v45  ;;  %3345 = vst [vmem:[%s4885_s20 + $0x188] sm:$0xff] %v2833_v48  ;;  %v2328_v56 = vsub.f32 %v584_v54, %v4863_v15  ;;  %904 = vmatprep.mubr.f32.mxu0 %v4446_v7 }
 0x13c   : > { %3347 = vst [vmem:[%s4885_s20 + $0x198] sm:$0xff] %v2835_v49  ;;  %v2330_v57 = vsub.f32 %v1033_v55, %v4863_v15  ;;  %1353 = vmatprep.mubr.f32.mxu1 %v4446_v7  ;;  %v2840_v59 = vmul.f32 %v4870_v18, %v2327_v52 }
 0x13d   : > { %v2842_v60 = vmul.f32 %v4870_v18, %v2329_v53  ;;  %v2841_v61 = vmul.f32 %v4870_v18, %v2328_v56  ;;  %v588_v63 = vpop.f32.mrb[16].mxu0 }
 0x13e   : > { %v2843_v62 = vmul.f32 %v4870_v18, %v2330_v57  ;;  %v1037_v0 = vpop.f32.mrb[16].mxu1  ;;  %3352 = vst [vmem:[%s4885_s20 + $0x1c0] sm:$0xff] %v2840_v59  ;;  %v2335_v1 = vsub.f32 %v588_v63, %v4863_v15  ;;  %v590_v3 = vpop.f32.mrb[17].mxu0  ;;  %3982 = vmatmul.mubr.msk.f32.gmra.mrb[122].mxu0 %vm281_vm0, %v262_v58 }
 0x13f   : > { %3354 = vst [vmem:[%s4885_s20 + $0x1d0] sm:$0xff] %v2842_v60  ;;  %v2337_v2 = vsub.f32 %v1037_v0, %v4863_v15  ;;  %v1039_v4 = vpop.f32.mrb[17].mxu1  ;;  %4046 = vmatmul.mubr.msk.f32.gmra.mrb[122].mxu1 %vm281_vm0, %v262_v58  ;;  %3353 = vst [vmem:[%s4885_s20 + $0x1c8] sm:$0xff] %v2841_v61  ;;  %v2336_v5 = vsub.f32 %v590_v3, %v4863_v15  ;;  %910 = vmatprep.mubr.f32.mxu0 %v4446_v7  ;;  %v4266_v58 = vld [vmem:[%s4593_s9 + $0x8] sm:$0xff] }
 0x140   : > { %3355 = vst [vmem:[%s4885_s20 + $0x1d8] sm:$0xff] %v2843_v62  ;;  %v2338_v6 = vsub.f32 %v1039_v4, %v4863_v15  ;;  %1359 = vmatprep.mubr.f32.mxu1 %v4446_v7  ;;  %v2848_v9 = vmul.f32 %v4870_v18, %v2335_v1 }
 0x141   : > { %v2850_v10 = vmul.f32 %v4870_v18, %v2337_v2  ;;  %v2849_v11 = vmul.f32 %v4870_v18, %v2336_v5  ;;  %v594_v13 = vpop.f32.mrb[18].mxu0 }
 0x142   : > { %v2851_v12 = vmul.f32 %v4870_v18, %v2338_v6  ;;  %v1043_v14 = vpop.f32.mrb[18].mxu1  ;;  %3360 = vst [vmem:[%s4885_s20 + $0x200] sm:$0xff] %v2848_v9  ;;  %v2343_v16 = vsub.f32 %v594_v13, %v4863_v15  ;;  %v596_v19 = vpop.f32.mrb[19].mxu0  ;;  %3983 = vmatmul.mubr.msk.f32.gmra.mrb[124].mxu0 %vm281_vm0, %v263_v8 }
 0x143   : > { %3362 = vst [vmem:[%s4885_s20 + $0x210] sm:$0xff] %v2850_v10  ;;  %v2345_v17 = vsub.f32 %v1043_v14, %v4863_v15  ;;  %v1045_v20 = vpop.f32.mrb[19].mxu1  ;;  %4047 = vmatmul.mubr.msk.f32.gmra.mrb[124].mxu1 %vm281_vm0, %v263_v8  ;;  %3361 = vst [vmem:[%s4885_s20 + $0x208] sm:$0xff] %v2849_v11  ;;  %v2344_v21 = vsub.f32 %v596_v19, %v4863_v15  ;;  %916 = vmatprep.mubr.f32.mxu0 %v4446_v7  ;;  %v4267_v8 = vld [vmem:[%s4593_s9 + $0x10] sm:$0xff] }
 0x144   : > { %3363 = vst [vmem:[%s4885_s20 + $0x218] sm:$0xff] %v2851_v12  ;;  %v2346_v22 = vsub.f32 %v1045_v20, %v4863_v15  ;;  %1365 = vmatprep.mubr.f32.mxu1 %v4446_v7  ;;  %v2856_v24 = vmul.f32 %v4870_v18, %v2343_v16 }
 0x145   : > { %v2858_v26 = vmul.f32 %v4870_v18, %v2345_v17  ;;  %v2857_v27 = vmul.f32 %v4870_v18, %v2344_v21  ;;  %v600_v29 = vpop.f32.mrb[20].mxu0 }
 0x146   : > { %v2859_v28 = vmul.f32 %v4870_v18, %v2346_v22  ;;  %v1049_v30 = vpop.f32.mrb[20].mxu1  ;;  %3368 = vst [vmem:[%s4885_s20 + $0x240] sm:$0xff] %v2856_v24  ;;  %v2351_v31 = vsub.f32 %v600_v29, %v4863_v15  ;;  %v602_v33 = vpop.f32.mrb[21].mxu0  ;;  %3984 = vmatmul.mubr.msk.f32.gmra.mrb[126].mxu0 %vm281_vm0, %v264_v23 }
 0x147   : > { %3370 = vst [vmem:[%s4885_s20 + $0x250] sm:$0xff] %v2858_v26  ;;  %v2353_v32 = vsub.f32 %v1049_v30, %v4863_v15  ;;  %v1051_v34 = vpop.f32.mrb[21].mxu1  ;;  %4048 = vmatmul.mubr.msk.f32.gmra.mrb[126].mxu1 %vm281_vm0, %v264_v23  ;;  %3369 = vst [vmem:[%s4885_s20 + $0x248] sm:$0xff] %v2857_v27  ;;  %v2352_v35 = vsub.f32 %v602_v33, %v4863_v15  ;;  %1436 = vmatprep.mubr.f32.mxu0 %v4446_v7  ;;  %v4268_v23 = vld [vmem:[%s4593_s9 + $0x18] sm:$0xff] }
 0x148   : > { %3371 = vst [vmem:[%s4885_s20 + $0x258] sm:$0xff] %v2859_v28  ;;  %v2354_v36 = vsub.f32 %v1051_v34, %v4863_v15  ;;  %1885 = vmatprep.mubr.f32.mxu1 %v4446_v7  ;;  %v2864_v37 = vmul.f32 %v4870_v18, %v2351_v31 }
 0x149   : > { %v2866_v38 = vmul.f32 %v4870_v18, %v2353_v32  ;;  %v2865_v39 = vmul.f32 %v4870_v18, %v2352_v35  ;;  %v606_v41 = vpop.f32.mrb[22].mxu0 }
 0x14a   : > { %v2867_v40 = vmul.f32 %v4870_v18, %v2354_v36  ;;  %v1055_v42 = vpop.f32.mrb[22].mxu1  ;;  %3376 = vst [vmem:[%s4885_s20 + $0x280] sm:$0xff] %v2864_v37  ;;  %v2359_v43 = vsub.f32 %v606_v41, %v4863_v15  ;;  %v608_v45 = vpop.f32.mrb[23].mxu0  ;;  %4049 = vmatmul.mubr.msk.f32.vlgmr.msra.gmra.mrb[128].mxu0 %vm281_vm0, %v4596_v25  ;;  %v4269_v37 = vld [vmem:[%s4593_s9 + $0x20] sm:$0xff] }
 0x14b   : > { %3378 = vst [vmem:[%s4885_s20 + $0x290] sm:$0xff] %v2866_v38  ;;  %v2361_v44 = vsub.f32 %v1055_v42, %v4863_v15  ;;  %v1057_v46 = vpop.f32.mrb[23].mxu1  ;;  %4113 = vmatmul.mubr.msk.f32.vlgmr.msra.gmra.mrb[128].mxu1 %vm281_vm0, %v4596_v25  ;;  %3377 = vst [vmem:[%s4885_s20 + $0x288] sm:$0xff] %v2865_v39  ;;  %v2360_v47 = vsub.f32 %v608_v45, %v4863_v15  ;;  %1442 = vmatprep.mubr.f32.mxu0 %v4446_v7 }
 0x14c   : > { %3379 = vst [vmem:[%s4885_s20 + $0x298] sm:$0xff] %v2867_v40  ;;  %v2362_v48 = vsub.f32 %v1057_v46, %v4863_v15  ;;  %1891 = vmatprep.mubr.f32.mxu1 %v4446_v7  ;;  %v2872_v49 = vmul.f32 %v4870_v18, %v2359_v43 }
 0x14d   : > { %v2874_v50 = vmul.f32 %v4870_v18, %v2361_v44  ;;  %v2873_v51 = vmul.f32 %v4870_v18, %v2360_v47  ;;  %v612_v52 = vpop.f32.mrb[24].mxu0 }
 0x14e   : > { %v2875_v25 = vmul.f32 %v4870_v18, %v2362_v48  ;;  %v1061_v53 = vpop.f32.mrb[24].mxu1  ;;  %3384 = vst [vmem:[%s4885_s20 + $0x2c0] sm:$0xff] %v2872_v49  ;;  %v2367_v54 = vsub.f32 %v612_v52, %v4863_v15  ;;  %v614_v56 = vpop.f32.mrb[25].mxu0  ;;  %4050 = vmatmul.mubr.msk.f32.gmra.mrb[130].mxu0 %vm281_vm0, %v4266_v58 }
 0x14f   : > { %3386 = vst [vmem:[%s4885_s20 + $0x2d0] sm:$0xff] %v2874_v50  ;;  %v2369_v55 = vsub.f32 %v1061_v53, %v4863_v15  ;;  %v1063_v57 = vpop.f32.mrb[25].mxu1  ;;  %4114 = vmatmul.mubr.msk.f32.gmra.mrb[130].mxu1 %vm281_vm0, %v4266_v58  ;;  %3385 = vst [vmem:[%s4885_s20 + $0x2c8] sm:$0xff] %v2873_v51  ;;  %v2368_v59 = vsub.f32 %v614_v56, %v4863_v15  ;;  %1448 = vmatprep.mubr.f32.mxu0 %v4446_v7  ;;  %v4270_v50 = vld [vmem:[%s4593_s9 + $0x28] sm:$0xff] }
 0x150   : > { %3387 = vst [vmem:[%s4885_s20 + $0x2d8] sm:$0xff] %v2875_v25  ;;  %v2370_v60 = vsub.f32 %v1063_v57, %v4863_v15  ;;  %1897 = vmatprep.mubr.f32.mxu1 %v4446_v7  ;;  %v2880_v61 = vmul.f32 %v4870_v18, %v2367_v54 }
 0x151   : > { %v2882_v62 = vmul.f32 %v4870_v18, %v2369_v55  ;;  %v2881_v63 = vmul.f32 %v4870_v18, %v2368_v59  ;;  %v618_v1 = vpop.f32.mrb[26].mxu0 }
 0x152   : > { %v2883_v0 = vmul.f32 %v4870_v18, %v2370_v60  ;;  %v1067_v2 = vpop.f32.mrb[26].mxu1  ;;  %3392 = vst [vmem:[%s4885_s20 + $0x300] sm:$0xff] %v2880_v61  ;;  %v2375_v3 = vsub.f32 %v618_v1, %v4863_v15  ;;  %v620_v5 = vpop.f32.mrb[27].mxu0  ;;  %4051 = vmatmul.mubr.msk.f32.gmra.mrb[132].mxu0 %vm281_vm0, %v4267_v8 }
 0x153   : > { %3394 = vst [vmem:[%s4885_s20 + $0x310] sm:$0xff] %v2882_v62  ;;  %v2377_v4 = vsub.f32 %v1067_v2, %v4863_v15  ;;  %v1069_v6 = vpop.f32.mrb[27].mxu1  ;;  %4115 = vmatmul.mubr.msk.f32.gmra.mrb[132].mxu1 %vm281_vm0, %v4267_v8  ;;  %3393 = vst [vmem:[%s4885_s20 + $0x308] sm:$0xff] %v2881_v63  ;;  %v2376_v9 = vsub.f32 %v620_v5, %v4863_v15  ;;  %1454 = vmatprep.mubr.f32.mxu0 %v4446_v7  ;;  %v4271_v62 = vld [vmem:[%s4593_s9 + $0x30] sm:$0xff] }
 0x154   : > { %3395 = vst [vmem:[%s4885_s20 + $0x318] sm:$0xff] %v2883_v0  ;;  %v2378_v10 = vsub.f32 %v1069_v6, %v4863_v15  ;;  %1903 = vmatprep.mubr.f32.mxu1 %v4446_v7  ;;  %v2888_v11 = vmul.f32 %v4870_v18, %v2375_v3 }
 0x155   : > { %v2890_v12 = vmul.f32 %v4870_v18, %v2377_v4  ;;  %v2889_v13 = vmul.f32 %v4870_v18, %v2376_v9  ;;  %v624_v16 = vpop.f32.mrb[28].mxu0 }
 0x156   : > { %v2891_v14 = vmul.f32 %v4870_v18, %v2378_v10  ;;  %v1073_v17 = vpop.f32.mrb[28].mxu1  ;;  %3400 = vst [vmem:[%s4885_s20 + $0x340] sm:$0xff] %v2888_v11  ;;  %v2383_v19 = vsub.f32 %v624_v16, %v4863_v15  ;;  %v626_v21 = vpop.f32.mrb[29].mxu0  ;;  %4052 = vmatmul.mubr.msk.f32.gmra.mrb[134].mxu0 %vm281_vm0, %v4268_v23 }
 0x157   : > { %3402 = vst [vmem:[%s4885_s20 + $0x350] sm:$0xff] %v2890_v12  ;;  %v2385_v20 = vsub.f32 %v1073_v17, %v4863_v15  ;;  %v1075_v22 = vpop.f32.mrb[29].mxu1  ;;  %4116 = vmatmul.mubr.msk.f32.gmra.mrb[134].mxu1 %vm281_vm0, %v4268_v23  ;;  %3401 = vst [vmem:[%s4885_s20 + $0x348] sm:$0xff] %v2889_v13  ;;  %v2384_v24 = vsub.f32 %v626_v21, %v4863_v15  ;;  %1460 = vmatprep.mubr.f32.mxu0 %v4446_v7  ;;  %v4272_v12 = vld [vmem:[%s4593_s9 + $0x38] sm:$0xff] }
 0x158   : > { %3403 = vst [vmem:[%s4885_s20 + $0x358] sm:$0xff] %v2891_v14  ;;  %v2386_v26 = vsub.f32 %v1075_v22, %v4863_v15  ;;  %1909 = vmatprep.mubr.f32.mxu1 %v4446_v7  ;;  %v2896_v27 = vmul.f32 %v4870_v18, %v2383_v19 }
 0x159   : > { %v2898_v28 = vmul.f32 %v4870_v18, %v2385_v20  ;;  %v2897_v29 = vmul.f32 %v4870_v18, %v2384_v24  ;;  %v630_v31 = vpop.f32.mrb[30].mxu0 }
 0x15a   : > { %v2899_v30 = vmul.f32 %v4870_v18, %v2386_v26  ;;  %v1079_v32 = vpop.f32.mrb[30].mxu1  ;;  %3408 = vst [vmem:[%s4885_s20 + $0x380] sm:$0xff] %v2896_v27  ;;  %v2391_v33 = vsub.f32 %v630_v31, %v4863_v15  ;;  %v632_v35 = vpop.f32.mrb[31].mxu0  ;;  %4053 = vmatmul.mubr.msk.f32.gmra.mrb[136].mxu0 %vm281_vm0, %v4269_v37 }
 0x15b   : > { %3410 = vst [vmem:[%s4885_s20 + $0x390] sm:$0xff] %v2898_v28  ;;  %v2393_v34 = vsub.f32 %v1079_v32, %v4863_v15  ;;  %v1081_v36 = vpop.f32.mrb[31].mxu1  ;;  %4117 = vmatmul.mubr.msk.f32.gmra.mrb[136].mxu1 %vm281_vm0, %v4269_v37  ;;  %3409 = vst [vmem:[%s4885_s20 + $0x388] sm:$0xff] %v2897_v29  ;;  %v2392_v38 = vsub.f32 %v632_v35, %v4863_v15  ;;  %1466 = vmatprep.mubr.f32.mxu0 %v4446_v7  ;;  %v4273_v28 = vld [vmem:[%s4593_s9 + $0x40] sm:$0xff] }
 0x15c   : > { %3411 = vst [vmem:[%s4885_s20 + $0x398] sm:$0xff] %v2899_v30  ;;  %v2394_v39 = vsub.f32 %v1081_v36, %v4863_v15  ;;  %1915 = vmatprep.mubr.f32.mxu1 %v4446_v7  ;;  %v2904_v40 = vmul.f32 %v4870_v18, %v2391_v33 }
 0x15d   : > { %v2906_v41 = vmul.f32 %v4870_v18, %v2393_v34  ;;  %v2905_v42 = vmul.f32 %v4870_v18, %v2392_v38  ;;  %v636_v44 = vpop.f32.mrb[32].mxu0 }
 0x15e   : > { %v2907_v43 = vmul.f32 %v4870_v18, %v2394_v39  ;;  %v1085_v45 = vpop.f32.mrb[32].mxu1  ;;  %3416 = vst [vmem:[%s4885_s20 + $0x3c0] sm:$0xff] %v2904_v40  ;;  %v2399_v46 = vsub.f32 %v636_v44, %v4863_v15  ;;  %v638_v48 = vpop.f32.mrb[33].mxu0  ;;  %4054 = vmatmul.mubr.msk.f32.gmra.mrb[138].mxu0 %vm281_vm0, %v4270_v50 }
 0x15f   : > { %3418 = vst [vmem:[%s4885_s20 + $0x3d0] sm:$0xff] %v2906_v41  ;;  %v2401_v47 = vsub.f32 %v1085_v45, %v4863_v15  ;;  %v1087_v49 = vpop.f32.mrb[33].mxu1  ;;  %4118 = vmatmul.mubr.msk.f32.gmra.mrb[138].mxu1 %vm281_vm0, %v4270_v50  ;;  %3417 = vst [vmem:[%s4885_s20 + $0x3c8] sm:$0xff] %v2905_v42  ;;  %v2400_v51 = vsub.f32 %v638_v48, %v4863_v15  ;;  %1472 = vmatprep.mubr.f32.mxu0 %v4446_v7  ;;  %v4274_v41 = vld [vmem:[%s4593_s9 + $0x48] sm:$0xff] }
 0x160   : > { %3419 = vst [vmem:[%s4885_s20 + $0x3d8] sm:$0xff] %v2907_v43  ;;  %v2402_v25 = vsub.f32 %v1087_v49, %v4863_v15  ;;  %1921 = vmatprep.mubr.f32.mxu1 %v4446_v7  ;;  %v2912_v52 = vmul.f32 %v4870_v18, %v2399_v46 }
 0x161   : > { %v2914_v53 = vmul.f32 %v4870_v18, %v2401_v47  ;;  %v2913_v54 = vmul.f32 %v4870_v18, %v2400_v51  ;;  %v642_v56 = vpop.f32.mrb[34].mxu0 }
 0x162   : > { %v2915_v55 = vmul.f32 %v4870_v18, %v2402_v25  ;;  %v1091_v57 = vpop.f32.mrb[34].mxu1  ;;  %3424 = vst [vmem:[%s4885_s20 + $0x400] sm:$0xff] %v2912_v52  ;;  %v2407_v58 = vsub.f32 %v642_v56, %v4863_v15  ;;  %v644_v60 = vpop.f32.mrb[35].mxu0  ;;  %4055 = vmatmul.mubr.msk.f32.gmra.mrb[140].mxu0 %vm281_vm0, %v4271_v62 }
 0x163   : > { %3426 = vst [vmem:[%s4885_s20 + $0x410] sm:$0xff] %v2914_v53  ;;  %v2409_v59 = vsub.f32 %v1091_v57, %v4863_v15  ;;  %v1093_v61 = vpop.f32.mrb[35].mxu1  ;;  %4119 = vmatmul.mubr.msk.f32.gmra.mrb[140].mxu1 %vm281_vm0, %v4271_v62  ;;  %3425 = vst [vmem:[%s4885_s20 + $0x408] sm:$0xff] %v2913_v54  ;;  %v2408_v63 = vsub.f32 %v644_v60, %v4863_v15  ;;  %1478 = vmatprep.mubr.f32.mxu0 %v4446_v7  ;;  %v4275_v53 = vld [vmem:[%s4593_s9 + $0x50] sm:$0xff] }
 0x164   : > { %3427 = vst [vmem:[%s4885_s20 + $0x418] sm:$0xff] %v2915_v55  ;;  %v2410_v0 = vsub.f32 %v1093_v61, %v4863_v15  ;;  %1927 = vmatprep.mubr.f32.mxu1 %v4446_v7  ;;  %v2920_v1 = vmul.f32 %v4870_v18, %v2407_v58 }
 0x165   : > { %v2922_v2 = vmul.f32 %v4870_v18, %v2409_v59  ;;  %v2921_v3 = vmul.f32 %v4870_v18, %v2408_v63  ;;  %v648_v5 = vpop.f32.mrb[36].mxu0 }
 0x166   : > { %v2923_v4 = vmul.f32 %v4870_v18, %v2410_v0  ;;  %v1097_v6 = vpop.f32.mrb[36].mxu1  ;;  %3432 = vst [vmem:[%s4885_s20 + $0x440] sm:$0xff] %v2920_v1  ;;  %v2415_v8 = vsub.f32 %v648_v5, %v4863_v15  ;;  %v650_v10 = vpop.f32.mrb[37].mxu0  ;;  %4056 = vmatmul.mubr.msk.f32.gmra.mrb[142].mxu0 %vm281_vm0, %v4272_v12 }
 0x167   : > { %3434 = vst [vmem:[%s4885_s20 + $0x450] sm:$0xff] %v2922_v2  ;;  %v2417_v9 = vsub.f32 %v1097_v6, %v4863_v15  ;;  %v1099_v11 = vpop.f32.mrb[37].mxu1  ;;  %4120 = vmatmul.mubr.msk.f32.gmra.mrb[142].mxu1 %vm281_vm0, %v4272_v12  ;;  %3433 = vst [vmem:[%s4885_s20 + $0x448] sm:$0xff] %v2921_v3  ;;  %v2416_v13 = vsub.f32 %v650_v10, %v4863_v15  ;;  %1484 = vmatprep.mubr.f32.mxu0 %v4446_v7  ;;  %v4276_v2 = vld [vmem:[%s4593_s9 + $0x58] sm:$0xff] }
 0x168   : > { %3435 = vst [vmem:[%s4885_s20 + $0x458] sm:$0xff] %v2923_v4  ;;  %v2418_v14 = vsub.f32 %v1099_v11, %v4863_v15  ;;  %1933 = vmatprep.mubr.f32.mxu1 %v4446_v7  ;;  %v2928_v16 = vmul.f32 %v4870_v18, %v2415_v8 }
 0x169   : > { %v2930_v17 = vmul.f32 %v4870_v18, %v2417_v9  ;;  %v2929_v19 = vmul.f32 %v4870_v18, %v2416_v13  ;;  %v654_v21 = vpop.f32.mrb[38].mxu0 }
 0x16a   : > { %v2931_v20 = vmul.f32 %v4870_v18, %v2418_v14  ;;  %v1103_v22 = vpop.f32.mrb[38].mxu1  ;;  %3440 = vst [vmem:[%s4885_s20 + $0x480] sm:$0xff] %v2928_v16  ;;  %v2423_v23 = vsub.f32 %v654_v21, %v4863_v15  ;;  %v656_v26 = vpop.f32.mrb[39].mxu0  ;;  %4057 = vmatmul.mubr.msk.f32.gmra.mrb[144].mxu0 %vm281_vm0, %v4273_v28 }
 0x16b   : > { %3442 = vst [vmem:[%s4885_s20 + $0x490] sm:$0xff] %v2930_v17  ;;  %v2425_v24 = vsub.f32 %v1103_v22, %v4863_v15  ;;  %v1105_v27 = vpop.f32.mrb[39].mxu1  ;;  %4121 = vmatmul.mubr.msk.f32.gmra.mrb[144].mxu1 %vm281_vm0, %v4273_v28  ;;  %3441 = vst [vmem:[%s4885_s20 + $0x488] sm:$0xff] %v2929_v19  ;;  %v2424_v29 = vsub.f32 %v656_v26, %v4863_v15  ;;  %1490 = vmatprep.mubr.f32.mxu0 %v4446_v7  ;;  %v4277_v17 = vld [vmem:[%s4593_s9 + $0x60] sm:$0xff] }
 0x16c   : > { %3443 = vst [vmem:[%s4885_s20 + $0x498] sm:$0xff] %v2931_v20  ;;  %v2426_v30 = vsub.f32 %v1105_v27, %v4863_v15  ;;  %1939 = vmatprep.mubr.f32.mxu1 %v4446_v7  ;;  %v2936_v31 = vmul.f32 %v4870_v18, %v2423_v23 }
 0x16d   : > { %v2938_v32 = vmul.f32 %v4870_v18, %v2425_v24  ;;  %v2937_v33 = vmul.f32 %v4870_v18, %v2424_v29  ;;  %v660_v35 = vpop.f32.mrb[40].mxu0 }
 0x16e   : > { %v2939_v34 = vmul.f32 %v4870_v18, %v2426_v30  ;;  %v1109_v36 = vpop.f32.mrb[40].mxu1  ;;  %3448 = vst [vmem:[%s4885_s20 + $0x4c0] sm:$0xff] %v2936_v31  ;;  %v2431_v37 = vsub.f32 %v660_v35, %v4863_v15  ;;  %v662_v39 = vpop.f32.mrb[41].mxu0  ;;  %4058 = vmatmul.mubr.msk.f32.gmra.mrb[146].mxu0 %vm281_vm0, %v4274_v41 }
 0x16f   : > { %3450 = vst [vmem:[%s4885_s20 + $0x4d0] sm:$0xff] %v2938_v32  ;;  %v2433_v38 = vsub.f32 %v1109_v36, %v4863_v15  ;;  %v1111_v40 = vpop.f32.mrb[41].mxu1  ;;  %4122 = vmatmul.mubr.msk.f32.gmra.mrb[146].mxu1 %vm281_vm0, %v4274_v41  ;;  %3449 = vst [vmem:[%s4885_s20 + $0x4c8] sm:$0xff] %v2937_v33  ;;  %v2432_v42 = vsub.f32 %v662_v39, %v4863_v15  ;;  %1496 = vmatprep.mubr.f32.mxu0 %v4446_v7  ;;  %v4278_v32 = vld [vmem:[%s4593_s9 + $0x68] sm:$0xff] }
 0x170   : > { %3451 = vst [vmem:[%s4885_s20 + $0x4d8] sm:$0xff] %v2939_v34  ;;  %v2434_v43 = vsub.f32 %v1111_v40, %v4863_v15  ;;  %1945 = vmatprep.mubr.f32.mxu1 %v4446_v7  ;;  %v2944_v44 = vmul.f32 %v4870_v18, %v2431_v37 }
 0x171   : > { %v2946_v45 = vmul.f32 %v4870_v18, %v2433_v38  ;;  %v2945_v46 = vmul.f32 %v4870_v18, %v2432_v42  ;;  %v666_v48 = vpop.f32.mrb[42].mxu0 }
 0x172   : > { %v2947_v47 = vmul.f32 %v4870_v18, %v2434_v43  ;;  %v1115_v49 = vpop.f32.mrb[42].mxu1  ;;  %3456 = vst [vmem:[%s4885_s20 + $0x500] sm:$0xff] %v2944_v44  ;;  %v2439_v50 = vsub.f32 %v666_v48, %v4863_v15  ;;  %v668_v25 = vpop.f32.mrb[43].mxu0  ;;  %4059 = vmatmul.mubr.msk.f32.gmra.mrb[148].mxu0 %vm281_vm0, %v4275_v53 }
 0x173   : > { %3458 = vst [vmem:[%s4885_s20 + $0x510] sm:$0xff] %v2946_v45  ;;  %v2441_v51 = vsub.f32 %v1115_v49, %v4863_v15  ;;  %v1117_v52 = vpop.f32.mrb[43].mxu1  ;;  %4123 = vmatmul.mubr.msk.f32.gmra.mrb[148].mxu1 %vm281_vm0, %v4275_v53  ;;  %3457 = vst [vmem:[%s4885_s20 + $0x508] sm:$0xff] %v2945_v46  ;;  %v2440_v54 = vsub.f32 %v668_v25, %v4863_v15  ;;  %1502 = vmatprep.mubr.f32.mxu0 %v4446_v7  ;;  %v4279_v45 = vld [vmem:[%s4593_s9 + $0x70] sm:$0xff] }
 0x174   : > { %3459 = vst [vmem:[%s4885_s20 + $0x518] sm:$0xff] %v2947_v47  ;;  %v2442_v55 = vsub.f32 %v1117_v52, %v4863_v15  ;;  %1951 = vmatprep.mubr.f32.mxu1 %v4446_v7  ;;  %v2952_v56 = vmul.f32 %v4870_v18, %v2439_v50 }
 0x175   : > { %v2954_v57 = vmul.f32 %v4870_v18, %v2441_v51  ;;  %v2953_v58 = vmul.f32 %v4870_v18, %v2440_v54  ;;  %v672_v60 = vpop.f32.mrb[44].mxu0 }
 0x176   : > { %v2955_v59 = vmul.f32 %v4870_v18, %v2442_v55  ;;  %v1121_v61 = vpop.f32.mrb[44].mxu1  ;;  %3464 = vst [vmem:[%s4885_s20 + $0x540] sm:$0xff] %v2952_v56  ;;  %v2447_v62 = vsub.f32 %v672_v60, %v4863_v15  ;;  %v674_v0 = vpop.f32.mrb[45].mxu0  ;;  %4060 = vmatmul.mubr.msk.f32.gmra.mrb[150].mxu0 %vm281_vm0, %v4276_v2 }
 0x177   : > { %3466 = vst [vmem:[%s4885_s20 + $0x550] sm:$0xff] %v2954_v57  ;;  %v2449_v63 = vsub.f32 %v1121_v61, %v4863_v15  ;;  %v1123_v1 = vpop.f32.mrb[45].mxu1  ;;  %4124 = vmatmul.mubr.msk.f32.gmra.mrb[150].mxu1 %vm281_vm0, %v4276_v2  ;;  %3465 = vst [vmem:[%s4885_s20 + $0x548] sm:$0xff] %v2953_v58  ;;  %v2448_v3 = vsub.f32 %v674_v0, %v4863_v15  ;;  %1508 = vmatprep.mubr.f32.mxu0 %v4446_v7  ;;  %v4280_v57 = vld [vmem:[%s4593_s9 + $0x78] sm:$0xff] }
 0x178   : > { %3467 = vst [vmem:[%s4885_s20 + $0x558] sm:$0xff] %v2955_v59  ;;  %v2450_v4 = vsub.f32 %v1123_v1, %v4863_v15  ;;  %1957 = vmatprep.mubr.f32.mxu1 %v4446_v7  ;;  %v2960_v5 = vmul.f32 %v4870_v18, %v2447_v62 }
 0x179   : > { %v2962_v6 = vmul.f32 %v4870_v18, %v2449_v63  ;;  %v2961_v8 = vmul.f32 %v4870_v18, %v2448_v3  ;;  %v678_v10 = vpop.f32.mrb[46].mxu0 }
 0x17a   : > { %v2963_v9 = vmul.f32 %v4870_v18, %v2450_v4  ;;  %v1127_v11 = vpop.f32.mrb[46].mxu1  ;;  %3472 = vst [vmem:[%s4885_s20 + $0x580] sm:$0xff] %v2960_v5  ;;  %v2455_v12 = vsub.f32 %v678_v10, %v4863_v15  ;;  %v680_v14 = vpop.f32.mrb[47].mxu0  ;;  %4061 = vmatmul.mubr.msk.f32.gmra.mrb[152].mxu0 %vm281_vm0, %v4277_v17 }
 0x17b   : > { %3474 = vst [vmem:[%s4885_s20 + $0x590] sm:$0xff] %v2962_v6  ;;  %v2457_v13 = vsub.f32 %v1127_v11, %v4863_v15  ;;  %v1129_v16 = vpop.f32.mrb[47].mxu1  ;;  %4125 = vmatmul.mubr.msk.f32.gmra.mrb[152].mxu1 %vm281_vm0, %v4277_v17  ;;  %3473 = vst [vmem:[%s4885_s20 + $0x588] sm:$0xff] %v2961_v8  ;;  %v2456_v19 = vsub.f32 %v680_v14, %v4863_v15  ;;  %1514 = vmatprep.mubr.f32.mxu0 %v4446_v7  ;;  %v4281_v6 = vld [vmem:[%s4593_s9 + $0x80] sm:$0xff] }
 0x17c   : > { %3475 = vst [vmem:[%s4885_s20 + $0x598] sm:$0xff] %v2963_v9  ;;  %v2458_v20 = vsub.f32 %v1129_v16, %v4863_v15  ;;  %1963 = vmatprep.mubr.f32.mxu1 %v4446_v7  ;;  %v2968_v21 = vmul.f32 %v4870_v18, %v2455_v12 }
 0x17d   : > { %v2970_v22 = vmul.f32 %v4870_v18, %v2457_v13  ;;  %v2969_v23 = vmul.f32 %v4870_v18, %v2456_v19  ;;  %v684_v26 = vpop.f32.mrb[48].mxu0 }
 0x17e   : > { %v2971_v24 = vmul.f32 %v4870_v18, %v2458_v20  ;;  %v1133_v27 = vpop.f32.mrb[48].mxu1  ;;  %3480 = vst [vmem:[%s4885_s20 + $0x5c0] sm:$0xff] %v2968_v21  ;;  %v2463_v28 = vsub.f32 %v684_v26, %v4863_v15  ;;  %v686_v30 = vpop.f32.mrb[49].mxu0  ;;  %4062 = vmatmul.mubr.msk.f32.gmra.mrb[154].mxu0 %vm281_vm0, %v4278_v32 }
 0x17f   : > { %3482 = vst [vmem:[%s4885_s20 + $0x5d0] sm:$0xff] %v2970_v22  ;;  %v2465_v29 = vsub.f32 %v1133_v27, %v4863_v15  ;;  %v1135_v31 = vpop.f32.mrb[49].mxu1  ;;  %4126 = vmatmul.mubr.msk.f32.gmra.mrb[154].mxu1 %vm281_vm0, %v4278_v32  ;;  %3481 = vst [vmem:[%s4885_s20 + $0x5c8] sm:$0xff] %v2969_v23  ;;  %v2464_v33 = vsub.f32 %v686_v30, %v4863_v15  ;;  %1520 = vmatprep.mubr.f32.mxu0 %v4446_v7  ;;  %v4282_v22 = vld [vmem:[%s4593_s9 + $0x88] sm:$0xff] }
 0x180   : > { %3483 = vst [vmem:[%s4885_s20 + $0x5d8] sm:$0xff] %v2971_v24  ;;  %v2466_v34 = vsub.f32 %v1135_v31, %v4863_v15  ;;  %1969 = vmatprep.mubr.f32.mxu1 %v4446_v7  ;;  %v2976_v35 = vmul.f32 %v4870_v18, %v2463_v28 }
 0x181   : > { %v2978_v36 = vmul.f32 %v4870_v18, %v2465_v29  ;;  %v2977_v37 = vmul.f32 %v4870_v18, %v2464_v33  ;;  %v690_v39 = vpop.f32.mrb[50].mxu0 }
 0x182   : > { %v2979_v38 = vmul.f32 %v4870_v18, %v2466_v34  ;;  %v1139_v40 = vpop.f32.mrb[50].mxu1  ;;  %3488 = vst [vmem:[%s4885_s20 + $0x600] sm:$0xff] %v2976_v35  ;;  %v2471_v41 = vsub.f32 %v690_v39, %v4863_v15  ;;  %v692_v43 = vpop.f32.mrb[51].mxu0  ;;  %4063 = vmatmul.mubr.msk.f32.gmra.mrb[156].mxu0 %vm281_vm0, %v4279_v45 }
 0x183   : > { %3490 = vst [vmem:[%s4885_s20 + $0x610] sm:$0xff] %v2978_v36  ;;  %v2473_v42 = vsub.f32 %v1139_v40, %v4863_v15  ;;  %v1141_v44 = vpop.f32.mrb[51].mxu1  ;;  %4127 = vmatmul.mubr.msk.f32.gmra.mrb[156].mxu1 %vm281_vm0, %v4279_v45  ;;  %3489 = vst [vmem:[%s4885_s20 + $0x608] sm:$0xff] %v2977_v37  ;;  %v2472_v46 = vsub.f32 %v692_v43, %v4863_v15  ;;  %1526 = vmatprep.mubr.f32.mxu0 %v4446_v7  ;;  %v4283_v36 = vld [vmem:[%s4593_s9 + $0x90] sm:$0xff] }
 0x184   : > { %3491 = vst [vmem:[%s4885_s20 + $0x618] sm:$0xff] %v2979_v38  ;;  %v2474_v47 = vsub.f32 %v1141_v44, %v4863_v15  ;;  %1975 = vmatprep.mubr.f32.mxu1 %v4446_v7  ;;  %v2984_v48 = vmul.f32 %v4870_v18, %v2471_v41 }
 0x185   : > { %v2986_v49 = vmul.f32 %v4870_v18, %v2473_v42  ;;  %v2985_v50 = vmul.f32 %v4870_v18, %v2472_v46  ;;  %v696_v25 = vpop.f32.mrb[52].mxu0 }
 0x186   : > { %v2987_v51 = vmul.f32 %v4870_v18, %v2474_v47  ;;  %v1145_v52 = vpop.f32.mrb[52].mxu1  ;;  %3496 = vst [vmem:[%s4885_s20 + $0x640] sm:$0xff] %v2984_v48  ;;  %v2479_v53 = vsub.f32 %v696_v25, %v4863_v15  ;;  %v698_v55 = vpop.f32.mrb[53].mxu0  ;;  %4064 = vmatmul.mubr.msk.f32.gmra.mrb[158].mxu0 %vm281_vm0, %v4280_v57 }
 0x187   : > { %3498 = vst [vmem:[%s4885_s20 + $0x650] sm:$0xff] %v2986_v49  ;;  %v2481_v54 = vsub.f32 %v1145_v52, %v4863_v15  ;;  %v1147_v56 = vpop.f32.mrb[53].mxu1  ;;  %4128 = vmatmul.mubr.msk.f32.gmra.mrb[158].mxu1 %vm281_vm0, %v4280_v57  ;;  %3497 = vst [vmem:[%s4885_s20 + $0x648] sm:$0xff] %v2985_v50  ;;  %v2480_v58 = vsub.f32 %v698_v55, %v4863_v15  ;;  %1532 = vmatprep.mubr.f32.mxu0 %v4446_v7  ;;  %v4284_v49 = vld [vmem:[%s4593_s9 + $0x98] sm:$0xff] }
 0x188   : > { %3499 = vst [vmem:[%s4885_s20 + $0x658] sm:$0xff] %v2987_v51  ;;  %v2482_v59 = vsub.f32 %v1147_v56, %v4863_v15  ;;  %1981 = vmatprep.mubr.f32.mxu1 %v4446_v7  ;;  %v2992_v60 = vmul.f32 %v4870_v18, %v2479_v53 }
 0x189   : > { %v2994_v61 = vmul.f32 %v4870_v18, %v2481_v54  ;;  %v2993_v62 = vmul.f32 %v4870_v18, %v2480_v58  ;;  %v702_v0 = vpop.f32.mrb[54].mxu0 }
 0x18a   : > { %v2995_v63 = vmul.f32 %v4870_v18, %v2482_v59  ;;  %v1151_v1 = vpop.f32.mrb[54].mxu1  ;;  %3504 = vst [vmem:[%s4885_s20 + $0x680] sm:$0xff] %v2992_v60  ;;  %v2487_v2 = vsub.f32 %v702_v0, %v4863_v15  ;;  %v704_v4 = vpop.f32.mrb[55].mxu0  ;;  %4065 = vmatmul.mubr.msk.f32.gmra.mrb[160].mxu0 %vm281_vm0, %v4281_v6 }
 0x18b   : > { %3506 = vst [vmem:[%s4885_s20 + $0x690] sm:$0xff] %v2994_v61  ;;  %v2489_v3 = vsub.f32 %v1151_v1, %v4863_v15  ;;  %v1153_v5 = vpop.f32.mrb[55].mxu1  ;;  %4129 = vmatmul.mubr.msk.f32.gmra.mrb[160].mxu1 %vm281_vm0, %v4281_v6  ;;  %3505 = vst [vmem:[%s4885_s20 + $0x688] sm:$0xff] %v2993_v62  ;;  %v2488_v8 = vsub.f32 %v704_v4, %v4863_v15  ;;  %1538 = vmatprep.mubr.f32.mxu0 %v4446_v7  ;;  %v4285_v61 = vld [vmem:[%s4593_s9 + $0xa0] sm:$0xff] }
 0x18c   : > { %3507 = vst [vmem:[%s4885_s20 + $0x698] sm:$0xff] %v2995_v63  ;;  %v2490_v9 = vsub.f32 %v1153_v5, %v4863_v15  ;;  %1987 = vmatprep.mubr.f32.mxu1 %v4446_v7  ;;  %v3000_v10 = vmul.f32 %v4870_v18, %v2487_v2 }
 0x18d   : > { %v3002_v11 = vmul.f32 %v4870_v18, %v2489_v3  ;;  %v3001_v12 = vmul.f32 %v4870_v18, %v2488_v8  ;;  %v708_v14 = vpop.f32.mrb[56].mxu0 }
 0x18e   : > { %v3003_v13 = vmul.f32 %v4870_v18, %v2490_v9  ;;  %v1157_v16 = vpop.f32.mrb[56].mxu1  ;;  %3512 = vst [vmem:[%s4885_s20 + $0x6c0] sm:$0xff] %v3000_v10  ;;  %v2495_v17 = vsub.f32 %v708_v14, %v4863_v15  ;;  %v710_v20 = vpop.f32.mrb[57].mxu0  ;;  %4066 = vmatmul.mubr.msk.f32.gmra.mrb[162].mxu0 %vm281_vm0, %v4282_v22 }
 0x18f   : > { %3514 = vst [vmem:[%s4885_s20 + $0x6d0] sm:$0xff] %v3002_v11  ;;  %v2497_v19 = vsub.f32 %v1157_v16, %v4863_v15  ;;  %v1159_v21 = vpop.f32.mrb[57].mxu1  ;;  %4130 = vmatmul.mubr.msk.f32.gmra.mrb[162].mxu1 %vm281_vm0, %v4282_v22  ;;  %3513 = vst [vmem:[%s4885_s20 + $0x6c8] sm:$0xff] %v3001_v12  ;;  %v2496_v23 = vsub.f32 %v710_v20, %v4863_v15  ;;  %1544 = vmatprep.mubr.f32.mxu0 %v4446_v7  ;;  %v4286_v11 = vld [vmem:[%s4593_s9 + $0xa8] sm:$0xff] }
 0x190   : > { %3515 = vst [vmem:[%s4885_s20 + $0x6d8] sm:$0xff] %v3003_v13  ;;  %v2498_v24 = vsub.f32 %v1159_v21, %v4863_v15  ;;  %1993 = vmatprep.mubr.f32.mxu1 %v4446_v7  ;;  %v3008_v26 = vmul.f32 %v4870_v18, %v2495_v17 }
 0x191   : > { %v3010_v27 = vmul.f32 %v4870_v18, %v2497_v19  ;;  %v3009_v28 = vmul.f32 %v4870_v18, %v2496_v23  ;;  %v714_v30 = vpop.f32.mrb[58].mxu0 }
 0x192   : > { %v3011_v29 = vmul.f32 %v4870_v18, %v2498_v24  ;;  %v1163_v31 = vpop.f32.mrb[58].mxu1  ;;  %3520 = vst [vmem:[%s4885_s20 + $0x700] sm:$0xff] %v3008_v26  ;;  %v2503_v32 = vsub.f32 %v714_v30, %v4863_v15  ;;  %v716_v34 = vpop.f32.mrb[59].mxu0  ;;  %4067 = vmatmul.mubr.msk.f32.gmra.mrb[164].mxu0 %vm281_vm0, %v4283_v36 }
 0x193   : > { %3522 = vst [vmem:[%s4885_s20 + $0x710] sm:$0xff] %v3010_v27  ;;  %v2505_v33 = vsub.f32 %v1163_v31, %v4863_v15  ;;  %v1165_v35 = vpop.f32.mrb[59].mxu1  ;;  %4131 = vmatmul.mubr.msk.f32.gmra.mrb[164].mxu1 %vm281_vm0, %v4283_v36  ;;  %3521 = vst [vmem:[%s4885_s20 + $0x708] sm:$0xff] %v3009_v28  ;;  %v2504_v37 = vsub.f32 %v716_v34, %v4863_v15  ;;  %1550 = vmatprep.mubr.f32.mxu0 %v4446_v7  ;;  %v4287_v27 = vld [vmem:[%s4593_s9 + $0xb0] sm:$0xff] }
 0x194   : > { %3523 = vst [vmem:[%s4885_s20 + $0x718] sm:$0xff] %v3011_v29  ;;  %v2506_v38 = vsub.f32 %v1165_v35, %v4863_v15  ;;  %1999 = vmatprep.mubr.f32.mxu1 %v4446_v7  ;;  %v3016_v39 = vmul.f32 %v4870_v18, %v2503_v32 }
 0x195   : > { %v3018_v40 = vmul.f32 %v4870_v18, %v2505_v33  ;;  %v3017_v41 = vmul.f32 %v4870_v18, %v2504_v37  ;;  %v720_v43 = vpop.f32.mrb[60].mxu0 }
 0x196   : > { %v3019_v42 = vmul.f32 %v4870_v18, %v2506_v38  ;;  %v1169_v44 = vpop.f32.mrb[60].mxu1  ;;  %3528 = vst [vmem:[%s4885_s20 + $0x740] sm:$0xff] %v3016_v39  ;;  %v2511_v45 = vsub.f32 %v720_v43, %v4863_v15  ;;  %v722_v47 = vpop.f32.mrb[61].mxu0  ;;  %4068 = vmatmul.mubr.msk.f32.gmra.mrb[166].mxu0 %vm281_vm0, %v4284_v49 }
 0x197   : > { %3530 = vst [vmem:[%s4885_s20 + $0x750] sm:$0xff] %v3018_v40  ;;  %v2513_v46 = vsub.f32 %v1169_v44, %v4863_v15  ;;  %v1171_v48 = vpop.f32.mrb[61].mxu1  ;;  %4132 = vmatmul.mubr.msk.f32.gmra.mrb[166].mxu1 %vm281_vm0, %v4284_v49  ;;  %3529 = vst [vmem:[%s4885_s20 + $0x748] sm:$0xff] %v3017_v41  ;;  %v2512_v50 = vsub.f32 %v722_v47, %v4863_v15  ;;  %1556 = vmatprep.mubr.f32.mxu0 %v4446_v7  ;;  %v4288_v40 = vld [vmem:[%s4593_s9 + $0xb8] sm:$0xff] }
 0x198   : > { %3531 = vst [vmem:[%s4885_s20 + $0x758] sm:$0xff] %v3019_v42  ;;  %v2514_v51 = vsub.f32 %v1171_v48, %v4863_v15  ;;  %2005 = vmatprep.mubr.f32.mxu1 %v4446_v7  ;;  %v3024_v25 = vmul.f32 %v4870_v18, %v2511_v45 }
 0x199   : > { %v3026_v52 = vmul.f32 %v4870_v18, %v2513_v46  ;;  %v3025_v53 = vmul.f32 %v4870_v18, %v2512_v50  ;;  %v726_v55 = vpop.f32.mrb[62].mxu0 }
 0x19a   : > { %v3027_v54 = vmul.f32 %v4870_v18, %v2514_v51  ;;  %v1175_v56 = vpop.f32.mrb[62].mxu1  ;;  %3536 = vst [vmem:[%s4885_s20 + $0x780] sm:$0xff] %v3024_v25  ;;  %v2519_v57 = vsub.f32 %v726_v55, %v4863_v15  ;;  %v728_v59 = vpop.f32.mrb[63].mxu0  ;;  %4069 = vmatmul.mubr.msk.f32.gmra.mrb[168].mxu0 %vm281_vm0, %v4285_v61 }
 0x19b   : > { %3538 = vst [vmem:[%s4885_s20 + $0x790] sm:$0xff] %v3026_v52  ;;  %v2521_v58 = vsub.f32 %v1175_v56, %v4863_v15  ;;  %v1177_v60 = vpop.f32.mrb[63].mxu1  ;;  %4133 = vmatmul.mubr.msk.f32.gmra.mrb[168].mxu1 %vm281_vm0, %v4285_v61  ;;  %3537 = vst [vmem:[%s4885_s20 + $0x788] sm:$0xff] %v3025_v53  ;;  %v2520_v62 = vsub.f32 %v728_v59, %v4863_v15  ;;  %1562 = vmatprep.mubr.f32.mxu0 %v4446_v7  ;;  %v4289_v52 = vld [vmem:[%s4593_s9 + $0xc0] sm:$0xff] }
 0x19c   : > { %3539 = vst [vmem:[%s4885_s20 + $0x798] sm:$0xff] %v3027_v54  ;;  %v2522_v63 = vsub.f32 %v1177_v60, %v4863_v15  ;;  %2011 = vmatprep.mubr.f32.mxu1 %v4446_v7  ;;  %v3032_v0 = vmul.f32 %v4870_v18, %v2519_v57 }
 0x19d   : > { %v3034_v1 = vmul.f32 %v4870_v18, %v2521_v58  ;;  %v3033_v2 = vmul.f32 %v4870_v18, %v2520_v62  ;;  %v732_v4 = vpop.f32.mrb[64].mxu0 }
 0x19e   : > { %v3035_v3 = vmul.f32 %v4870_v18, %v2522_v63  ;;  %v1181_v5 = vpop.f32.mrb[64].mxu1  ;;  %3544 = vst [vmem:[%s4885_s20 + $0x7c0] sm:$0xff] %v3032_v0  ;;  %v2527_v6 = vsub.f32 %v732_v4, %v4863_v15  ;;  %v734_v9 = vpop.f32.mrb[65].mxu0  ;;  %4070 = vmatmul.mubr.msk.f32.gmra.mrb[170].mxu0 %vm281_vm0, %v4286_v11 }
 0x19f   : > { %3546 = vst [vmem:[%s4885_s20 + $0x7d0] sm:$0xff] %v3034_v1  ;;  %v2529_v8 = vsub.f32 %v1181_v5, %v4863_v15  ;;  %v1183_v10 = vpop.f32.mrb[65].mxu1  ;;  %4134 = vmatmul.mubr.msk.f32.gmra.mrb[170].mxu1 %vm281_vm0, %v4286_v11  ;;  %3545 = vst [vmem:[%s4885_s20 + $0x7c8] sm:$0xff] %v3033_v2  ;;  %v2528_v12 = vsub.f32 %v734_v9, %v4863_v15  ;;  %1568 = vmatprep.mubr.f32.mxu0 %v4446_v7  ;;  %v4290_v1 = vld [vmem:[%s4593_s9 + $0xc8] sm:$0xff] }
 0x1a0   : > { %3547 = vst [vmem:[%s4885_s20 + $0x7d8] sm:$0xff] %v3035_v3  ;;  %v2530_v13 = vsub.f32 %v1183_v10, %v4863_v15  ;;  %2017 = vmatprep.mubr.f32.mxu1 %v4446_v7  ;;  %v3040_v14 = vmul.f32 %v4870_v18, %v2527_v6 }
 0x1a1   : > { %v3042_v16 = vmul.f32 %v4870_v18, %v2529_v8  ;;  %v3041_v17 = vmul.f32 %v4870_v18, %v2528_v12  ;;  %v738_v20 = vpop.f32.mrb[66].mxu0 }
 0x1a2   : > { %v3043_v19 = vmul.f32 %v4870_v18, %v2530_v13  ;;  %v1187_v21 = vpop.f32.mrb[66].mxu1  ;;  %3552 = vst [vmem:[%s4885_s20 + $0x800] sm:$0xff] %v3040_v14  ;;  %v2535_v22 = vsub.f32 %v738_v20, %v4863_v15  ;;  %v740_v24 = vpop.f32.mrb[67].mxu0  ;;  %4071 = vmatmul.mubr.msk.f32.gmra.mrb[172].mxu0 %vm281_vm0, %v4287_v27 }
 0x1a3   : > { %3554 = vst [vmem:[%s4885_s20 + $0x810] sm:$0xff] %v3042_v16  ;;  %v2537_v23 = vsub.f32 %v1187_v21, %v4863_v15  ;;  %v1189_v26 = vpop.f32.mrb[67].mxu1  ;;  %4135 = vmatmul.mubr.msk.f32.gmra.mrb[172].mxu1 %vm281_vm0, %v4287_v27  ;;  %3553 = vst [vmem:[%s4885_s20 + $0x808] sm:$0xff] %v3041_v17  ;;  %v2536_v28 = vsub.f32 %v740_v24, %v4863_v15  ;;  %1574 = vmatprep.mubr.f32.mxu0 %v4446_v7  ;;  %v4291_v16 = vld [vmem:[%s4593_s9 + $0xd0] sm:$0xff] }
 0x1a4   : > { %3555 = vst [vmem:[%s4885_s20 + $0x818] sm:$0xff] %v3043_v19  ;;  %v2538_v29 = vsub.f32 %v1189_v26, %v4863_v15  ;;  %2023 = vmatprep.mubr.f32.mxu1 %v4446_v7  ;;  %v3048_v30 = vmul.f32 %v4870_v18, %v2535_v22 }
 0x1a5   : > { %v3050_v31 = vmul.f32 %v4870_v18, %v2537_v23  ;;  %v3049_v32 = vmul.f32 %v4870_v18, %v2536_v28  ;;  %v744_v34 = vpop.f32.mrb[68].mxu0 }
 0x1a6   : > { %v3051_v33 = vmul.f32 %v4870_v18, %v2538_v29  ;;  %v1193_v35 = vpop.f32.mrb[68].mxu1  ;;  %3560 = vst [vmem:[%s4885_s20 + $0x840] sm:$0xff] %v3048_v30  ;;  %v2543_v36 = vsub.f32 %v744_v34, %v4863_v15  ;;  %v746_v38 = vpop.f32.mrb[69].mxu0  ;;  %4072 = vmatmul.mubr.msk.f32.gmra.mrb[174].mxu0 %vm281_vm0, %v4288_v40 }
 0x1a7   : > { %3562 = vst [vmem:[%s4885_s20 + $0x850] sm:$0xff] %v3050_v31  ;;  %v2545_v37 = vsub.f32 %v1193_v35, %v4863_v15  ;;  %v1195_v39 = vpop.f32.mrb[69].mxu1  ;;  %4136 = vmatmul.mubr.msk.f32.gmra.mrb[174].mxu1 %vm281_vm0, %v4288_v40  ;;  %3561 = vst [vmem:[%s4885_s20 + $0x848] sm:$0xff] %v3049_v32  ;;  %v2544_v41 = vsub.f32 %v746_v38, %v4863_v15  ;;  %1580 = vmatprep.mubr.f32.mxu0 %v4446_v7  ;;  %v4292_v31 = vld [vmem:[%s4593_s9 + $0xd8] sm:$0xff] }
 0x1a8   : > { %3563 = vst [vmem:[%s4885_s20 + $0x858] sm:$0xff] %v3051_v33  ;;  %v2546_v42 = vsub.f32 %v1195_v39, %v4863_v15  ;;  %2029 = vmatprep.mubr.f32.mxu1 %v4446_v7  ;;  %v3056_v43 = vmul.f32 %v4870_v18, %v2543_v36 }
 0x1a9   : > { %v3058_v44 = vmul.f32 %v4870_v18, %v2545_v37  ;;  %v3057_v45 = vmul.f32 %v4870_v18, %v2544_v41  ;;  %v750_v47 = vpop.f32.mrb[70].mxu0 }
 0x1aa   : > { %v3059_v46 = vmul.f32 %v4870_v18, %v2546_v42  ;;  %v1199_v48 = vpop.f32.mrb[70].mxu1  ;;  %3568 = vst [vmem:[%s4885_s20 + $0x880] sm:$0xff] %v3056_v43  ;;  %v2551_v49 = vsub.f32 %v750_v47, %v4863_v15  ;;  %v752_v51 = vpop.f32.mrb[71].mxu0  ;;  %4073 = vmatmul.mubr.msk.f32.gmra.mrb[176].mxu0 %vm281_vm0, %v4289_v52 }
 0x1ab   : > { %3570 = vst [vmem:[%s4885_s20 + $0x890] sm:$0xff] %v3058_v44  ;;  %v2553_v50 = vsub.f32 %v1199_v48, %v4863_v15  ;;  %v1201_v25 = vpop.f32.mrb[71].mxu1  ;;  %4137 = vmatmul.mubr.msk.f32.gmra.mrb[176].mxu1 %vm281_vm0, %v4289_v52  ;;  %3569 = vst [vmem:[%s4885_s20 + $0x888] sm:$0xff] %v3057_v45  ;;  %v2552_v53 = vsub.f32 %v752_v51, %v4863_v15  ;;  %1586 = vmatprep.mubr.f32.mxu0 %v4446_v7  ;;  %v4293_v44 = vld [vmem:[%s4593_s9 + $0xe0] sm:$0xff] }
 0x1ac   : > { %3571 = vst [vmem:[%s4885_s20 + $0x898] sm:$0xff] %v3059_v46  ;;  %v2554_v54 = vsub.f32 %v1201_v25, %v4863_v15  ;;  %2035 = vmatprep.mubr.f32.mxu1 %v4446_v7  ;;  %v3064_v55 = vmul.f32 %v4870_v18, %v2551_v49 }
 0x1ad   : > { %v3066_v56 = vmul.f32 %v4870_v18, %v2553_v50  ;;  %v3065_v57 = vmul.f32 %v4870_v18, %v2552_v53  ;;  %v756_v59 = vpop.f32.mrb[72].mxu0 }
 0x1ae   : > { %v3067_v58 = vmul.f32 %v4870_v18, %v2554_v54  ;;  %v1205_v60 = vpop.f32.mrb[72].mxu1  ;;  %3576 = vst [vmem:[%s4885_s20 + $0x8c0] sm:$0xff] %v3064_v55  ;;  %v2559_v61 = vsub.f32 %v756_v59, %v4863_v15  ;;  %v758_v63 = vpop.f32.mrb[73].mxu0  ;;  %4074 = vmatmul.mubr.msk.f32.gmra.mrb[178].mxu0 %vm281_vm0, %v4290_v1 }
 0x1af   : > { %3578 = vst [vmem:[%s4885_s20 + $0x8d0] sm:$0xff] %v3066_v56  ;;  %v2561_v62 = vsub.f32 %v1205_v60, %v4863_v15  ;;  %v1207_v0 = vpop.f32.mrb[73].mxu1  ;;  %4138 = vmatmul.mubr.msk.f32.gmra.mrb[178].mxu1 %vm281_vm0, %v4290_v1  ;;  %3577 = vst [vmem:[%s4885_s20 + $0x8c8] sm:$0xff] %v3065_v57  ;;  %v2560_v2 = vsub.f32 %v758_v63, %v4863_v15  ;;  %1592 = vmatprep.mubr.f32.mxu0 %v4446_v7  ;;  %v4294_v56 = vld [vmem:[%s4593_s9 + $0xe8] sm:$0xff] }
 0x1b0   : > { %3579 = vst [vmem:[%s4885_s20 + $0x8d8] sm:$0xff] %v3067_v58  ;;  %v2562_v3 = vsub.f32 %v1207_v0, %v4863_v15  ;;  %2041 = vmatprep.mubr.f32.mxu1 %v4446_v7  ;;  %v3072_v4 = vmul.f32 %v4870_v18, %v2559_v61 }
 0x1b1   : > { %v3074_v5 = vmul.f32 %v4870_v18, %v2561_v62  ;;  %v3073_v6 = vmul.f32 %v4870_v18, %v2560_v2  ;;  %v762_v9 = vpop.f32.mrb[74].mxu0 }
 0x1b2   : > { %v3075_v8 = vmul.f32 %v4870_v18, %v2562_v3  ;;  %v1211_v10 = vpop.f32.mrb[74].mxu1  ;;  %3584 = vst [vmem:[%s4885_s20 + $0x900] sm:$0xff] %v3072_v4  ;;  %v2567_v11 = vsub.f32 %v762_v9, %v4863_v15  ;;  %v764_v13 = vpop.f32.mrb[75].mxu0  ;;  %4075 = vmatmul.mubr.msk.f32.gmra.mrb[180].mxu0 %vm281_vm0, %v4291_v16 }
 0x1b3   : > { %3586 = vst [vmem:[%s4885_s20 + $0x910] sm:$0xff] %v3074_v5  ;;  %v2569_v12 = vsub.f32 %v1211_v10, %v4863_v15  ;;  %v1213_v14 = vpop.f32.mrb[75].mxu1  ;;  %4139 = vmatmul.mubr.msk.f32.gmra.mrb[180].mxu1 %vm281_vm0, %v4291_v16  ;;  %3585 = vst [vmem:[%s4885_s20 + $0x908] sm:$0xff] %v3073_v6  ;;  %v2568_v17 = vsub.f32 %v764_v13, %v4863_v15  ;;  %1598 = vmatprep.mubr.f32.mxu0 %v4446_v7  ;;  %v4295_v5 = vld [vmem:[%s4593_s9 + $0xf0] sm:$0xff] }
 0x1b4   : > { %3587 = vst [vmem:[%s4885_s20 + $0x918] sm:$0xff] %v3075_v8  ;;  %v2570_v19 = vsub.f32 %v1213_v14, %v4863_v15  ;;  %2047 = vmatprep.mubr.f32.mxu1 %v4446_v7  ;;  %v3080_v20 = vmul.f32 %v4870_v18, %v2567_v11 }
 0x1b5   : > { %v3082_v21 = vmul.f32 %v4870_v18, %v2569_v12  ;;  %v3081_v22 = vmul.f32 %v4870_v18, %v2568_v17  ;;  %v768_v24 = vpop.f32.mrb[76].mxu0 }
 0x1b6   : > { %v3083_v23 = vmul.f32 %v4870_v18, %v2570_v19  ;;  %v1217_v26 = vpop.f32.mrb[76].mxu1  ;;  %3592 = vst [vmem:[%s4885_s20 + $0x940] sm:$0xff] %v3080_v20  ;;  %v2575_v27 = vsub.f32 %v768_v24, %v4863_v15  ;;  %v770_v29 = vpop.f32.mrb[77].mxu0  ;;  %4076 = vmatmul.mubr.msk.f32.gmra.mrb[182].mxu0 %vm281_vm0, %v4292_v31 }
 0x1b7   : > { %3594 = vst [vmem:[%s4885_s20 + $0x950] sm:$0xff] %v3082_v21  ;;  %v2577_v28 = vsub.f32 %v1217_v26, %v4863_v15  ;;  %v1219_v30 = vpop.f32.mrb[77].mxu1  ;;  %4140 = vmatmul.mubr.msk.f32.gmra.mrb[182].mxu1 %vm281_vm0, %v4292_v31  ;;  %3593 = vst [vmem:[%s4885_s20 + $0x948] sm:$0xff] %v3081_v22  ;;  %v2576_v32 = vsub.f32 %v770_v29, %v4863_v15  ;;  %1604 = vmatprep.mubr.f32.mxu0 %v4446_v7  ;;  %v4296_v21 = vld [vmem:[%s4593_s9 + $0xf8] sm:$0xff] }
 0x1b8   : > { %3595 = vst [vmem:[%s4885_s20 + $0x958] sm:$0xff] %v3083_v23  ;;  %v2578_v33 = vsub.f32 %v1219_v30, %v4863_v15  ;;  %2053 = vmatprep.mubr.f32.mxu1 %v4446_v7  ;;  %v3088_v34 = vmul.f32 %v4870_v18, %v2575_v27 }
 0x1b9   : > { %v3090_v35 = vmul.f32 %v4870_v18, %v2577_v28  ;;  %v3089_v36 = vmul.f32 %v4870_v18, %v2576_v32  ;;  %v774_v38 = vpop.f32.mrb[78].mxu0 }
 0x1ba   : > { %v3091_v37 = vmul.f32 %v4870_v18, %v2578_v33  ;;  %v1223_v39 = vpop.f32.mrb[78].mxu1  ;;  %3600 = vst [vmem:[%s4885_s20 + $0x980] sm:$0xff] %v3088_v34  ;;  %v2583_v40 = vsub.f32 %v774_v38, %v4863_v15  ;;  %v776_v42 = vpop.f32.mrb[79].mxu0  ;;  %4077 = vmatmul.mubr.msk.f32.gmra.mrb[184].mxu0 %vm281_vm0, %v4293_v44 }
 0x1bb   : > { %3602 = vst [vmem:[%s4885_s20 + $0x990] sm:$0xff] %v3090_v35  ;;  %v2585_v41 = vsub.f32 %v1223_v39, %v4863_v15  ;;  %v1225_v43 = vpop.f32.mrb[79].mxu1  ;;  %4141 = vmatmul.mubr.msk.f32.gmra.mrb[184].mxu1 %vm281_vm0, %v4293_v44  ;;  %3601 = vst [vmem:[%s4885_s20 + $0x988] sm:$0xff] %v3089_v36  ;;  %v2584_v45 = vsub.f32 %v776_v42, %v4863_v15  ;;  %1610 = vmatprep.mubr.f32.mxu0 %v4446_v7  ;;  %v4297_v35 = vld [vmem:[%s4593_s9 + $0x100] sm:$0xff] }
 0x1bc   : > { %3603 = vst [vmem:[%s4885_s20 + $0x998] sm:$0xff] %v3091_v37  ;;  %v2586_v46 = vsub.f32 %v1225_v43, %v4863_v15  ;;  %2059 = vmatprep.mubr.f32.mxu1 %v4446_v7  ;;  %v3096_v47 = vmul.f32 %v4870_v18, %v2583_v40 }
 0x1bd   : > { %v3098_v48 = vmul.f32 %v4870_v18, %v2585_v41  ;;  %v3097_v49 = vmul.f32 %v4870_v18, %v2584_v45  ;;  %v780_v51 = vpop.f32.mrb[80].mxu0 }
 0x1be   : > { %v3099_v50 = vmul.f32 %v4870_v18, %v2586_v46  ;;  %v1229_v25 = vpop.f32.mrb[80].mxu1  ;;  %3608 = vst [vmem:[%s4885_s20 + $0x9c0] sm:$0xff] %v3096_v47  ;;  %v2591_v52 = vsub.f32 %v780_v51, %v4863_v15  ;;  %v782_v54 = vpop.f32.mrb[81].mxu0  ;;  %4078 = vmatmul.mubr.msk.f32.gmra.mrb[186].mxu0 %vm281_vm0, %v4294_v56 }
 0x1bf   : > { %3610 = vst [vmem:[%s4885_s20 + $0x9d0] sm:$0xff] %v3098_v48  ;;  %v2593_v53 = vsub.f32 %v1229_v25, %v4863_v15  ;;  %v1231_v55 = vpop.f32.mrb[81].mxu1  ;;  %4142 = vmatmul.mubr.msk.f32.gmra.mrb[186].mxu1 %vm281_vm0, %v4294_v56  ;;  %3609 = vst [vmem:[%s4885_s20 + $0x9c8] sm:$0xff] %v3097_v49  ;;  %v2592_v57 = vsub.f32 %v782_v54, %v4863_v15  ;;  %1616 = vmatprep.mubr.f32.mxu0 %v4446_v7  ;;  %v4298_v48 = vld [vmem:[%s4593_s9 + $0x108] sm:$0xff] }
 0x1c0   : > { %3611 = vst [vmem:[%s4885_s20 + $0x9d8] sm:$0xff] %v3099_v50  ;;  %v2594_v58 = vsub.f32 %v1231_v55, %v4863_v15  ;;  %2065 = vmatprep.mubr.f32.mxu1 %v4446_v7  ;;  %v3104_v59 = vmul.f32 %v4870_v18, %v2591_v52 }
 0x1c1   : > { %v3106_v60 = vmul.f32 %v4870_v18, %v2593_v53  ;;  %v3105_v61 = vmul.f32 %v4870_v18, %v2592_v57  ;;  %v786_v63 = vpop.f32.mrb[82].mxu0 }
 0x1c2   : > { %v3107_v62 = vmul.f32 %v4870_v18, %v2594_v58  ;;  %v1235_v0 = vpop.f32.mrb[82].mxu1  ;;  %3616 = vst [vmem:[%s4885_s20 + $0xa00] sm:$0xff] %v3104_v59  ;;  %v2599_v1 = vsub.f32 %v786_v63, %v4863_v15  ;;  %v788_v3 = vpop.f32.mrb[83].mxu0  ;;  %4079 = vmatmul.mubr.msk.f32.gmra.mrb[188].mxu0 %vm281_vm0, %v4295_v5 }
 0x1c3   : > { %3618 = vst [vmem:[%s4885_s20 + $0xa10] sm:$0xff] %v3106_v60  ;;  %v2601_v2 = vsub.f32 %v1235_v0, %v4863_v15  ;;  %v1237_v4 = vpop.f32.mrb[83].mxu1  ;;  %4143 = vmatmul.mubr.msk.f32.gmra.mrb[188].mxu1 %vm281_vm0, %v4295_v5  ;;  %3617 = vst [vmem:[%s4885_s20 + $0xa08] sm:$0xff] %v3105_v61  ;;  %v2600_v6 = vsub.f32 %v788_v3, %v4863_v15  ;;  %1622 = vmatprep.mubr.f32.mxu0 %v4446_v7  ;;  %v4299_v60 = vld [vmem:[%s4593_s9 + $0x110] sm:$0xff] }
 0x1c4   : > { %3619 = vst [vmem:[%s4885_s20 + $0xa18] sm:$0xff] %v3107_v62  ;;  %v2602_v8 = vsub.f32 %v1237_v4, %v4863_v15  ;;  %2071 = vmatprep.mubr.f32.mxu1 %v4446_v7  ;;  %v3112_v9 = vmul.f32 %v4870_v18, %v2599_v1 }
 0x1c5   : > { %v3114_v10 = vmul.f32 %v4870_v18, %v2601_v2  ;;  %v3113_v11 = vmul.f32 %v4870_v18, %v2600_v6  ;;  %v792_v13 = vpop.f32.mrb[84].mxu0 }
 0x1c6   : > { %v3115_v12 = vmul.f32 %v4870_v18, %v2602_v8  ;;  %v1241_v14 = vpop.f32.mrb[84].mxu1  ;;  %3624 = vst [vmem:[%s4885_s20 + $0xa40] sm:$0xff] %v3112_v9  ;;  %v2607_v16 = vsub.f32 %v792_v13, %v4863_v15  ;;  %v794_v19 = vpop.f32.mrb[85].mxu0  ;;  %4080 = vmatmul.mubr.msk.f32.gmra.mrb[190].mxu0 %vm281_vm0, %v4296_v21 }
 0x1c7   : > { %3626 = vst [vmem:[%s4885_s20 + $0xa50] sm:$0xff] %v3114_v10  ;;  %v2609_v17 = vsub.f32 %v1241_v14, %v4863_v15  ;;  %v1243_v20 = vpop.f32.mrb[85].mxu1  ;;  %4144 = vmatmul.mubr.msk.f32.gmra.mrb[190].mxu1 %vm281_vm0, %v4296_v21  ;;  %3625 = vst [vmem:[%s4885_s20 + $0xa48] sm:$0xff] %v3113_v11  ;;  %v2608_v22 = vsub.f32 %v794_v19, %v4863_v15  ;;  %1628 = vmatprep.mubr.f32.mxu0 %v4446_v7  ;;  %v4300_v10 = vld [vmem:[%s4593_s9 + $0x118] sm:$0xff] }
 0x1c8   : > { %3627 = vst [vmem:[%s4885_s20 + $0xa58] sm:$0xff] %v3115_v12  ;;  %v2610_v23 = vsub.f32 %v1243_v20, %v4863_v15  ;;  %2077 = vmatprep.mubr.f32.mxu1 %v4446_v7  ;;  %v3120_v24 = vmul.f32 %v4870_v18, %v2607_v16 }
 0x1c9   : > { %v3122_v26 = vmul.f32 %v4870_v18, %v2609_v17  ;;  %v3121_v27 = vmul.f32 %v4870_v18, %v2608_v22  ;;  %v798_v29 = vpop.f32.mrb[86].mxu0 }
 0x1ca   : > { %v3123_v28 = vmul.f32 %v4870_v18, %v2610_v23  ;;  %v1247_v30 = vpop.f32.mrb[86].mxu1  ;;  %3632 = vst [vmem:[%s4885_s20 + $0xa80] sm:$0xff] %v3120_v24  ;;  %v2615_v31 = vsub.f32 %v798_v29, %v4863_v15  ;;  %v800_v33 = vpop.f32.mrb[87].mxu0  ;;  %4081 = vmatmul.mubr.msk.f32.gmra.mrb[192].mxu0 %vm281_vm0, %v4297_v35 }
 0x1cb   : > { %3634 = vst [vmem:[%s4885_s20 + $0xa90] sm:$0xff] %v3122_v26  ;;  %v2617_v32 = vsub.f32 %v1247_v30, %v4863_v15  ;;  %v1249_v34 = vpop.f32.mrb[87].mxu1  ;;  %4145 = vmatmul.mubr.msk.f32.gmra.mrb[192].mxu1 %vm281_vm0, %v4297_v35  ;;  %3633 = vst [vmem:[%s4885_s20 + $0xa88] sm:$0xff] %v3121_v27  ;;  %v2616_v36 = vsub.f32 %v800_v33, %v4863_v15  ;;  %1634 = vmatprep.mubr.f32.mxu0 %v4446_v7  ;;  %v4301_v26 = vld [vmem:[%s4593_s9 + $0x120] sm:$0xff] }
 0x1cc   : > { %3635 = vst [vmem:[%s4885_s20 + $0xa98] sm:$0xff] %v3123_v28  ;;  %v2618_v37 = vsub.f32 %v1249_v34, %v4863_v15  ;;  %2083 = vmatprep.mubr.f32.mxu1 %v4446_v7  ;;  %v3128_v38 = vmul.f32 %v4870_v18, %v2615_v31 }
 0x1cd   : > { %v3130_v39 = vmul.f32 %v4870_v18, %v2617_v32  ;;  %v3129_v40 = vmul.f32 %v4870_v18, %v2616_v36  ;;  %v804_v42 = vpop.f32.mrb[88].mxu0 }
 0x1ce   : > { %v3131_v41 = vmul.f32 %v4870_v18, %v2618_v37  ;;  %v1253_v43 = vpop.f32.mrb[88].mxu1  ;;  %3640 = vst [vmem:[%s4885_s20 + $0xac0] sm:$0xff] %v3128_v38  ;;  %v2623_v44 = vsub.f32 %v804_v42, %v4863_v15  ;;  %v806_v46 = vpop.f32.mrb[89].mxu0  ;;  %4082 = vmatmul.mubr.msk.f32.gmra.mrb[194].mxu0 %vm281_vm0, %v4298_v48 }
 0x1cf   : > { %3642 = vst [vmem:[%s4885_s20 + $0xad0] sm:$0xff] %v3130_v39  ;;  %v2625_v45 = vsub.f32 %v1253_v43, %v4863_v15  ;;  %v1255_v47 = vpop.f32.mrb[89].mxu1  ;;  %4146 = vmatmul.mubr.msk.f32.gmra.mrb[194].mxu1 %vm281_vm0, %v4298_v48  ;;  %3641 = vst [vmem:[%s4885_s20 + $0xac8] sm:$0xff] %v3129_v40  ;;  %v2624_v49 = vsub.f32 %v806_v46, %v4863_v15  ;;  %1640 = vmatprep.mubr.f32.mxu0 %v4446_v7  ;;  %v4302_v39 = vld [vmem:[%s4593_s9 + $0x128] sm:$0xff] }
 0x1d0   : > { %3643 = vst [vmem:[%s4885_s20 + $0xad8] sm:$0xff] %v3131_v41  ;;  %v2626_v50 = vsub.f32 %v1255_v47, %v4863_v15  ;;  %2089 = vmatprep.mubr.f32.mxu1 %v4446_v7  ;;  %v3136_v51 = vmul.f32 %v4870_v18, %v2623_v44 }
 0x1d1   : > { %v3138_v25 = vmul.f32 %v4870_v18, %v2625_v45  ;;  %v3137_v52 = vmul.f32 %v4870_v18, %v2624_v49  ;;  %v810_v54 = vpop.f32.mrb[90].mxu0 }
 0x1d2   : > { %v3139_v53 = vmul.f32 %v4870_v18, %v2626_v50  ;;  %v1259_v55 = vpop.f32.mrb[90].mxu1  ;;  %3648 = vst [vmem:[%s4885_s20 + $0xb00] sm:$0xff] %v3136_v51  ;;  %v2631_v56 = vsub.f32 %v810_v54, %v4863_v15  ;;  %v812_v58 = vpop.f32.mrb[91].mxu0  ;;  %4083 = vmatmul.mubr.msk.f32.gmra.mrb[196].mxu0 %vm281_vm0, %v4299_v60 }
 0x1d3   : > { %3650 = vst [vmem:[%s4885_s20 + $0xb10] sm:$0xff] %v3138_v25  ;;  %v2633_v57 = vsub.f32 %v1259_v55, %v4863_v15  ;;  %v1261_v59 = vpop.f32.mrb[91].mxu1  ;;  %4147 = vmatmul.mubr.msk.f32.gmra.mrb[196].mxu1 %vm281_vm0, %v4299_v60  ;;  %3649 = vst [vmem:[%s4885_s20 + $0xb08] sm:$0xff] %v3137_v52  ;;  %v2632_v61 = vsub.f32 %v812_v58, %v4863_v15  ;;  %1646 = vmatprep.mubr.f32.mxu0 %v4446_v7  ;;  %v4303_v25 = vld [vmem:[%s4593_s9 + $0x130] sm:$0xff] }
 0x1d4   : > { %3651 = vst [vmem:[%s4885_s20 + $0xb18] sm:$0xff] %v3139_v53  ;;  %v2634_v62 = vsub.f32 %v1261_v59, %v4863_v15  ;;  %2095 = vmatprep.mubr.f32.mxu1 %v4446_v7  ;;  %v3144_v63 = vmul.f32 %v4870_v18, %v2631_v56 }
 0x1d5   : > { %v3146_v0 = vmul.f32 %v4870_v18, %v2633_v57  ;;  %v3145_v1 = vmul.f32 %v4870_v18, %v2632_v61  ;;  %v816_v3 = vpop.f32.mrb[92].mxu0 }
 0x1d6   : > { %v3147_v2 = vmul.f32 %v4870_v18, %v2634_v62  ;;  %v1265_v4 = vpop.f32.mrb[92].mxu1  ;;  %3656 = vst [vmem:[%s4885_s20 + $0xb40] sm:$0xff] %v3144_v63  ;;  %v2639_v5 = vsub.f32 %v816_v3, %v4863_v15  ;;  %v818_v8 = vpop.f32.mrb[93].mxu0  ;;  %4084 = vmatmul.mubr.msk.f32.gmra.mrb[198].mxu0 %vm281_vm0, %v4300_v10 }
 0x1d7   : > { %3658 = vst [vmem:[%s4885_s20 + $0xb50] sm:$0xff] %v3146_v0  ;;  %v2641_v6 = vsub.f32 %v1265_v4, %v4863_v15  ;;  %v1267_v9 = vpop.f32.mrb[93].mxu1  ;;  %4148 = vmatmul.mubr.msk.f32.gmra.mrb[198].mxu1 %vm281_vm0, %v4300_v10  ;;  %3657 = vst [vmem:[%s4885_s20 + $0xb48] sm:$0xff] %v3145_v1  ;;  %v2640_v11 = vsub.f32 %v818_v8, %v4863_v15  ;;  %1652 = vmatprep.mubr.f32.mxu0 %v4446_v7  ;;  %v4304_v0 = vld [vmem:[%s4593_s9 + $0x138] sm:$0xff] }
 0x1d8   : > { %3659 = vst [vmem:[%s4885_s20 + $0xb58] sm:$0xff] %v3147_v2  ;;  %v2642_v12 = vsub.f32 %v1267_v9, %v4863_v15  ;;  %2101 = vmatprep.mubr.f32.mxu1 %v4446_v7  ;;  %v3152_v13 = vmul.f32 %v4870_v18, %v2639_v5 }
 0x1d9   : > { %v3154_v14 = vmul.f32 %v4870_v18, %v2641_v6  ;;  %v3153_v16 = vmul.f32 %v4870_v18, %v2640_v11  ;;  %v822_v19 = vpop.f32.mrb[94].mxu0 }
 0x1da   : > { %v3155_v17 = vmul.f32 %v4870_v18, %v2642_v12  ;;  %v1271_v20 = vpop.f32.mrb[94].mxu1  ;;  %3664 = vst [vmem:[%s4885_s20 + $0xb80] sm:$0xff] %v3152_v13  ;;  %v2647_v21 = vsub.f32 %v822_v19, %v4863_v15  ;;  %v824_v23 = vpop.f32.mrb[95].mxu0  ;;  %4085 = vmatmul.mubr.msk.f32.gmra.mrb[200].mxu0 %vm281_vm0, %v4301_v26 }
 0x1db   : > { %3666 = vst [vmem:[%s4885_s20 + $0xb90] sm:$0xff] %v3154_v14  ;;  %v2649_v22 = vsub.f32 %v1271_v20, %v4863_v15  ;;  %v1273_v24 = vpop.f32.mrb[95].mxu1  ;;  %4149 = vmatmul.mubr.msk.f32.gmra.mrb[200].mxu1 %vm281_vm0, %v4301_v26  ;;  %3665 = vst [vmem:[%s4885_s20 + $0xb88] sm:$0xff] %v3153_v16  ;;  %v2648_v27 = vsub.f32 %v824_v23, %v4863_v15  ;;  %1658 = vmatprep.mubr.f32.mxu0 %v4446_v7  ;;  %v4305_v14 = vld [vmem:[%s4593_s9 + $0x140] sm:$0xff] }
 0x1dc   : > { %3667 = vst [vmem:[%s4885_s20 + $0xb98] sm:$0xff] %v3155_v17  ;;  %v2650_v28 = vsub.f32 %v1273_v24, %v4863_v15  ;;  %2107 = vmatprep.mubr.f32.mxu1 %v4446_v7  ;;  %v3160_v29 = vmul.f32 %v4870_v18, %v2647_v21 }
 0x1dd   : > { %v3162_v30 = vmul.f32 %v4870_v18, %v2649_v22  ;;  %v3161_v31 = vmul.f32 %v4870_v18, %v2648_v27  ;;  %v828_v33 = vpop.f32.mrb[96].mxu0 }
 0x1de   : > { %v3163_v32 = vmul.f32 %v4870_v18, %v2650_v28  ;;  %v1277_v34 = vpop.f32.mrb[96].mxu1  ;;  %3672 = vst [vmem:[%s4885_s20 + $0xbc0] sm:$0xff] %v3160_v29  ;;  %v2655_v35 = vsub.f32 %v828_v33, %v4863_v15  ;;  %v830_v37 = vpop.f32.mrb[97].mxu0  ;;  %4086 = vmatmul.mubr.msk.f32.gmra.mrb[202].mxu0 %vm281_vm0, %v4302_v39 }
 0x1df   : > { %3674 = vst [vmem:[%s4885_s20 + $0xbd0] sm:$0xff] %v3162_v30  ;;  %v2657_v36 = vsub.f32 %v1277_v34, %v4863_v15  ;;  %v1279_v38 = vpop.f32.mrb[97].mxu1  ;;  %4150 = vmatmul.mubr.msk.f32.gmra.mrb[202].mxu1 %vm281_vm0, %v4302_v39  ;;  %3673 = vst [vmem:[%s4885_s20 + $0xbc8] sm:$0xff] %v3161_v31  ;;  %v2656_v40 = vsub.f32 %v830_v37, %v4863_v15  ;;  %1664 = vmatprep.mubr.f32.mxu0 %v4446_v7  ;;  %v4306_v30 = vld [vmem:[%s4593_s9 + $0x148] sm:$0xff] }
 0x1e0   : > { %3675 = vst [vmem:[%s4885_s20 + $0xbd8] sm:$0xff] %v3163_v32  ;;  %v2658_v41 = vsub.f32 %v1279_v38, %v4863_v15  ;;  %2113 = vmatprep.mubr.f32.mxu1 %v4446_v7  ;;  %v3168_v42 = vmul.f32 %v4870_v18, %v2655_v35 }
 0x1e1   : > { %v3170_v43 = vmul.f32 %v4870_v18, %v2657_v36  ;;  %v3169_v44 = vmul.f32 %v4870_v18, %v2656_v40  ;;  %v834_v46 = vpop.f32.mrb[98].mxu0 }
 0x1e2   : > { %v3171_v45 = vmul.f32 %v4870_v18, %v2658_v41  ;;  %v1283_v47 = vpop.f32.mrb[98].mxu1  ;;  %3680 = vst [vmem:[%s4885_s20 + $0xc00] sm:$0xff] %v3168_v42  ;;  %v2663_v48 = vsub.f32 %v834_v46, %v4863_v15  ;;  %v836_v50 = vpop.f32.mrb[99].mxu0  ;;  %4087 = vmatmul.mubr.msk.f32.gmra.mrb[204].mxu0 %vm281_vm0, %v4303_v25 }
 0x1e3   : > { %3682 = vst [vmem:[%s4885_s20 + $0xc10] sm:$0xff] %v3170_v43  ;;  %v2665_v49 = vsub.f32 %v1283_v47, %v4863_v15  ;;  %v1285_v51 = vpop.f32.mrb[99].mxu1  ;;  %4151 = vmatmul.mubr.msk.f32.gmra.mrb[204].mxu1 %vm281_vm0, %v4303_v25  ;;  %3681 = vst [vmem:[%s4885_s20 + $0xc08] sm:$0xff] %v3169_v44  ;;  %v2664_v52 = vsub.f32 %v836_v50, %v4863_v15  ;;  %1670 = vmatprep.mubr.f32.mxu0 %v4446_v7  ;;  %v4307_v43 = vld [vmem:[%s4593_s9 + $0x150] sm:$0xff] }
 0x1e4   : > { %3683 = vst [vmem:[%s4885_s20 + $0xc18] sm:$0xff] %v3171_v45  ;;  %v2666_v53 = vsub.f32 %v1285_v51, %v4863_v15  ;;  %2119 = vmatprep.mubr.f32.mxu1 %v4446_v7  ;;  %v3176_v54 = vmul.f32 %v4870_v18, %v2663_v48 }
 0x1e5   : > { %v3178_v55 = vmul.f32 %v4870_v18, %v2665_v49  ;;  %v3177_v56 = vmul.f32 %v4870_v18, %v2664_v52  ;;  %v840_v58 = vpop.f32.mrb[100].mxu0 }
 0x1e6   : > { %v3179_v57 = vmul.f32 %v4870_v18, %v2666_v53  ;;  %v1289_v59 = vpop.f32.mrb[100].mxu1  ;;  %3688 = vst [vmem:[%s4885_s20 + $0xc40] sm:$0xff] %v3176_v54  ;;  %v2671_v60 = vsub.f32 %v840_v58, %v4863_v15  ;;  %v842_v62 = vpop.f32.mrb[101].mxu0  ;;  %4088 = vmatmul.mubr.msk.f32.gmra.mrb[206].mxu0 %vm281_vm0, %v4304_v0 }
 0x1e7   : > { %3690 = vst [vmem:[%s4885_s20 + $0xc50] sm:$0xff] %v3178_v55  ;;  %v2673_v61 = vsub.f32 %v1289_v59, %v4863_v15  ;;  %v1291_v63 = vpop.f32.mrb[101].mxu1  ;;  %4152 = vmatmul.mubr.msk.f32.gmra.mrb[206].mxu1 %vm281_vm0, %v4304_v0  ;;  %3689 = vst [vmem:[%s4885_s20 + $0xc48] sm:$0xff] %v3177_v56  ;;  %v2672_v1 = vsub.f32 %v842_v62, %v4863_v15  ;;  %1676 = vmatprep.mubr.f32.mxu0 %v4446_v7  ;;  %v4308_v55 = vld [vmem:[%s4593_s9 + $0x158] sm:$0xff] }
 0x1e8   : > { %3691 = vst [vmem:[%s4885_s20 + $0xc58] sm:$0xff] %v3179_v57  ;;  %v2674_v2 = vsub.f32 %v1291_v63, %v4863_v15  ;;  %2125 = vmatprep.mubr.f32.mxu1 %v4446_v7  ;;  %v3184_v3 = vmul.f32 %v4870_v18, %v2671_v60 }
 0x1e9   : > { %v3186_v4 = vmul.f32 %v4870_v18, %v2673_v61  ;;  %v3185_v5 = vmul.f32 %v4870_v18, %v2672_v1  ;;  %v846_v8 = vpop.f32.mrb[102].mxu0 }
 0x1ea   : > { %v3187_v6 = vmul.f32 %v4870_v18, %v2674_v2  ;;  %v1295_v9 = vpop.f32.mrb[102].mxu1  ;;  %3696 = vst [vmem:[%s4885_s20 + $0xc80] sm:$0xff] %v3184_v3  ;;  %v2679_v10 = vsub.f32 %v846_v8, %v4863_v15  ;;  %v848_v12 = vpop.f32.mrb[103].mxu0  ;;  %4089 = vmatmul.mubr.msk.f32.gmra.mrb[208].mxu0 %vm281_vm0, %v4305_v14 }
 0x1eb   : > { %3698 = vst [vmem:[%s4885_s20 + $0xc90] sm:$0xff] %v3186_v4  ;;  %v2681_v11 = vsub.f32 %v1295_v9, %v4863_v15  ;;  %v1297_v13 = vpop.f32.mrb[103].mxu1  ;;  %4153 = vmatmul.mubr.msk.f32.gmra.mrb[208].mxu1 %vm281_vm0, %v4305_v14  ;;  %3697 = vst [vmem:[%s4885_s20 + $0xc88] sm:$0xff] %v3185_v5  ;;  %v2680_v16 = vsub.f32 %v848_v12, %v4863_v15  ;;  %1682 = vmatprep.mubr.f32.mxu0 %v4446_v7  ;;  %v4309_v4 = vld [vmem:[%s4593_s9 + $0x160] sm:$0xff] }
 0x1ec   : > { %3699 = vst [vmem:[%s4885_s20 + $0xc98] sm:$0xff] %v3187_v6  ;;  %v2682_v17 = vsub.f32 %v1297_v13, %v4863_v15  ;;  %2131 = vmatprep.mubr.f32.mxu1 %v4446_v7  ;;  %v3192_v19 = vmul.f32 %v4870_v18, %v2679_v10 }
 0x1ed   : > { %v3194_v20 = vmul.f32 %v4870_v18, %v2681_v11  ;;  %v3193_v21 = vmul.f32 %v4870_v18, %v2680_v16  ;;  %v852_v23 = vpop.f32.mrb[104].mxu0 }
 0x1ee   : > { %v3195_v22 = vmul.f32 %v4870_v18, %v2682_v17  ;;  %v1301_v24 = vpop.f32.mrb[104].mxu1  ;;  %3704 = vst [vmem:[%s4885_s20 + $0xcc0] sm:$0xff] %v3192_v19  ;;  %v2687_v26 = vsub.f32 %v852_v23, %v4863_v15  ;;  %v854_v28 = vpop.f32.mrb[105].mxu0  ;;  %4090 = vmatmul.mubr.msk.f32.gmra.mrb[210].mxu0 %vm281_vm0, %v4306_v30 }
 0x1ef   : > { %3706 = vst [vmem:[%s4885_s20 + $0xcd0] sm:$0xff] %v3194_v20  ;;  %v2689_v27 = vsub.f32 %v1301_v24, %v4863_v15  ;;  %v1303_v29 = vpop.f32.mrb[105].mxu1  ;;  %4154 = vmatmul.mubr.msk.f32.gmra.mrb[210].mxu1 %vm281_vm0, %v4306_v30  ;;  %3705 = vst [vmem:[%s4885_s20 + $0xcc8] sm:$0xff] %v3193_v21  ;;  %v2688_v31 = vsub.f32 %v854_v28, %v4863_v15  ;;  %1688 = vmatprep.mubr.f32.mxu0 %v4446_v7  ;;  %v4310_v20 = vld [vmem:[%s4593_s9 + $0x168] sm:$0xff] }
 0x1f0   : > { %3707 = vst [vmem:[%s4885_s20 + $0xcd8] sm:$0xff] %v3195_v22  ;;  %v2690_v32 = vsub.f32 %v1303_v29, %v4863_v15  ;;  %2137 = vmatprep.mubr.f32.mxu1 %v4446_v7  ;;  %v3200_v33 = vmul.f32 %v4870_v18, %v2687_v26 }
 0x1f1   : > { %v3202_v34 = vmul.f32 %v4870_v18, %v2689_v27  ;;  %v3201_v35 = vmul.f32 %v4870_v18, %v2688_v31  ;;  %v858_v37 = vpop.f32.mrb[106].mxu0 }
 0x1f2   : > { %v3203_v36 = vmul.f32 %v4870_v18, %v2690_v32  ;;  %v1307_v38 = vpop.f32.mrb[106].mxu1  ;;  %3712 = vst [vmem:[%s4885_s20 + $0xd00] sm:$0xff] %v3200_v33  ;;  %v2695_v39 = vsub.f32 %v858_v37, %v4863_v15  ;;  %v860_v41 = vpop.f32.mrb[107].mxu0  ;;  %4091 = vmatmul.mubr.msk.f32.gmra.mrb[212].mxu0 %vm281_vm0, %v4307_v43 }
 0x1f3   : > { %3714 = vst [vmem:[%s4885_s20 + $0xd10] sm:$0xff] %v3202_v34  ;;  %v2697_v40 = vsub.f32 %v1307_v38, %v4863_v15  ;;  %v1309_v42 = vpop.f32.mrb[107].mxu1  ;;  %4155 = vmatmul.mubr.msk.f32.gmra.mrb[212].mxu1 %vm281_vm0, %v4307_v43  ;;  %3713 = vst [vmem:[%s4885_s20 + $0xd08] sm:$0xff] %v3201_v35  ;;  %v2696_v44 = vsub.f32 %v860_v41, %v4863_v15  ;;  %1694 = vmatprep.mubr.f32.mxu0 %v4446_v7  ;;  %v4311_v34 = vld [vmem:[%s4593_s9 + $0x170] sm:$0xff] }
 0x1f4   : > { %3715 = vst [vmem:[%s4885_s20 + $0xd18] sm:$0xff] %v3203_v36  ;;  %v2698_v45 = vsub.f32 %v1309_v42, %v4863_v15  ;;  %2143 = vmatprep.mubr.f32.mxu1 %v4446_v7  ;;  %v3208_v46 = vmul.f32 %v4870_v18, %v2695_v39 }
 0x1f5   : > { %v3210_v47 = vmul.f32 %v4870_v18, %v2697_v40  ;;  %v3209_v48 = vmul.f32 %v4870_v18, %v2696_v44  ;;  %v864_v50 = vpop.f32.mrb[108].mxu0 }
 0x1f6   : > { %v3211_v49 = vmul.f32 %v4870_v18, %v2698_v45  ;;  %v1313_v51 = vpop.f32.mrb[108].mxu1  ;;  %3720 = vst [vmem:[%s4885_s20 + $0xd40] sm:$0xff] %v3208_v46  ;;  %v2703_v25 = vsub.f32 %v864_v50, %v4863_v15  ;;  %v866_v53 = vpop.f32.mrb[109].mxu0  ;;  %4092 = vmatmul.mubr.msk.f32.gmra.mrb[214].mxu0 %vm281_vm0, %v4308_v55 }
 0x1f7   : > { %3722 = vst [vmem:[%s4885_s20 + $0xd50] sm:$0xff] %v3210_v47  ;;  %v2705_v52 = vsub.f32 %v1313_v51, %v4863_v15  ;;  %v1315_v54 = vpop.f32.mrb[109].mxu1  ;;  %4156 = vmatmul.mubr.msk.f32.gmra.mrb[214].mxu1 %vm281_vm0, %v4308_v55  ;;  %3721 = vst [vmem:[%s4885_s20 + $0xd48] sm:$0xff] %v3209_v48  ;;  %v2704_v56 = vsub.f32 %v866_v53, %v4863_v15  ;;  %1700 = vmatprep.mubr.f32.mxu0 %v4446_v7  ;;  %v4312_v47 = vld [vmem:[%s4593_s9 + $0x178] sm:$0xff] }
 0x1f8   : > { %3723 = vst [vmem:[%s4885_s20 + $0xd58] sm:$0xff] %v3211_v49  ;;  %v2706_v57 = vsub.f32 %v1315_v54, %v4863_v15  ;;  %2149 = vmatprep.mubr.f32.mxu1 %v4446_v7  ;;  %v3216_v58 = vmul.f32 %v4870_v18, %v2703_v25 }
 0x1f9   : > { %v3218_v59 = vmul.f32 %v4870_v18, %v2705_v52  ;;  %v3217_v60 = vmul.f32 %v4870_v18, %v2704_v56  ;;  %v870_v62 = vpop.f32.mrb[110].mxu0 }
 0x1fa   : > { %v3219_v61 = vmul.f32 %v4870_v18, %v2706_v57  ;;  %v1319_v63 = vpop.f32.mrb[110].mxu1  ;;  %3728 = vst [vmem:[%s4885_s20 + $0xd80] sm:$0xff] %v3216_v58  ;;  %v2711_v0 = vsub.f32 %v870_v62, %v4863_v15  ;;  %v872_v2 = vpop.f32.mrb[111].mxu0  ;;  %4093 = vmatmul.mubr.msk.f32.gmra.mrb[216].mxu0 %vm281_vm0, %v4309_v4 }
 0x1fb   : > { %3730 = vst [vmem:[%s4885_s20 + $0xd90] sm:$0xff] %v3218_v59  ;;  %v2713_v1 = vsub.f32 %v1319_v63, %v4863_v15  ;;  %v1321_v3 = vpop.f32.mrb[111].mxu1  ;;  %4157 = vmatmul.mubr.msk.f32.gmra.mrb[216].mxu1 %vm281_vm0, %v4309_v4  ;;  %3729 = vst [vmem:[%s4885_s20 + $0xd88] sm:$0xff] %v3217_v60  ;;  %v2712_v5 = vsub.f32 %v872_v2, %v4863_v15  ;;  %1706 = vmatprep.mubr.f32.mxu0 %v4446_v7  ;;  %v4313_v59 = vld [vmem:[%s4593_s9 + $0x180] sm:$0xff] }
 0x1fc   : > { %3731 = vst [vmem:[%s4885_s20 + $0xd98] sm:$0xff] %v3219_v61  ;;  %v2714_v6 = vsub.f32 %v1321_v3, %v4863_v15  ;;  %2155 = vmatprep.mubr.f32.mxu1 %v4446_v7  ;;  %v3224_v8 = vmul.f32 %v4870_v18, %v2711_v0 }
 0x1fd   : > { %v3226_v9 = vmul.f32 %v4870_v18, %v2713_v1  ;;  %v3225_v10 = vmul.f32 %v4870_v18, %v2712_v5  ;;  %v876_v12 = vpop.f32.mrb[112].mxu0 }
 0x1fe   : > { %v3227_v11 = vmul.f32 %v4870_v18, %v2714_v6  ;;  %v1325_v13 = vpop.f32.mrb[112].mxu1  ;;  %3736 = vst [vmem:[%s4885_s20 + $0xdc0] sm:$0xff] %v3224_v8  ;;  %v2719_v14 = vsub.f32 %v876_v12, %v4863_v15  ;;  %v878_v17 = vpop.f32.mrb[113].mxu0  ;;  %4094 = vmatmul.mubr.msk.f32.gmra.mrb[218].mxu0 %vm281_vm0, %v4310_v20 }
 0x1ff   : > { %3738 = vst [vmem:[%s4885_s20 + $0xdd0] sm:$0xff] %v3226_v9  ;;  %v2721_v16 = vsub.f32 %v1325_v13, %v4863_v15  ;;  %v1327_v19 = vpop.f32.mrb[113].mxu1  ;;  %4158 = vmatmul.mubr.msk.f32.gmra.mrb[218].mxu1 %vm281_vm0, %v4310_v20  ;;  %3737 = vst [vmem:[%s4885_s20 + $0xdc8] sm:$0xff] %v3225_v10  ;;  %v2720_v21 = vsub.f32 %v878_v17, %v4863_v15  ;;  %1712 = vmatprep.mubr.f32.mxu0 %v4446_v7  ;;  %v4314_v9 = vld [vmem:[%s4593_s9 + $0x188] sm:$0xff] }
 0x200   : > { %3739 = vst [vmem:[%s4885_s20 + $0xdd8] sm:$0xff] %v3227_v11  ;;  %v2722_v22 = vsub.f32 %v1327_v19, %v4863_v15  ;;  %2161 = vmatprep.mubr.f32.mxu1 %v4446_v7  ;;  %v3232_v23 = vmul.f32 %v4870_v18, %v2719_v14 }
 0x201   : > { %v3234_v24 = vmul.f32 %v4870_v18, %v2721_v16  ;;  %v3233_v26 = vmul.f32 %v4870_v18, %v2720_v21  ;;  %v882_v28 = vpop.f32.mrb[114].mxu0 }
 0x202   : > { %v3235_v27 = vmul.f32 %v4870_v18, %v2722_v22  ;;  %v1331_v29 = vpop.f32.mrb[114].mxu1  ;;  %3744 = vst [vmem:[%s4885_s20 + $0xe00] sm:$0xff] %v3232_v23  ;;  %v2727_v30 = vsub.f32 %v882_v28, %v4863_v15  ;;  %v884_v32 = vpop.f32.mrb[115].mxu0  ;;  %4095 = vmatmul.mubr.msk.f32.gmra.mrb[220].mxu0 %vm281_vm0, %v4311_v34 }
 0x203   : > { %3746 = vst [vmem:[%s4885_s20 + $0xe10] sm:$0xff] %v3234_v24  ;;  %v2729_v31 = vsub.f32 %v1331_v29, %v4863_v15  ;;  %v1333_v33 = vpop.f32.mrb[115].mxu1  ;;  %4159 = vmatmul.mubr.msk.f32.gmra.mrb[220].mxu1 %vm281_vm0, %v4311_v34  ;;  %3745 = vst [vmem:[%s4885_s20 + $0xe08] sm:$0xff] %v3233_v26  ;;  %v2728_v35 = vsub.f32 %v884_v32, %v4863_v15  ;;  %1718 = vmatprep.mubr.f32.mxu0 %v4446_v7  ;;  %v4315_v24 = vld [vmem:[%s4593_s9 + $0x190] sm:$0xff] }
 0x204   : > { %3747 = vst [vmem:[%s4885_s20 + $0xe18] sm:$0xff] %v3235_v27  ;;  %v2730_v36 = vsub.f32 %v1333_v33, %v4863_v15  ;;  %2167 = vmatprep.mubr.f32.mxu1 %v4446_v7  ;;  %v3240_v37 = vmul.f32 %v4870_v18, %v2727_v30 }
 0x205   : > { %v3242_v38 = vmul.f32 %v4870_v18, %v2729_v31  ;;  %v3241_v39 = vmul.f32 %v4870_v18, %v2728_v35  ;;  %v888_v41 = vpop.f32.mrb[116].mxu0 }
 0x206   : > { %v3243_v40 = vmul.f32 %v4870_v18, %v2730_v36  ;;  %v1337_v42 = vpop.f32.mrb[116].mxu1  ;;  %3752 = vst [vmem:[%s4885_s20 + $0xe40] sm:$0xff] %v3240_v37  ;;  %v2735_v43 = vsub.f32 %v888_v41, %v4863_v15  ;;  %v890_v45 = vpop.f32.mrb[117].mxu0  ;;  %4096 = vmatmul.mubr.msk.f32.gmra.mrb[222].mxu0 %vm281_vm0, %v4312_v47 }
 0x207   : > { %3754 = vst [vmem:[%s4885_s20 + $0xe50] sm:$0xff] %v3242_v38  ;;  %v2737_v44 = vsub.f32 %v1337_v42, %v4863_v15  ;;  %v1339_v46 = vpop.f32.mrb[117].mxu1  ;;  %4160 = vmatmul.mubr.msk.f32.gmra.mrb[222].mxu1 %vm281_vm0, %v4312_v47  ;;  %3753 = vst [vmem:[%s4885_s20 + $0xe48] sm:$0xff] %v3241_v39  ;;  %v2736_v48 = vsub.f32 %v890_v45, %v4863_v15  ;;  %1724 = vmatprep.mubr.f32.mxu0 %v4446_v7  ;;  %v4316_v38 = vld [vmem:[%s4593_s9 + $0x198] sm:$0xff] }
 0x208   : > { %3755 = vst [vmem:[%s4885_s20 + $0xe58] sm:$0xff] %v3243_v40  ;;  %v2738_v49 = vsub.f32 %v1339_v46, %v4863_v15  ;;  %2173 = vmatprep.mubr.f32.mxu1 %v4446_v7  ;;  %v3248_v50 = vmul.f32 %v4870_v18, %v2735_v43 }
 0x209   : > { %v3250_v51 = vmul.f32 %v4870_v18, %v2737_v44  ;;  %v3249_v25 = vmul.f32 %v4870_v18, %v2736_v48  ;;  %v894_v53 = vpop.f32.mrb[118].mxu0 }
 0x20a   : > { %v3251_v52 = vmul.f32 %v4870_v18, %v2738_v49  ;;  %v1343_v54 = vpop.f32.mrb[118].mxu1  ;;  %3760 = vst [vmem:[%s4885_s20 + $0xe80] sm:$0xff] %v3248_v50  ;;  %v2743_v55 = vsub.f32 %v894_v53, %v4863_v15  ;;  %v896_v57 = vpop.f32.mrb[119].mxu0  ;;  %4097 = vmatmul.mubr.msk.f32.gmra.mrb[224].mxu0 %vm281_vm0, %v4313_v59 }
 0x20b   : > { %3762 = vst [vmem:[%s4885_s20 + $0xe90] sm:$0xff] %v3250_v51  ;;  %v2745_v56 = vsub.f32 %v1343_v54, %v4863_v15  ;;  %v1345_v58 = vpop.f32.mrb[119].mxu1  ;;  %4161 = vmatmul.mubr.msk.f32.gmra.mrb[224].mxu1 %vm281_vm0, %v4313_v59  ;;  %3761 = vst [vmem:[%s4885_s20 + $0xe88] sm:$0xff] %v3249_v25  ;;  %v2744_v60 = vsub.f32 %v896_v57, %v4863_v15  ;;  %1730 = vmatprep.mubr.f32.mxu0 %v4446_v7  ;;  %v4317_v51 = vld [vmem:[%s4593_s9 + $0x1a0] sm:$0xff] }
 0x20c   : > { %3763 = vst [vmem:[%s4885_s20 + $0xe98] sm:$0xff] %v3251_v52  ;;  %v2746_v61 = vsub.f32 %v1345_v58, %v4863_v15  ;;  %2179 = vmatprep.mubr.f32.mxu1 %v4446_v7  ;;  %v3256_v62 = vmul.f32 %v4870_v18, %v2743_v55 }
 0x20d   : > { %v3258_v63 = vmul.f32 %v4870_v18, %v2745_v56  ;;  %v3257_v0 = vmul.f32 %v4870_v18, %v2744_v60  ;;  %v900_v2 = vpop.f32.mrb[120].mxu0 }
 0x20e   : > { %v3259_v1 = vmul.f32 %v4870_v18, %v2746_v61  ;;  %v1349_v3 = vpop.f32.mrb[120].mxu1  ;;  %3768 = vst [vmem:[%s4885_s20 + $0xec0] sm:$0xff] %v3256_v62  ;;  %v2751_v4 = vsub.f32 %v900_v2, %v4863_v15  ;;  %v902_v6 = vpop.f32.mrb[121].mxu0  ;;  %4098 = vmatmul.mubr.msk.f32.gmra.mrb[226].mxu0 %vm281_vm0, %v4314_v9  ;;  %v4318_v62 = vld [vmem:[%s4593_s9 + $0x1a8] sm:$0xff] }
 0x20f   : > { %3770 = vst [vmem:[%s4885_s20 + $0xed0] sm:$0xff] %v3258_v63  ;;  %v2753_v5 = vsub.f32 %v1349_v3, %v4863_v15  ;;  %v1351_v8 = vpop.f32.mrb[121].mxu1  ;;  %4162 = vmatmul.mubr.msk.f32.gmra.mrb[226].mxu1 %vm281_vm0, %v4314_v9  ;;  %3769 = vst [vmem:[%s4885_s20 + $0xec8] sm:$0xff] %v3257_v0  ;;  %v2752_v10 = vsub.f32 %v902_v6, %v4863_v15  ;;  %1736 = vmatprep.mubr.f32.mxu0 %v4446_v7 }
 0x210   : > { %3771 = vst [vmem:[%s4885_s20 + $0xed8] sm:$0xff] %v3259_v1  ;;  %v2754_v11 = vsub.f32 %v1351_v8, %v4863_v15  ;;  %2185 = vmatprep.mubr.f32.mxu1 %v4446_v7  ;;  %v3264_v12 = vmul.f32 %v4870_v18, %v2751_v4 }
 0x211   : > { %v3266_v13 = vmul.f32 %v4870_v18, %v2753_v5  ;;  %v3265_v14 = vmul.f32 %v4870_v18, %v2752_v10  ;;  %v906_v17 = vpop.f32.mrb[122].mxu0 }
 0x212   : > { %v3267_v16 = vmul.f32 %v4870_v18, %v2754_v11  ;;  %v1355_v19 = vpop.f32.mrb[122].mxu1  ;;  %3776 = vst [vmem:[%s4885_s20 + $0xf00] sm:$0xff] %v3264_v12  ;;  %v2759_v20 = vsub.f32 %v906_v17, %v4863_v15  ;;  %v908_v22 = vpop.f32.mrb[123].mxu0  ;;  %4099 = vmatmul.mubr.msk.f32.gmra.mrb[228].mxu0 %vm281_vm0, %v4315_v24  ;;  %v4319_v12 = vld [vmem:[%s4593_s9 + $0x1b0] sm:$0xff] }
 0x213   : > { %3778 = vst [vmem:[%s4885_s20 + $0xf10] sm:$0xff] %v3266_v13  ;;  %v2761_v21 = vsub.f32 %v1355_v19, %v4863_v15  ;;  %v1357_v23 = vpop.f32.mrb[123].mxu1  ;;  %4163 = vmatmul.mubr.msk.f32.gmra.mrb[228].mxu1 %vm281_vm0, %v4315_v24  ;;  %3777 = vst [vmem:[%s4885_s20 + $0xf08] sm:$0xff] %v3265_v14  ;;  %v2760_v26 = vsub.f32 %v908_v22, %v4863_v15  ;;  %1742 = vmatprep.mubr.f32.mxu0 %v4446_v7 }
 0x214   : > { %3779 = vst [vmem:[%s4885_s20 + $0xf18] sm:$0xff] %v3267_v16  ;;  %v2762_v27 = vsub.f32 %v1357_v23, %v4863_v15  ;;  %2191 = vmatprep.mubr.f32.mxu1 %v4446_v7  ;;  %v3272_v28 = vmul.f32 %v4870_v18, %v2759_v20 }
 0x215   : > { %v3274_v29 = vmul.f32 %v4870_v18, %v2761_v21  ;;  %v3273_v30 = vmul.f32 %v4870_v18, %v2760_v26  ;;  %v912_v32 = vpop.f32.mrb[124].mxu0 }
 0x216   : > { %v3275_v31 = vmul.f32 %v4870_v18, %v2762_v27  ;;  %v1361_v33 = vpop.f32.mrb[124].mxu1  ;;  %3784 = vst [vmem:[%s4885_s20 + $0xf40] sm:$0xff] %v3272_v28  ;;  %v2767_v34 = vsub.f32 %v912_v32, %v4863_v15  ;;  %v914_v36 = vpop.f32.mrb[125].mxu0  ;;  %4100 = vmatmul.mubr.msk.f32.gmra.mrb[230].mxu0 %vm281_vm0, %v4316_v38  ;;  %v4320_v28 = vld [vmem:[%s4593_s9 + $0x1b8] sm:$0xff] }
 0x217   : > { %3786 = vst [vmem:[%s4885_s20 + $0xf50] sm:$0xff] %v3274_v29  ;;  %v2769_v35 = vsub.f32 %v1361_v33, %v4863_v15  ;;  %v1363_v37 = vpop.f32.mrb[125].mxu1  ;;  %4164 = vmatmul.mubr.msk.f32.gmra.mrb[230].mxu1 %vm281_vm0, %v4316_v38  ;;  %3785 = vst [vmem:[%s4885_s20 + $0xf48] sm:$0xff] %v3273_v30  ;;  %v2768_v39 = vsub.f32 %v914_v36, %v4863_v15  ;;  %1748 = vmatprep.mubr.f32.mxu0 %v4446_v7 }
 0x218   : > { %3787 = vst [vmem:[%s4885_s20 + $0xf58] sm:$0xff] %v3275_v31  ;;  %v2770_v40 = vsub.f32 %v1363_v37, %v4863_v15  ;;  %2197 = vmatprep.mubr.f32.mxu1 %v4446_v7  ;;  %v3280_v41 = vmul.f32 %v4870_v18, %v2767_v34 }
 0x219   : > { %v3282_v42 = vmul.f32 %v4870_v18, %v2769_v35  ;;  %v3281_v43 = vmul.f32 %v4870_v18, %v2768_v39  ;;  %v918_v45 = vpop.f32.mrb[126].mxu0 }
 0x21a   : > { %v3283_v44 = vmul.f32 %v4870_v18, %v2770_v40  ;;  %v1367_v46 = vpop.f32.mrb[126].mxu1  ;;  %3792 = vst [vmem:[%s4885_s20 + $0xf80] sm:$0xff] %v3280_v41  ;;  %v2775_v47 = vsub.f32 %v918_v45, %v4863_v15  ;;  %v920_v49 = vpop.f32.mrb[127].mxu0  ;;  %4101 = vmatmul.mubr.msk.f32.gmra.mrb[232].mxu0 %vm281_vm0, %v4317_v51  ;;  %v4321_v41 = vld [vmem:[%s4593_s9 + $0x1c0] sm:$0xff] }
 0x21b   : > { %3794 = vst [vmem:[%s4885_s20 + $0xf90] sm:$0xff] %v3282_v42  ;;  %v2777_v48 = vsub.f32 %v1367_v46, %v4863_v15  ;;  %v1369_v50 = vpop.f32.mrb[127].mxu1  ;;  %4165 = vmatmul.mubr.msk.f32.gmra.mrb[232].mxu1 %vm281_vm0, %v4317_v51  ;;  %3793 = vst [vmem:[%s4885_s20 + $0xf88] sm:$0xff] %v3281_v43  ;;  %v2776_v25 = vsub.f32 %v920_v49, %v4863_v15  ;;  %1754 = vmatprep.mubr.f32.mxu0 %v4446_v7 }
 0x21c   : > { %3795 = vst [vmem:[%s4885_s20 + $0xf98] sm:$0xff] %v3283_v44  ;;  %v2778_v52 = vsub.f32 %v1369_v50, %v4863_v15  ;;  %2203 = vmatprep.mubr.f32.mxu1 %v4446_v7  ;;  %v3288_v53 = vmul.f32 %v4870_v18, %v2775_v47 }
 0x21d   : > { %v3290_v54 = vmul.f32 %v4870_v18, %v2777_v48  ;;  %v3289_v55 = vmul.f32 %v4870_v18, %v2776_v25  ;;  %v1438_v57 = vpop.f32.mrb[128].mxu0 }
 0x21e   : > { %v3291_v56 = vmul.f32 %v4870_v18, %v2778_v52  ;;  %v1887_v58 = vpop.f32.mrb[128].mxu1  ;;  %3800 = vst [vmem:[%s4885_s20 + $0xfc0] sm:$0xff] %v3288_v53  ;;  %v2275_v59 = vsub.f32 %v1438_v57, %v4863_v15  ;;  %v1440_v61 = vpop.f32.mrb[129].mxu0  ;;  %4102 = vmatmul.mubr.msk.f32.gmra.mrb[234].mxu0 %vm281_vm0, %v4318_v62  ;;  %v4322_v53 = vld [vmem:[%s4593_s9 + $0x1c8] sm:$0xff] }
 0x21f   : > { %3802 = vst [vmem:[%s4885_s20 + $0xfd0] sm:$0xff] %v3290_v54  ;;  %v2277_v60 = vsub.f32 %v1887_v58, %v4863_v15  ;;  %v1889_v63 = vpop.f32.mrb[129].mxu1  ;;  %4166 = vmatmul.mubr.msk.f32.gmra.mrb[234].mxu1 %vm281_vm0, %v4318_v62  ;;  %3801 = vst [vmem:[%s4885_s20 + $0xfc8] sm:$0xff] %v3289_v55  ;;  %v2276_v0 = vsub.f32 %v1440_v61, %v4863_v15  ;;  %1760 = vmatprep.mubr.f32.mxu0 %v4446_v7 }
 0x220   : > { %3803 = vst [vmem:[%s4885_s20 + $0xfd8] sm:$0xff] %v3291_v56  ;;  %v2278_v1 = vsub.f32 %v1889_v63, %v4863_v15  ;;  %2209 = vmatprep.mubr.f32.mxu1 %v4446_v7  ;;  %v2788_v2 = vmul.f32 %v4870_v18, %v2275_v59 }
 0x221   : > { %v2790_v3 = vmul.f32 %v4870_v18, %v2277_v60  ;;  %v2789_v4 = vmul.f32 %v4870_v18, %v2276_v0  ;;  %v1444_v6 = vpop.f32.mrb[130].mxu0 }
 0x222   : > { %v2791_v5 = vmul.f32 %v4870_v18, %v2278_v1  ;;  %v1893_v8 = vpop.f32.mrb[130].mxu1  ;;  %3300 = vst [vmem:[%s4885_s20 + $0x20] sm:$0xff] %v2788_v2  ;;  %v2283_v9 = vsub.f32 %v1444_v6, %v4863_v15  ;;  %v1446_v11 = vpop.f32.mrb[131].mxu0  ;;  %4103 = vmatmul.mubr.msk.f32.gmra.mrb[236].mxu0 %vm281_vm0, %v4319_v12  ;;  %v4323_v2 = vld [vmem:[%s4593_s9 + $0x1d0] sm:$0xff] }
 0x223   : > { %3302 = vst [vmem:[%s4885_s20 + $0x30] sm:$0xff] %v2790_v3  ;;  %v2285_v10 = vsub.f32 %v1893_v8, %v4863_v15  ;;  %v1895_v13 = vpop.f32.mrb[131].mxu1  ;;  %4167 = vmatmul.mubr.msk.f32.gmra.mrb[236].mxu1 %vm281_vm0, %v4319_v12  ;;  %3301 = vst [vmem:[%s4885_s20 + $0x28] sm:$0xff] %v2789_v4  ;;  %v2284_v14 = vsub.f32 %v1446_v11, %v4863_v15  ;;  %1766 = vmatprep.mubr.f32.mxu0 %v4446_v7 }
 0x224   : > { %3303 = vst [vmem:[%s4885_s20 + $0x38] sm:$0xff] %v2791_v5  ;;  %v2286_v16 = vsub.f32 %v1895_v13, %v4863_v15  ;;  %2215 = vmatprep.mubr.f32.mxu1 %v4446_v7  ;;  %v2796_v17 = vmul.f32 %v4870_v18, %v2283_v9 }
 0x225   : > { %v2798_v19 = vmul.f32 %v4870_v18, %v2285_v10  ;;  %v2797_v20 = vmul.f32 %v4870_v18, %v2284_v14  ;;  %v1450_v22 = vpop.f32.mrb[132].mxu0 }
 0x226   : > { %v2799_v21 = vmul.f32 %v4870_v18, %v2286_v16  ;;  %v1899_v23 = vpop.f32.mrb[132].mxu1  ;;  %3308 = vst [vmem:[%s4885_s20 + $0x60] sm:$0xff] %v2796_v17  ;;  %v2291_v24 = vsub.f32 %v1450_v22, %v4863_v15  ;;  %v1452_v27 = vpop.f32.mrb[133].mxu0  ;;  %4104 = vmatmul.mubr.msk.f32.gmra.mrb[238].mxu0 %vm281_vm0, %v4320_v28  ;;  %v4324_v17 = vld [vmem:[%s4593_s9 + $0x1d8] sm:$0xff] }
 0x227   : > { %3310 = vst [vmem:[%s4885_s20 + $0x70] sm:$0xff] %v2798_v19  ;;  %v2293_v26 = vsub.f32 %v1899_v23, %v4863_v15  ;;  %v1901_v29 = vpop.f32.mrb[133].mxu1  ;;  %4168 = vmatmul.mubr.msk.f32.gmra.mrb[238].mxu1 %vm281_vm0, %v4320_v28  ;;  %3309 = vst [vmem:[%s4885_s20 + $0x68] sm:$0xff] %v2797_v20  ;;  %v2292_v30 = vsub.f32 %v1452_v27, %v4863_v15  ;;  %1772 = vmatprep.mubr.f32.mxu0 %v4446_v7 }
 0x228   : > { %3311 = vst [vmem:[%s4885_s20 + $0x78] sm:$0xff] %v2799_v21  ;;  %v2294_v31 = vsub.f32 %v1901_v29, %v4863_v15  ;;  %2221 = vmatprep.mubr.f32.mxu1 %v4446_v7  ;;  %v2804_v32 = vmul.f32 %v4870_v18, %v2291_v24 }
 0x229   : > { %v2806_v33 = vmul.f32 %v4870_v18, %v2293_v26  ;;  %v2805_v34 = vmul.f32 %v4870_v18, %v2292_v30  ;;  %v1456_v36 = vpop.f32.mrb[134].mxu0 }
 0x22a   : > { %v2807_v35 = vmul.f32 %v4870_v18, %v2294_v31  ;;  %v1905_v37 = vpop.f32.mrb[134].mxu1  ;;  %3316 = vst [vmem:[%s4885_s20 + $0xa0] sm:$0xff] %v2804_v32  ;;  %v2299_v38 = vsub.f32 %v1456_v36, %v4863_v15  ;;  %v1458_v40 = vpop.f32.mrb[135].mxu0  ;;  %4105 = vmatmul.mubr.msk.f32.gmra.mrb[240].mxu0 %vm281_vm0, %v4321_v41  ;;  %v4325_v32 = vld [vmem:[%s4593_s9 + $0x1e0] sm:$0xff] }
 0x22b   : > { %3318 = vst [vmem:[%s4885_s20 + $0xb0] sm:$0xff] %v2806_v33  ;;  %v2301_v39 = vsub.f32 %v1905_v37, %v4863_v15  ;;  %v1907_v42 = vpop.f32.mrb[135].mxu1  ;;  %4169 = vmatmul.mubr.msk.f32.gmra.mrb[240].mxu1 %vm281_vm0, %v4321_v41  ;;  %3317 = vst [vmem:[%s4885_s20 + $0xa8] sm:$0xff] %v2805_v34  ;;  %v2300_v43 = vsub.f32 %v1458_v40, %v4863_v15  ;;  %1778 = vmatprep.mubr.f32.mxu0 %v4446_v7 }
 0x22c   : > { %3319 = vst [vmem:[%s4885_s20 + $0xb8] sm:$0xff] %v2807_v35  ;;  %v2302_v44 = vsub.f32 %v1907_v42, %v4863_v15  ;;  %2227 = vmatprep.mubr.f32.mxu1 %v4446_v7  ;;  %v2812_v45 = vmul.f32 %v4870_v18, %v2299_v38 }
 0x22d   : > { %v2814_v46 = vmul.f32 %v4870_v18, %v2301_v39  ;;  %v2813_v47 = vmul.f32 %v4870_v18, %v2300_v43  ;;  %v1462_v49 = vpop.f32.mrb[136].mxu0 }
 0x22e   : > { %v2815_v48 = vmul.f32 %v4870_v18, %v2302_v44  ;;  %v1911_v50 = vpop.f32.mrb[136].mxu1  ;;  %3324 = vst [vmem:[%s4885_s20 + $0xe0] sm:$0xff] %v2812_v45  ;;  %v2307_v51 = vsub.f32 %v1462_v49, %v4863_v15  ;;  %v1464_v52 = vpop.f32.mrb[137].mxu0  ;;  %4106 = vmatmul.mubr.msk.f32.gmra.mrb[242].mxu0 %vm281_vm0, %v4322_v53  ;;  %v4326_v45 = vld [vmem:[%s4593_s9 + $0x1e8] sm:$0xff] }
 0x22f   : > { %3326 = vst [vmem:[%s4885_s20 + $0xf0] sm:$0xff] %v2814_v46  ;;  %v2309_v25 = vsub.f32 %v1911_v50, %v4863_v15  ;;  %v1913_v54 = vpop.f32.mrb[137].mxu1  ;;  %4170 = vmatmul.mubr.msk.f32.gmra.mrb[242].mxu1 %vm281_vm0, %v4322_v53  ;;  %3325 = vst [vmem:[%s4885_s20 + $0xe8] sm:$0xff] %v2813_v47  ;;  %v2308_v55 = vsub.f32 %v1464_v52, %v4863_v15  ;;  %1784 = vmatprep.mubr.f32.mxu0 %v4446_v7 }
 0x230   : > { %3327 = vst [vmem:[%s4885_s20 + $0xf8] sm:$0xff] %v2815_v48  ;;  %v2310_v56 = vsub.f32 %v1913_v54, %v4863_v15  ;;  %2233 = vmatprep.mubr.f32.mxu1 %v4446_v7  ;;  %v2820_v57 = vmul.f32 %v4870_v18, %v2307_v51 }
 0x231   : > { %v2822_v58 = vmul.f32 %v4870_v18, %v2309_v25  ;;  %v2821_v59 = vmul.f32 %v4870_v18, %v2308_v55  ;;  %v1468_v61 = vpop.f32.mrb[138].mxu0 }
 0x232   : > { %v2823_v60 = vmul.f32 %v4870_v18, %v2310_v56  ;;  %v1917_v62 = vpop.f32.mrb[138].mxu1  ;;  %3332 = vst [vmem:[%s4885_s20 + $0x120] sm:$0xff] %v2820_v57  ;;  %v2315_v63 = vsub.f32 %v1468_v61, %v4863_v15  ;;  %v1470_v1 = vpop.f32.mrb[139].mxu0  ;;  %4107 = vmatmul.mubr.msk.f32.gmra.mrb[244].mxu0 %vm281_vm0, %v4323_v2  ;;  %v4327_v57 = vld [vmem:[%s4593_s9 + $0x1f0] sm:$0xff] }
 0x233   : > { %3334 = vst [vmem:[%s4885_s20 + $0x130] sm:$0xff] %v2822_v58  ;;  %v2317_v0 = vsub.f32 %v1917_v62, %v4863_v15  ;;  %v1919_v3 = vpop.f32.mrb[139].mxu1  ;;  %4171 = vmatmul.mubr.msk.f32.gmra.mrb[244].mxu1 %vm281_vm0, %v4323_v2  ;;  %3333 = vst [vmem:[%s4885_s20 + $0x128] sm:$0xff] %v2821_v59  ;;  %v2316_v4 = vsub.f32 %v1470_v1, %v4863_v15  ;;  %1790 = vmatprep.mubr.f32.mxu0 %v4446_v7 }
 0x234   : > { %3335 = vst [vmem:[%s4885_s20 + $0x138] sm:$0xff] %v2823_v60  ;;  %v2318_v5 = vsub.f32 %v1919_v3, %v4863_v15  ;;  %2239 = vmatprep.mubr.f32.mxu1 %v4446_v7  ;;  %v2828_v6 = vmul.f32 %v4870_v18, %v2315_v63 }
 0x235   : > { %v2830_v8 = vmul.f32 %v4870_v18, %v2317_v0  ;;  %v2829_v9 = vmul.f32 %v4870_v18, %v2316_v4  ;;  %v1474_v11 = vpop.f32.mrb[140].mxu0 }
 0x236   : > { %v2831_v10 = vmul.f32 %v4870_v18, %v2318_v5  ;;  %v1923_v12 = vpop.f32.mrb[140].mxu1  ;;  %3340 = vst [vmem:[%s4885_s20 + $0x160] sm:$0xff] %v2828_v6  ;;  %v2323_v13 = vsub.f32 %v1474_v11, %v4863_v15  ;;  %v1476_v16 = vpop.f32.mrb[141].mxu0  ;;  %4108 = vmatmul.mubr.msk.f32.gmra.mrb[246].mxu0 %vm281_vm0, %v4324_v17  ;;  %v4328_v5 = vld [vmem:[%s4593_s9 + $0x1f8] sm:$0xff] }
 0x237   : > { %3342 = vst [vmem:[%s4885_s20 + $0x170] sm:$0xff] %v2830_v8  ;;  %v2325_v14 = vsub.f32 %v1923_v12, %v4863_v15  ;;  %v1925_v19 = vpop.f32.mrb[141].mxu1  ;;  %4172 = vmatmul.mubr.msk.f32.gmra.mrb[246].mxu1 %vm281_vm0, %v4324_v17  ;;  %3341 = vst [vmem:[%s4885_s20 + $0x168] sm:$0xff] %v2829_v9  ;;  %v2324_v20 = vsub.f32 %v1476_v16, %v4863_v15  ;;  %1796 = vmatprep.mubr.f32.mxu0 %v4446_v7 }
 0x238   : > { %3343 = vst [vmem:[%s4885_s20 + $0x178] sm:$0xff] %v2831_v10  ;;  %v2326_v21 = vsub.f32 %v1925_v19, %v4863_v15  ;;  %2245 = vmatprep.mubr.f32.mxu1 %v4446_v7  ;;  %v2836_v22 = vmul.f32 %v4870_v18, %v2323_v13 }
 0x239   : > { %v2838_v23 = vmul.f32 %v4870_v18, %v2325_v14  ;;  %v2837_v24 = vmul.f32 %v4870_v18, %v2324_v20  ;;  %v1480_v27 = vpop.f32.mrb[142].mxu0 }
 0x23a   : > { %v2839_v26 = vmul.f32 %v4870_v18, %v2326_v21  ;;  %v1929_v28 = vpop.f32.mrb[142].mxu1  ;;  %3348 = vst [vmem:[%s4885_s20 + $0x1a0] sm:$0xff] %v2836_v22  ;;  %v2331_v29 = vsub.f32 %v1480_v27, %v4863_v15  ;;  %v1482_v31 = vpop.f32.mrb[143].mxu0  ;;  %4109 = vmatmul.mubr.msk.f32.gmra.mrb[248].mxu0 %vm281_vm0, %v4325_v32 }
 0x23b   : > { %3350 = vst [vmem:[%s4885_s20 + $0x1b0] sm:$0xff] %v2838_v23  ;;  %v2333_v30 = vsub.f32 %v1929_v28, %v4863_v15  ;;  %v1931_v33 = vpop.f32.mrb[143].mxu1  ;;  %4173 = vmatmul.mubr.msk.f32.gmra.mrb[248].mxu1 %vm281_vm0, %v4325_v32  ;;  %3349 = vst [vmem:[%s4885_s20 + $0x1a8] sm:$0xff] %v2837_v24  ;;  %v2332_v34 = vsub.f32 %v1482_v31, %v4863_v15  ;;  %1802 = vmatprep.mubr.f32.mxu0 %v4446_v7 }
 0x23c   : > { %3351 = vst [vmem:[%s4885_s20 + $0x1b8] sm:$0xff] %v2839_v26  ;;  %v2334_v35 = vsub.f32 %v1931_v33, %v4863_v15  ;;  %2251 = vmatprep.mubr.f32.mxu1 %v4446_v7  ;;  %v2844_v36 = vmul.f32 %v4870_v18, %v2331_v29 }
 0x23d   : > { %v2846_v37 = vmul.f32 %v4870_v18, %v2333_v30  ;;  %v2845_v38 = vmul.f32 %v4870_v18, %v2332_v34  ;;  %v1486_v40 = vpop.f32.mrb[144].mxu0 }
 0x23e   : > { %v2847_v39 = vmul.f32 %v4870_v18, %v2334_v35  ;;  %v1935_v41 = vpop.f32.mrb[144].mxu1  ;;  %3356 = vst [vmem:[%s4885_s20 + $0x1e0] sm:$0xff] %v2844_v36  ;;  %v2339_v42 = vsub.f32 %v1486_v40, %v4863_v15  ;;  %v1488_v44 = vpop.f32.mrb[145].mxu0  ;;  %4110 = vmatmul.mubr.msk.f32.gmra.mrb[250].mxu0 %vm281_vm0, %v4326_v45 }
 0x23f   : > { %3358 = vst [vmem:[%s4885_s20 + $0x1f0] sm:$0xff] %v2846_v37  ;;  %v2341_v43 = vsub.f32 %v1935_v41, %v4863_v15  ;;  %v1937_v46 = vpop.f32.mrb[145].mxu1  ;;  %4174 = vmatmul.mubr.msk.f32.gmra.mrb[250].mxu1 %vm281_vm0, %v4326_v45  ;;  %3357 = vst [vmem:[%s4885_s20 + $0x1e8] sm:$0xff] %v2845_v38  ;;  %v2340_v47 = vsub.f32 %v1488_v44, %v4863_v15  ;;  %1808 = vmatprep.mubr.f32.mxu0 %v4446_v7 }
 0x240   : > { %3359 = vst [vmem:[%s4885_s20 + $0x1f8] sm:$0xff] %v2847_v39  ;;  %v2342_v48 = vsub.f32 %v1937_v46, %v4863_v15  ;;  %2257 = vmatprep.mubr.f32.mxu1 %v4446_v7  ;;  %v2852_v49 = vmul.f32 %v4870_v18, %v2339_v42 }
 0x241   : > { %v2854_v50 = vmul.f32 %v4870_v18, %v2341_v43  ;;  %v2853_v51 = vmul.f32 %v4870_v18, %v2340_v47  ;;  %v1492_v52 = vpop.f32.mrb[146].mxu0 }
 0x242   : > { %v2855_v25 = vmul.f32 %v4870_v18, %v2342_v48  ;;  %v1941_v53 = vpop.f32.mrb[146].mxu1  ;;  %3364 = vst [vmem:[%s4885_s20 + $0x220] sm:$0xff] %v2852_v49  ;;  %v2347_v54 = vsub.f32 %v1492_v52, %v4863_v15  ;;  %v1494_v56 = vpop.f32.mrb[147].mxu0  ;;  %4111 = vmatmul.mubr.msk.f32.gmra.mrb[252].mxu0 %vm281_vm0, %v4327_v57 }
 0x243   : > { %3366 = vst [vmem:[%s4885_s20 + $0x230] sm:$0xff] %v2854_v50  ;;  %v2349_v55 = vsub.f32 %v1941_v53, %v4863_v15  ;;  %v1943_v58 = vpop.f32.mrb[147].mxu1  ;;  %4175 = vmatmul.mubr.msk.f32.gmra.mrb[252].mxu1 %vm281_vm0, %v4327_v57  ;;  %3365 = vst [vmem:[%s4885_s20 + $0x228] sm:$0xff] %v2853_v51  ;;  %v2348_v59 = vsub.f32 %v1494_v56, %v4863_v15  ;;  %1814 = vmatprep.mubr.f32.mxu0 %v4446_v7 }
 0x244   : > { %3367 = vst [vmem:[%s4885_s20 + $0x238] sm:$0xff] %v2855_v25  ;;  %v2350_v60 = vsub.f32 %v1943_v58, %v4863_v15  ;;  %2263 = vmatprep.mubr.f32.mxu1 %v4446_v7  ;;  %v2860_v61 = vmul.f32 %v4870_v18, %v2347_v54 }
 0x245   : > { %v2862_v62 = vmul.f32 %v4870_v18, %v2349_v55  ;;  %v2861_v63 = vmul.f32 %v4870_v18, %v2348_v59  ;;  %v1498_v1 = vpop.f32.mrb[148].mxu0 }
 0x246   : > { %v2863_v0 = vmul.f32 %v4870_v18, %v2350_v60  ;;  %v1947_v2 = vpop.f32.mrb[148].mxu1  ;;  %3372 = vst [vmem:[%s4885_s20 + $0x260] sm:$0xff] %v2860_v61  ;;  %v2355_v3 = vsub.f32 %v1498_v1, %v4863_v15  ;;  %v1500_v7 = vpop.f32.mrb[149].mxu0  ;;  %4112 = vmatmul.mubr.msk.f32.gmra.mrb[254].mxu0 %vm281_vm0, %v4328_v5 }
 0x247   : > { %3374 = vst [vmem:[%s4885_s20 + $0x270] sm:$0xff] %v2862_v62  ;;  %v2357_v4 = vsub.f32 %v1947_v2, %v4863_v15  ;;  %v1949_v6 = vpop.f32.mrb[149].mxu1  ;;  %4176 = vmatmul.mubr.msk.f32.gmra.mrb[254].mxu1 %vm281_vm0, %v4328_v5  ;;  %3373 = vst [vmem:[%s4885_s20 + $0x268] sm:$0xff] %v2861_v63  ;;  %v2356_v8 = vsub.f32 %v1500_v7, %v4863_v15 }
 0x248   : > { %3375 = vst [vmem:[%s4885_s20 + $0x278] sm:$0xff] %v2863_v0  ;;  %v2358_v9 = vsub.f32 %v1949_v6, %v4863_v15  ;;  %v2868_v10 = vmul.f32 %v4870_v18, %v2355_v3 }
 0x249   : > { %v2870_v11 = vmul.f32 %v4870_v18, %v2357_v4  ;;  %v2869_v12 = vmul.f32 %v4870_v18, %v2356_v8  ;;  %v1504_v14 = vpop.f32.mrb[150].mxu0 }
 0x24a   : > { %v2871_v13 = vmul.f32 %v4870_v18, %v2358_v9  ;;  %v1953_v16 = vpop.f32.mrb[150].mxu1  ;;  %3380 = vst [vmem:[%s4885_s20 + $0x2a0] sm:$0xff] %v2868_v10  ;;  %v2363_v17 = vsub.f32 %v1504_v14, %v4863_v15  ;;  %v1506_v20 = vpop.f32.mrb[151].mxu0 }
 0x24b   : > { %3382 = vst [vmem:[%s4885_s20 + $0x2b0] sm:$0xff] %v2870_v11  ;;  %v2365_v19 = vsub.f32 %v1953_v16, %v4863_v15  ;;  %v1955_v21 = vpop.f32.mrb[151].mxu1  ;;  %3381 = vst [vmem:[%s4885_s20 + $0x2a8] sm:$0xff] %v2869_v12  ;;  %v2364_v22 = vsub.f32 %v1506_v20, %v4863_v15 }
 0x24c   : > { %3383 = vst [vmem:[%s4885_s20 + $0x2b8] sm:$0xff] %v2871_v13  ;;  %v2366_v23 = vsub.f32 %v1955_v21, %v4863_v15  ;;  %v2876_v24 = vmul.f32 %v4870_v18, %v2363_v17 }
 0x24d   : > { %v2878_v26 = vmul.f32 %v4870_v18, %v2365_v19  ;;  %v2877_v27 = vmul.f32 %v4870_v18, %v2364_v22  ;;  %v1510_v29 = vpop.f32.mrb[152].mxu0 }
 0x24e   : > { %v2879_v28 = vmul.f32 %v4870_v18, %v2366_v23  ;;  %v1959_v30 = vpop.f32.mrb[152].mxu1  ;;  %3388 = vst [vmem:[%s4885_s20 + $0x2e0] sm:$0xff] %v2876_v24  ;;  %v2371_v31 = vsub.f32 %v1510_v29, %v4863_v15  ;;  %v1512_v33 = vpop.f32.mrb[153].mxu0 }
 0x24f   : > { %3390 = vst [vmem:[%s4885_s20 + $0x2f0] sm:$0xff] %v2878_v26  ;;  %v2373_v32 = vsub.f32 %v1959_v30, %v4863_v15  ;;  %v1961_v34 = vpop.f32.mrb[153].mxu1  ;;  %3389 = vst [vmem:[%s4885_s20 + $0x2e8] sm:$0xff] %v2877_v27  ;;  %v2372_v35 = vsub.f32 %v1512_v33, %v4863_v15 }
 0x250   : > { %3391 = vst [vmem:[%s4885_s20 + $0x2f8] sm:$0xff] %v2879_v28  ;;  %v2374_v36 = vsub.f32 %v1961_v34, %v4863_v15  ;;  %v2884_v37 = vmul.f32 %v4870_v18, %v2371_v31 }
 0x251   : > { %v2886_v38 = vmul.f32 %v4870_v18, %v2373_v32  ;;  %v2885_v39 = vmul.f32 %v4870_v18, %v2372_v35  ;;  %v1516_v41 = vpop.f32.mrb[154].mxu0 }
 0x252   : > { %v2887_v40 = vmul.f32 %v4870_v18, %v2374_v36  ;;  %v1965_v42 = vpop.f32.mrb[154].mxu1  ;;  %3396 = vst [vmem:[%s4885_s20 + $0x320] sm:$0xff] %v2884_v37  ;;  %v2379_v43 = vsub.f32 %v1516_v41, %v4863_v15  ;;  %v1518_v45 = vpop.f32.mrb[155].mxu0 }
 0x253   : > { %3398 = vst [vmem:[%s4885_s20 + $0x330] sm:$0xff] %v2886_v38  ;;  %v2381_v44 = vsub.f32 %v1965_v42, %v4863_v15  ;;  %v1967_v46 = vpop.f32.mrb[155].mxu1  ;;  %3397 = vst [vmem:[%s4885_s20 + $0x328] sm:$0xff] %v2885_v39  ;;  %v2380_v47 = vsub.f32 %v1518_v45, %v4863_v15 }
 0x254   : > { %3399 = vst [vmem:[%s4885_s20 + $0x338] sm:$0xff] %v2887_v40  ;;  %v2382_v48 = vsub.f32 %v1967_v46, %v4863_v15  ;;  %v2892_v49 = vmul.f32 %v4870_v18, %v2379_v43 }
 0x255   : > { %v2894_v50 = vmul.f32 %v4870_v18, %v2381_v44  ;;  %v2893_v51 = vmul.f32 %v4870_v18, %v2380_v47  ;;  %v1522_v52 = vpop.f32.mrb[156].mxu0 }
 0x256   : > { %v2895_v25 = vmul.f32 %v4870_v18, %v2382_v48  ;;  %v1971_v53 = vpop.f32.mrb[156].mxu1  ;;  %3404 = vst [vmem:[%s4885_s20 + $0x360] sm:$0xff] %v2892_v49  ;;  %v2387_v54 = vsub.f32 %v1522_v52, %v4863_v15  ;;  %v1524_v56 = vpop.f32.mrb[157].mxu0 }
 0x257   : > { %3406 = vst [vmem:[%s4885_s20 + $0x370] sm:$0xff] %v2894_v50  ;;  %v2389_v55 = vsub.f32 %v1971_v53, %v4863_v15  ;;  %v1973_v57 = vpop.f32.mrb[157].mxu1  ;;  %3405 = vst [vmem:[%s4885_s20 + $0x368] sm:$0xff] %v2893_v51  ;;  %v2388_v58 = vsub.f32 %v1524_v56, %v4863_v15 }
 0x258   : > { %3407 = vst [vmem:[%s4885_s20 + $0x378] sm:$0xff] %v2895_v25  ;;  %v2390_v59 = vsub.f32 %v1973_v57, %v4863_v15  ;;  %v2900_v60 = vmul.f32 %v4870_v18, %v2387_v54 }
 0x259   : > { %v2902_v61 = vmul.f32 %v4870_v18, %v2389_v55  ;;  %v2901_v62 = vmul.f32 %v4870_v18, %v2388_v58  ;;  %v1528_v0 = vpop.f32.mrb[158].mxu0 }
 0x25a   : > { %v2903_v63 = vmul.f32 %v4870_v18, %v2390_v59  ;;  %v1977_v1 = vpop.f32.mrb[158].mxu1  ;;  %3412 = vst [vmem:[%s4885_s20 + $0x3a0] sm:$0xff] %v2900_v60  ;;  %v2395_v2 = vsub.f32 %v1528_v0, %v4863_v15  ;;  %v1530_v4 = vpop.f32.mrb[159].mxu0 }
 0x25b   : > { %3414 = vst [vmem:[%s4885_s20 + $0x3b0] sm:$0xff] %v2902_v61  ;;  %v2397_v3 = vsub.f32 %v1977_v1, %v4863_v15  ;;  %v1979_v7 = vpop.f32.mrb[159].mxu1  ;;  %3413 = vst [vmem:[%s4885_s20 + $0x3a8] sm:$0xff] %v2901_v62  ;;  %v2396_v5 = vsub.f32 %v1530_v4, %v4863_v15 }
 0x25c   : > { %3415 = vst [vmem:[%s4885_s20 + $0x3b8] sm:$0xff] %v2903_v63  ;;  %v2398_v6 = vsub.f32 %v1979_v7, %v4863_v15  ;;  %v2908_v8 = vmul.f32 %v4870_v18, %v2395_v2 }
 0x25d   : > { %v2910_v9 = vmul.f32 %v4870_v18, %v2397_v3  ;;  %v2909_v10 = vmul.f32 %v4870_v18, %v2396_v5  ;;  %v1534_v12 = vpop.f32.mrb[160].mxu0 }
 0x25e   : > { %v2911_v11 = vmul.f32 %v4870_v18, %v2398_v6  ;;  %v1983_v13 = vpop.f32.mrb[160].mxu1  ;;  %3420 = vst [vmem:[%s4885_s20 + $0x3e0] sm:$0xff] %v2908_v8  ;;  %v2403_v14 = vsub.f32 %v1534_v12, %v4863_v15  ;;  %v1536_v17 = vpop.f32.mrb[161].mxu0 }
 0x25f   : > { %3422 = vst [vmem:[%s4885_s20 + $0x3f0] sm:$0xff] %v2910_v9  ;;  %v2405_v16 = vsub.f32 %v1983_v13, %v4863_v15  ;;  %v1985_v19 = vpop.f32.mrb[161].mxu1  ;;  %3421 = vst [vmem:[%s4885_s20 + $0x3e8] sm:$0xff] %v2909_v10  ;;  %v2404_v20 = vsub.f32 %v1536_v17, %v4863_v15 }
 0x260   : > { %3423 = vst [vmem:[%s4885_s20 + $0x3f8] sm:$0xff] %v2911_v11  ;;  %v2406_v21 = vsub.f32 %v1985_v19, %v4863_v15  ;;  %v2916_v22 = vmul.f32 %v4870_v18, %v2403_v14 }
 0x261   : > { %v2918_v23 = vmul.f32 %v4870_v18, %v2405_v16  ;;  %v2917_v24 = vmul.f32 %v4870_v18, %v2404_v20  ;;  %v1540_v27 = vpop.f32.mrb[162].mxu0 }
 0x262   : > { %v2919_v26 = vmul.f32 %v4870_v18, %v2406_v21  ;;  %v1989_v28 = vpop.f32.mrb[162].mxu1  ;;  %3428 = vst [vmem:[%s4885_s20 + $0x420] sm:$0xff] %v2916_v22  ;;  %v2411_v29 = vsub.f32 %v1540_v27, %v4863_v15  ;;  %v1542_v31 = vpop.f32.mrb[163].mxu0 }
 0x263   : > { %3430 = vst [vmem:[%s4885_s20 + $0x430] sm:$0xff] %v2918_v23  ;;  %v2413_v30 = vsub.f32 %v1989_v28, %v4863_v15  ;;  %v1991_v32 = vpop.f32.mrb[163].mxu1  ;;  %3429 = vst [vmem:[%s4885_s20 + $0x428] sm:$0xff] %v2917_v24  ;;  %v2412_v33 = vsub.f32 %v1542_v31, %v4863_v15 }
 0x264   : > { %3431 = vst [vmem:[%s4885_s20 + $0x438] sm:$0xff] %v2919_v26  ;;  %v2414_v34 = vsub.f32 %v1991_v32, %v4863_v15  ;;  %v2924_v35 = vmul.f32 %v4870_v18, %v2411_v29 }
 0x265   : > { %v2926_v36 = vmul.f32 %v4870_v18, %v2413_v30  ;;  %v2925_v37 = vmul.f32 %v4870_v18, %v2412_v33  ;;  %v1546_v39 = vpop.f32.mrb[164].mxu0 }
 0x266   : > { %v2927_v38 = vmul.f32 %v4870_v18, %v2414_v34  ;;  %v1995_v40 = vpop.f32.mrb[164].mxu1  ;;  %3436 = vst [vmem:[%s4885_s20 + $0x460] sm:$0xff] %v2924_v35  ;;  %v2419_v41 = vsub.f32 %v1546_v39, %v4863_v15  ;;  %v1548_v43 = vpop.f32.mrb[165].mxu0 }
 0x267   : > { %3438 = vst [vmem:[%s4885_s20 + $0x470] sm:$0xff] %v2926_v36  ;;  %v2421_v42 = vsub.f32 %v1995_v40, %v4863_v15  ;;  %v1997_v44 = vpop.f32.mrb[165].mxu1  ;;  %3437 = vst [vmem:[%s4885_s20 + $0x468] sm:$0xff] %v2925_v37  ;;  %v2420_v45 = vsub.f32 %v1548_v43, %v4863_v15 }
 0x268   : > { %3439 = vst [vmem:[%s4885_s20 + $0x478] sm:$0xff] %v2927_v38  ;;  %v2422_v46 = vsub.f32 %v1997_v44, %v4863_v15  ;;  %v2932_v47 = vmul.f32 %v4870_v18, %v2419_v41 }
 0x269   : > { %v2934_v48 = vmul.f32 %v4870_v18, %v2421_v42  ;;  %v2933_v49 = vmul.f32 %v4870_v18, %v2420_v45  ;;  %v1552_v51 = vpop.f32.mrb[166].mxu0 }
 0x26a   : > { %v2935_v50 = vmul.f32 %v4870_v18, %v2422_v46  ;;  %v2001_v25 = vpop.f32.mrb[166].mxu1  ;;  %3444 = vst [vmem:[%s4885_s20 + $0x4a0] sm:$0xff] %v2932_v47  ;;  %v2427_v52 = vsub.f32 %v1552_v51, %v4863_v15  ;;  %v1554_v54 = vpop.f32.mrb[167].mxu0 }
 0x26b   : > { %3446 = vst [vmem:[%s4885_s20 + $0x4b0] sm:$0xff] %v2934_v48  ;;  %v2429_v53 = vsub.f32 %v2001_v25, %v4863_v15  ;;  %v2003_v55 = vpop.f32.mrb[167].mxu1  ;;  %3445 = vst [vmem:[%s4885_s20 + $0x4a8] sm:$0xff] %v2933_v49  ;;  %v2428_v56 = vsub.f32 %v1554_v54, %v4863_v15 }
 0x26c   : > { %3447 = vst [vmem:[%s4885_s20 + $0x4b8] sm:$0xff] %v2935_v50  ;;  %v2430_v57 = vsub.f32 %v2003_v55, %v4863_v15  ;;  %v2940_v58 = vmul.f32 %v4870_v18, %v2427_v52 }
 0x26d   : > { %v2942_v59 = vmul.f32 %v4870_v18, %v2429_v53  ;;  %v2941_v60 = vmul.f32 %v4870_v18, %v2428_v56  ;;  %v1558_v62 = vpop.f32.mrb[168].mxu0 }
 0x26e   : > { %v2943_v61 = vmul.f32 %v4870_v18, %v2430_v57  ;;  %v2007_v63 = vpop.f32.mrb[168].mxu1  ;;  %3452 = vst [vmem:[%s4885_s20 + $0x4e0] sm:$0xff] %v2940_v58  ;;  %v2435_v0 = vsub.f32 %v1558_v62, %v4863_v15  ;;  %v1560_v2 = vpop.f32.mrb[169].mxu0 }
 0x26f   : > { %3454 = vst [vmem:[%s4885_s20 + $0x4f0] sm:$0xff] %v2942_v59  ;;  %v2437_v1 = vsub.f32 %v2007_v63, %v4863_v15  ;;  %v2009_v3 = vpop.f32.mrb[169].mxu1  ;;  %3453 = vst [vmem:[%s4885_s20 + $0x4e8] sm:$0xff] %v2941_v60  ;;  %v2436_v4 = vsub.f32 %v1560_v2, %v4863_v15 }
 0x270   : > { %3455 = vst [vmem:[%s4885_s20 + $0x4f8] sm:$0xff] %v2943_v61  ;;  %v2438_v7 = vsub.f32 %v2009_v3, %v4863_v15  ;;  %v2948_v5 = vmul.f32 %v4870_v18, %v2435_v0 }
 0x271   : > { %v2950_v6 = vmul.f32 %v4870_v18, %v2437_v1  ;;  %v2949_v8 = vmul.f32 %v4870_v18, %v2436_v4  ;;  %v1564_v10 = vpop.f32.mrb[170].mxu0 }
 0x272   : > { %v2951_v9 = vmul.f32 %v4870_v18, %v2438_v7  ;;  %v2013_v11 = vpop.f32.mrb[170].mxu1  ;;  %3460 = vst [vmem:[%s4885_s20 + $0x520] sm:$0xff] %v2948_v5  ;;  %v2443_v12 = vsub.f32 %v1564_v10, %v4863_v15  ;;  %v1566_v14 = vpop.f32.mrb[171].mxu0 }
 0x273   : > { %3462 = vst [vmem:[%s4885_s20 + $0x530] sm:$0xff] %v2950_v6  ;;  %v2445_v13 = vsub.f32 %v2013_v11, %v4863_v15  ;;  %v2015_v16 = vpop.f32.mrb[171].mxu1  ;;  %3461 = vst [vmem:[%s4885_s20 + $0x528] sm:$0xff] %v2949_v8  ;;  %v2444_v17 = vsub.f32 %v1566_v14, %v4863_v15 }
 0x274   : > { %3463 = vst [vmem:[%s4885_s20 + $0x538] sm:$0xff] %v2951_v9  ;;  %v2446_v19 = vsub.f32 %v2015_v16, %v4863_v15  ;;  %v2956_v20 = vmul.f32 %v4870_v18, %v2443_v12 }
 0x275   : > { %v2958_v21 = vmul.f32 %v4870_v18, %v2445_v13  ;;  %v2957_v22 = vmul.f32 %v4870_v18, %v2444_v17  ;;  %v1570_v24 = vpop.f32.mrb[172].mxu0 }
 0x276   : > { %v2959_v23 = vmul.f32 %v4870_v18, %v2446_v19  ;;  %v2019_v26 = vpop.f32.mrb[172].mxu1  ;;  %3468 = vst [vmem:[%s4885_s20 + $0x560] sm:$0xff] %v2956_v20  ;;  %v2451_v27 = vsub.f32 %v1570_v24, %v4863_v15  ;;  %v1572_v29 = vpop.f32.mrb[173].mxu0 }
 0x277   : > { %3470 = vst [vmem:[%s4885_s20 + $0x570] sm:$0xff] %v2958_v21  ;;  %v2453_v28 = vsub.f32 %v2019_v26, %v4863_v15  ;;  %v2021_v30 = vpop.f32.mrb[173].mxu1  ;;  %3469 = vst [vmem:[%s4885_s20 + $0x568] sm:$0xff] %v2957_v22  ;;  %v2452_v31 = vsub.f32 %v1572_v29, %v4863_v15 }
 0x278   : > { %3471 = vst [vmem:[%s4885_s20 + $0x578] sm:$0xff] %v2959_v23  ;;  %v2454_v32 = vsub.f32 %v2021_v30, %v4863_v15  ;;  %v2964_v33 = vmul.f32 %v4870_v18, %v2451_v27 }
 0x279   : > { %v2966_v34 = vmul.f32 %v4870_v18, %v2453_v28  ;;  %v2965_v35 = vmul.f32 %v4870_v18, %v2452_v31  ;;  %v1576_v37 = vpop.f32.mrb[174].mxu0 }
 0x27a   : > { %v2967_v36 = vmul.f32 %v4870_v18, %v2454_v32  ;;  %v2025_v38 = vpop.f32.mrb[174].mxu1  ;;  %3476 = vst [vmem:[%s4885_s20 + $0x5a0] sm:$0xff] %v2964_v33  ;;  %v2459_v39 = vsub.f32 %v1576_v37, %v4863_v15  ;;  %v1578_v41 = vpop.f32.mrb[175].mxu0 }
 0x27b   : > { %3478 = vst [vmem:[%s4885_s20 + $0x5b0] sm:$0xff] %v2966_v34  ;;  %v2461_v40 = vsub.f32 %v2025_v38, %v4863_v15  ;;  %v2027_v42 = vpop.f32.mrb[175].mxu1  ;;  %3477 = vst [vmem:[%s4885_s20 + $0x5a8] sm:$0xff] %v2965_v35  ;;  %v2460_v43 = vsub.f32 %v1578_v41, %v4863_v15 }
 0x27c   : > { %3479 = vst [vmem:[%s4885_s20 + $0x5b8] sm:$0xff] %v2967_v36  ;;  %v2462_v44 = vsub.f32 %v2027_v42, %v4863_v15  ;;  %v2972_v45 = vmul.f32 %v4870_v18, %v2459_v39 }
 0x27d   : > { %v2974_v46 = vmul.f32 %v4870_v18, %v2461_v40  ;;  %v2973_v47 = vmul.f32 %v4870_v18, %v2460_v43  ;;  %v1582_v49 = vpop.f32.mrb[176].mxu0 }
 0x27e   : > { %v2975_v48 = vmul.f32 %v4870_v18, %v2462_v44  ;;  %v2031_v50 = vpop.f32.mrb[176].mxu1  ;;  %3484 = vst [vmem:[%s4885_s20 + $0x5e0] sm:$0xff] %v2972_v45  ;;  %v2467_v51 = vsub.f32 %v1582_v49, %v4863_v15  ;;  %v1584_v52 = vpop.f32.mrb[177].mxu0 }
 0x27f   : > { %3486 = vst [vmem:[%s4885_s20 + $0x5f0] sm:$0xff] %v2974_v46  ;;  %v2469_v25 = vsub.f32 %v2031_v50, %v4863_v15  ;;  %v2033_v53 = vpop.f32.mrb[177].mxu1  ;;  %3485 = vst [vmem:[%s4885_s20 + $0x5e8] sm:$0xff] %v2973_v47  ;;  %v2468_v54 = vsub.f32 %v1584_v52, %v4863_v15 }
 0x280   : > { %3487 = vst [vmem:[%s4885_s20 + $0x5f8] sm:$0xff] %v2975_v48  ;;  %v2470_v55 = vsub.f32 %v2033_v53, %v4863_v15  ;;  %v2980_v56 = vmul.f32 %v4870_v18, %v2467_v51 }
 0x281   : > { %v2982_v57 = vmul.f32 %v4870_v18, %v2469_v25  ;;  %v2981_v58 = vmul.f32 %v4870_v18, %v2468_v54  ;;  %v1588_v60 = vpop.f32.mrb[178].mxu0 }
 0x282   : > { %v2983_v59 = vmul.f32 %v4870_v18, %v2470_v55  ;;  %v2037_v61 = vpop.f32.mrb[178].mxu1  ;;  %3492 = vst [vmem:[%s4885_s20 + $0x620] sm:$0xff] %v2980_v56  ;;  %v2475_v62 = vsub.f32 %v1588_v60, %v4863_v15  ;;  %v1590_v0 = vpop.f32.mrb[179].mxu0 }
 0x283   : > { %3494 = vst [vmem:[%s4885_s20 + $0x630] sm:$0xff] %v2982_v57  ;;  %v2477_v63 = vsub.f32 %v2037_v61, %v4863_v15  ;;  %v2039_v1 = vpop.f32.mrb[179].mxu1  ;;  %3493 = vst [vmem:[%s4885_s20 + $0x628] sm:$0xff] %v2981_v58  ;;  %v2476_v2 = vsub.f32 %v1590_v0, %v4863_v15 }
 0x284   : > { %3495 = vst [vmem:[%s4885_s20 + $0x638] sm:$0xff] %v2983_v59  ;;  %v2478_v3 = vsub.f32 %v2039_v1, %v4863_v15  ;;  %v2988_v4 = vmul.f32 %v4870_v18, %v2475_v62 }
 0x285   : > { %v2990_v7 = vmul.f32 %v4870_v18, %v2477_v63  ;;  %v2989_v5 = vmul.f32 %v4870_v18, %v2476_v2  ;;  %v1594_v8 = vpop.f32.mrb[180].mxu0 }
 0x286   : > { %v2991_v6 = vmul.f32 %v4870_v18, %v2478_v3  ;;  %v2043_v9 = vpop.f32.mrb[180].mxu1  ;;  %3500 = vst [vmem:[%s4885_s20 + $0x660] sm:$0xff] %v2988_v4  ;;  %v2483_v10 = vsub.f32 %v1594_v8, %v4863_v15  ;;  %v1596_v12 = vpop.f32.mrb[181].mxu0 }
 0x287   : > { %3502 = vst [vmem:[%s4885_s20 + $0x670] sm:$0xff] %v2990_v7  ;;  %v2485_v11 = vsub.f32 %v2043_v9, %v4863_v15  ;;  %v2045_v13 = vpop.f32.mrb[181].mxu1  ;;  %3501 = vst [vmem:[%s4885_s20 + $0x668] sm:$0xff] %v2989_v5  ;;  %v2484_v14 = vsub.f32 %v1596_v12, %v4863_v15 }
 0x288   : > { %3503 = vst [vmem:[%s4885_s20 + $0x678] sm:$0xff] %v2991_v6  ;;  %v2486_v16 = vsub.f32 %v2045_v13, %v4863_v15  ;;  %v2996_v17 = vmul.f32 %v4870_v18, %v2483_v10 }
 0x289   : > { %v2998_v19 = vmul.f32 %v4870_v18, %v2485_v11  ;;  %v2997_v20 = vmul.f32 %v4870_v18, %v2484_v14  ;;  %v1600_v22 = vpop.f32.mrb[182].mxu0 }
 0x28a   : > { %v2999_v21 = vmul.f32 %v4870_v18, %v2486_v16  ;;  %v2049_v23 = vpop.f32.mrb[182].mxu1  ;;  %3508 = vst [vmem:[%s4885_s20 + $0x6a0] sm:$0xff] %v2996_v17  ;;  %v2491_v24 = vsub.f32 %v1600_v22, %v4863_v15  ;;  %v1602_v27 = vpop.f32.mrb[183].mxu0 }
 0x28b   : > { %3510 = vst [vmem:[%s4885_s20 + $0x6b0] sm:$0xff] %v2998_v19  ;;  %v2493_v26 = vsub.f32 %v2049_v23, %v4863_v15  ;;  %v2051_v28 = vpop.f32.mrb[183].mxu1  ;;  %3509 = vst [vmem:[%s4885_s20 + $0x6a8] sm:$0xff] %v2997_v20  ;;  %v2492_v29 = vsub.f32 %v1602_v27, %v4863_v15 }
 0x28c   : > { %3511 = vst [vmem:[%s4885_s20 + $0x6b8] sm:$0xff] %v2999_v21  ;;  %v2494_v30 = vsub.f32 %v2051_v28, %v4863_v15  ;;  %v3004_v31 = vmul.f32 %v4870_v18, %v2491_v24 }
 0x28d   : > { %v3006_v32 = vmul.f32 %v4870_v18, %v2493_v26  ;;  %v3005_v33 = vmul.f32 %v4870_v18, %v2492_v29  ;;  %v1606_v35 = vpop.f32.mrb[184].mxu0 }
 0x28e   : > { %v3007_v34 = vmul.f32 %v4870_v18, %v2494_v30  ;;  %v2055_v36 = vpop.f32.mrb[184].mxu1  ;;  %3516 = vst [vmem:[%s4885_s20 + $0x6e0] sm:$0xff] %v3004_v31  ;;  %v2499_v37 = vsub.f32 %v1606_v35, %v4863_v15  ;;  %v1608_v39 = vpop.f32.mrb[185].mxu0 }
 0x28f   : > { %3518 = vst [vmem:[%s4885_s20 + $0x6f0] sm:$0xff] %v3006_v32  ;;  %v2501_v38 = vsub.f32 %v2055_v36, %v4863_v15  ;;  %v2057_v40 = vpop.f32.mrb[185].mxu1  ;;  %3517 = vst [vmem:[%s4885_s20 + $0x6e8] sm:$0xff] %v3005_v33  ;;  %v2500_v41 = vsub.f32 %v1608_v39, %v4863_v15 }
 0x290   : > { %3519 = vst [vmem:[%s4885_s20 + $0x6f8] sm:$0xff] %v3007_v34  ;;  %v2502_v42 = vsub.f32 %v2057_v40, %v4863_v15  ;;  %v3012_v43 = vmul.f32 %v4870_v18, %v2499_v37 }
 0x291   : > { %v3014_v44 = vmul.f32 %v4870_v18, %v2501_v38  ;;  %v3013_v45 = vmul.f32 %v4870_v18, %v2500_v41  ;;  %v1612_v47 = vpop.f32.mrb[186].mxu0 }
 0x292   : > { %v3015_v46 = vmul.f32 %v4870_v18, %v2502_v42  ;;  %v2061_v48 = vpop.f32.mrb[186].mxu1  ;;  %3524 = vst [vmem:[%s4885_s20 + $0x720] sm:$0xff] %v3012_v43  ;;  %v2507_v49 = vsub.f32 %v1612_v47, %v4863_v15  ;;  %v1614_v51 = vpop.f32.mrb[187].mxu0 }
 0x293   : > { %3526 = vst [vmem:[%s4885_s20 + $0x730] sm:$0xff] %v3014_v44  ;;  %v2509_v50 = vsub.f32 %v2061_v48, %v4863_v15  ;;  %v2063_v25 = vpop.f32.mrb[187].mxu1  ;;  %3525 = vst [vmem:[%s4885_s20 + $0x728] sm:$0xff] %v3013_v45  ;;  %v2508_v52 = vsub.f32 %v1614_v51, %v4863_v15 }
 0x294   : > { %3527 = vst [vmem:[%s4885_s20 + $0x738] sm:$0xff] %v3015_v46  ;;  %v2510_v53 = vsub.f32 %v2063_v25, %v4863_v15  ;;  %v3020_v54 = vmul.f32 %v4870_v18, %v2507_v49 }
 0x295   : > { %v3022_v55 = vmul.f32 %v4870_v18, %v2509_v50  ;;  %v3021_v56 = vmul.f32 %v4870_v18, %v2508_v52  ;;  %v1618_v58 = vpop.f32.mrb[188].mxu0 }
 0x296   : > { %v3023_v57 = vmul.f32 %v4870_v18, %v2510_v53  ;;  %v2067_v59 = vpop.f32.mrb[188].mxu1  ;;  %3532 = vst [vmem:[%s4885_s20 + $0x760] sm:$0xff] %v3020_v54  ;;  %v2515_v60 = vsub.f32 %v1618_v58, %v4863_v15  ;;  %v1620_v62 = vpop.f32.mrb[189].mxu0 }
 0x297   : > { %3534 = vst [vmem:[%s4885_s20 + $0x770] sm:$0xff] %v3022_v55  ;;  %v2517_v61 = vsub.f32 %v2067_v59, %v4863_v15  ;;  %v2069_v63 = vpop.f32.mrb[189].mxu1  ;;  %3533 = vst [vmem:[%s4885_s20 + $0x768] sm:$0xff] %v3021_v56  ;;  %v2516_v0 = vsub.f32 %v1620_v62, %v4863_v15 }
 0x298   : > { %3535 = vst [vmem:[%s4885_s20 + $0x778] sm:$0xff] %v3023_v57  ;;  %v2518_v1 = vsub.f32 %v2069_v63, %v4863_v15  ;;  %v3028_v2 = vmul.f32 %v4870_v18, %v2515_v60 }
 0x299   : > { %v3030_v3 = vmul.f32 %v4870_v18, %v2517_v61  ;;  %v3029_v4 = vmul.f32 %v4870_v18, %v2516_v0  ;;  %v1624_v5 = vpop.f32.mrb[190].mxu0 }
 0x29a   : > { %v3031_v7 = vmul.f32 %v4870_v18, %v2518_v1  ;;  %v2073_v6 = vpop.f32.mrb[190].mxu1  ;;  %3540 = vst [vmem:[%s4885_s20 + $0x7a0] sm:$0xff] %v3028_v2  ;;  %v2523_v8 = vsub.f32 %v1624_v5, %v4863_v15  ;;  %v1626_v10 = vpop.f32.mrb[191].mxu0 }
 0x29b   : > { %3542 = vst [vmem:[%s4885_s20 + $0x7b0] sm:$0xff] %v3030_v3  ;;  %v2525_v9 = vsub.f32 %v2073_v6, %v4863_v15  ;;  %v2075_v11 = vpop.f32.mrb[191].mxu1  ;;  %3541 = vst [vmem:[%s4885_s20 + $0x7a8] sm:$0xff] %v3029_v4  ;;  %v2524_v12 = vsub.f32 %v1626_v10, %v4863_v15 }
 0x29c   : > { %3543 = vst [vmem:[%s4885_s20 + $0x7b8] sm:$0xff] %v3031_v7  ;;  %v2526_v13 = vsub.f32 %v2075_v11, %v4863_v15  ;;  %v3036_v14 = vmul.f32 %v4870_v18, %v2523_v8 }
 0x29d   : > { %v3038_v16 = vmul.f32 %v4870_v18, %v2525_v9  ;;  %v3037_v17 = vmul.f32 %v4870_v18, %v2524_v12  ;;  %v1630_v20 = vpop.f32.mrb[192].mxu0 }
 0x29e   : > { %v3039_v19 = vmul.f32 %v4870_v18, %v2526_v13  ;;  %v2079_v21 = vpop.f32.mrb[192].mxu1  ;;  %3548 = vst [vmem:[%s4885_s20 + $0x7e0] sm:$0xff] %v3036_v14  ;;  %v2531_v22 = vsub.f32 %v1630_v20, %v4863_v15  ;;  %v1632_v24 = vpop.f32.mrb[193].mxu0 }
 0x29f   : > { %3550 = vst [vmem:[%s4885_s20 + $0x7f0] sm:$0xff] %v3038_v16  ;;  %v2533_v23 = vsub.f32 %v2079_v21, %v4863_v15  ;;  %v2081_v26 = vpop.f32.mrb[193].mxu1  ;;  %3549 = vst [vmem:[%s4885_s20 + $0x7e8] sm:$0xff] %v3037_v17  ;;  %v2532_v27 = vsub.f32 %v1632_v24, %v4863_v15 }
 0x2a0   : > { %3551 = vst [vmem:[%s4885_s20 + $0x7f8] sm:$0xff] %v3039_v19  ;;  %v2534_v28 = vsub.f32 %v2081_v26, %v4863_v15  ;;  %v3044_v29 = vmul.f32 %v4870_v18, %v2531_v22 }
 0x2a1   : > { %v3046_v30 = vmul.f32 %v4870_v18, %v2533_v23  ;;  %v3045_v31 = vmul.f32 %v4870_v18, %v2532_v27  ;;  %v1636_v33 = vpop.f32.mrb[194].mxu0 }
 0x2a2   : > { %v3047_v32 = vmul.f32 %v4870_v18, %v2534_v28  ;;  %v2085_v34 = vpop.f32.mrb[194].mxu1  ;;  %3556 = vst [vmem:[%s4885_s20 + $0x820] sm:$0xff] %v3044_v29  ;;  %v2539_v35 = vsub.f32 %v1636_v33, %v4863_v15  ;;  %v1638_v37 = vpop.f32.mrb[195].mxu0 }
 0x2a3   : > { %3558 = vst [vmem:[%s4885_s20 + $0x830] sm:$0xff] %v3046_v30  ;;  %v2541_v36 = vsub.f32 %v2085_v34, %v4863_v15  ;;  %v2087_v38 = vpop.f32.mrb[195].mxu1  ;;  %3557 = vst [vmem:[%s4885_s20 + $0x828] sm:$0xff] %v3045_v31  ;;  %v2540_v39 = vsub.f32 %v1638_v37, %v4863_v15 }
 0x2a4   : > { %3559 = vst [vmem:[%s4885_s20 + $0x838] sm:$0xff] %v3047_v32  ;;  %v2542_v40 = vsub.f32 %v2087_v38, %v4863_v15  ;;  %v3052_v41 = vmul.f32 %v4870_v18, %v2539_v35 }
 0x2a5   : > { %v3054_v42 = vmul.f32 %v4870_v18, %v2541_v36  ;;  %v3053_v43 = vmul.f32 %v4870_v18, %v2540_v39  ;;  %v1642_v45 = vpop.f32.mrb[196].mxu0 }
 0x2a6   : > { %v3055_v44 = vmul.f32 %v4870_v18, %v2542_v40  ;;  %v2091_v46 = vpop.f32.mrb[196].mxu1  ;;  %3564 = vst [vmem:[%s4885_s20 + $0x860] sm:$0xff] %v3052_v41  ;;  %v2547_v47 = vsub.f32 %v1642_v45, %v4863_v15  ;;  %v1644_v49 = vpop.f32.mrb[197].mxu0 }
 0x2a7   : > { %3566 = vst [vmem:[%s4885_s20 + $0x870] sm:$0xff] %v3054_v42  ;;  %v2549_v48 = vsub.f32 %v2091_v46, %v4863_v15  ;;  %v2093_v50 = vpop.f32.mrb[197].mxu1  ;;  %3565 = vst [vmem:[%s4885_s20 + $0x868] sm:$0xff] %v3053_v43  ;;  %v2548_v51 = vsub.f32 %v1644_v49, %v4863_v15 }
 0x2a8   : > { %3567 = vst [vmem:[%s4885_s20 + $0x878] sm:$0xff] %v3055_v44  ;;  %v2550_v25 = vsub.f32 %v2093_v50, %v4863_v15  ;;  %v3060_v52 = vmul.f32 %v4870_v18, %v2547_v47 }
 0x2a9   : > { %v3062_v53 = vmul.f32 %v4870_v18, %v2549_v48  ;;  %v3061_v54 = vmul.f32 %v4870_v18, %v2548_v51  ;;  %v1648_v56 = vpop.f32.mrb[198].mxu0 }
 0x2aa   : > { %v3063_v55 = vmul.f32 %v4870_v18, %v2550_v25  ;;  %v2097_v57 = vpop.f32.mrb[198].mxu1  ;;  %3572 = vst [vmem:[%s4885_s20 + $0x8a0] sm:$0xff] %v3060_v52  ;;  %v2555_v58 = vsub.f32 %v1648_v56, %v4863_v15  ;;  %v1650_v60 = vpop.f32.mrb[199].mxu0 }
 0x2ab   : > { %3574 = vst [vmem:[%s4885_s20 + $0x8b0] sm:$0xff] %v3062_v53  ;;  %v2557_v59 = vsub.f32 %v2097_v57, %v4863_v15  ;;  %v2099_v61 = vpop.f32.mrb[199].mxu1  ;;  %3573 = vst [vmem:[%s4885_s20 + $0x8a8] sm:$0xff] %v3061_v54  ;;  %v2556_v62 = vsub.f32 %v1650_v60, %v4863_v15 }
 0x2ac   : > { %3575 = vst [vmem:[%s4885_s20 + $0x8b8] sm:$0xff] %v3063_v55  ;;  %v2558_v63 = vsub.f32 %v2099_v61, %v4863_v15  ;;  %v3068_v0 = vmul.f32 %v4870_v18, %v2555_v58 }
 0x2ad   : > { %v3070_v1 = vmul.f32 %v4870_v18, %v2557_v59  ;;  %v3069_v2 = vmul.f32 %v4870_v18, %v2556_v62  ;;  %v1654_v4 = vpop.f32.mrb[200].mxu0 }
 0x2ae   : > { %v3071_v3 = vmul.f32 %v4870_v18, %v2558_v63  ;;  %v2103_v7 = vpop.f32.mrb[200].mxu1  ;;  %3580 = vst [vmem:[%s4885_s20 + $0x8e0] sm:$0xff] %v3068_v0  ;;  %v2563_v5 = vsub.f32 %v1654_v4, %v4863_v15  ;;  %v1656_v8 = vpop.f32.mrb[201].mxu0 }
 0x2af   : > { %3582 = vst [vmem:[%s4885_s20 + $0x8f0] sm:$0xff] %v3070_v1  ;;  %v2565_v6 = vsub.f32 %v2103_v7, %v4863_v15  ;;  %v2105_v9 = vpop.f32.mrb[201].mxu1  ;;  %3581 = vst [vmem:[%s4885_s20 + $0x8e8] sm:$0xff] %v3069_v2  ;;  %v2564_v10 = vsub.f32 %v1656_v8, %v4863_v15 }
 0x2b0   : > { %3583 = vst [vmem:[%s4885_s20 + $0x8f8] sm:$0xff] %v3071_v3  ;;  %v2566_v11 = vsub.f32 %v2105_v9, %v4863_v15  ;;  %v3076_v12 = vmul.f32 %v4870_v18, %v2563_v5 }
 0x2b1   : > { %v3078_v13 = vmul.f32 %v4870_v18, %v2565_v6  ;;  %v3077_v14 = vmul.f32 %v4870_v18, %v2564_v10  ;;  %v1660_v17 = vpop.f32.mrb[202].mxu0 }
 0x2b2   : > { %v3079_v16 = vmul.f32 %v4870_v18, %v2566_v11  ;;  %v2109_v19 = vpop.f32.mrb[202].mxu1  ;;  %3588 = vst [vmem:[%s4885_s20 + $0x920] sm:$0xff] %v3076_v12  ;;  %v2571_v20 = vsub.f32 %v1660_v17, %v4863_v15  ;;  %v1662_v22 = vpop.f32.mrb[203].mxu0 }
 0x2b3   : > { %3590 = vst [vmem:[%s4885_s20 + $0x930] sm:$0xff] %v3078_v13  ;;  %v2573_v21 = vsub.f32 %v2109_v19, %v4863_v15  ;;  %v2111_v23 = vpop.f32.mrb[203].mxu1  ;;  %3589 = vst [vmem:[%s4885_s20 + $0x928] sm:$0xff] %v3077_v14  ;;  %v2572_v24 = vsub.f32 %v1662_v22, %v4863_v15 }
 0x2b4   : > { %3591 = vst [vmem:[%s4885_s20 + $0x938] sm:$0xff] %v3079_v16  ;;  %v2574_v26 = vsub.f32 %v2111_v23, %v4863_v15  ;;  %v3084_v27 = vmul.f32 %v4870_v18, %v2571_v20 }
 0x2b5   : > { %v3086_v28 = vmul.f32 %v4870_v18, %v2573_v21  ;;  %v3085_v29 = vmul.f32 %v4870_v18, %v2572_v24  ;;  %v1666_v31 = vpop.f32.mrb[204].mxu0 }
 0x2b6   : > { %v3087_v30 = vmul.f32 %v4870_v18, %v2574_v26  ;;  %v2115_v32 = vpop.f32.mrb[204].mxu1  ;;  %3596 = vst [vmem:[%s4885_s20 + $0x960] sm:$0xff] %v3084_v27  ;;  %v2579_v33 = vsub.f32 %v1666_v31, %v4863_v15  ;;  %v1668_v35 = vpop.f32.mrb[205].mxu0 }
 0x2b7   : > { %3598 = vst [vmem:[%s4885_s20 + $0x970] sm:$0xff] %v3086_v28  ;;  %v2581_v34 = vsub.f32 %v2115_v32, %v4863_v15  ;;  %v2117_v36 = vpop.f32.mrb[205].mxu1  ;;  %3597 = vst [vmem:[%s4885_s20 + $0x968] sm:$0xff] %v3085_v29  ;;  %v2580_v37 = vsub.f32 %v1668_v35, %v4863_v15 }
 0x2b8   : > { %3599 = vst [vmem:[%s4885_s20 + $0x978] sm:$0xff] %v3087_v30  ;;  %v2582_v38 = vsub.f32 %v2117_v36, %v4863_v15  ;;  %v3092_v39 = vmul.f32 %v4870_v18, %v2579_v33 }
 0x2b9   : > { %v3094_v40 = vmul.f32 %v4870_v18, %v2581_v34  ;;  %v3093_v41 = vmul.f32 %v4870_v18, %v2580_v37  ;;  %v1672_v43 = vpop.f32.mrb[206].mxu0 }
 0x2ba   : > { %v3095_v42 = vmul.f32 %v4870_v18, %v2582_v38  ;;  %v2121_v44 = vpop.f32.mrb[206].mxu1  ;;  %3604 = vst [vmem:[%s4885_s20 + $0x9a0] sm:$0xff] %v3092_v39  ;;  %v2587_v45 = vsub.f32 %v1672_v43, %v4863_v15  ;;  %v1674_v47 = vpop.f32.mrb[207].mxu0 }
 0x2bb   : > { %3606 = vst [vmem:[%s4885_s20 + $0x9b0] sm:$0xff] %v3094_v40  ;;  %v2589_v46 = vsub.f32 %v2121_v44, %v4863_v15  ;;  %v2123_v48 = vpop.f32.mrb[207].mxu1  ;;  %3605 = vst [vmem:[%s4885_s20 + $0x9a8] sm:$0xff] %v3093_v41  ;;  %v2588_v49 = vsub.f32 %v1674_v47, %v4863_v15 }
 0x2bc   : > { %3607 = vst [vmem:[%s4885_s20 + $0x9b8] sm:$0xff] %v3095_v42  ;;  %v2590_v50 = vsub.f32 %v2123_v48, %v4863_v15  ;;  %v3100_v51 = vmul.f32 %v4870_v18, %v2587_v45 }
 0x2bd   : > { %v3102_v25 = vmul.f32 %v4870_v18, %v2589_v46  ;;  %v3101_v52 = vmul.f32 %v4870_v18, %v2588_v49  ;;  %v1678_v54 = vpop.f32.mrb[208].mxu0 }
 0x2be   : > { %v3103_v53 = vmul.f32 %v4870_v18, %v2590_v50  ;;  %v2127_v55 = vpop.f32.mrb[208].mxu1  ;;  %3612 = vst [vmem:[%s4885_s20 + $0x9e0] sm:$0xff] %v3100_v51  ;;  %v2595_v56 = vsub.f32 %v1678_v54, %v4863_v15  ;;  %v1680_v58 = vpop.f32.mrb[209].mxu0 }
 0x2bf   : > { %3614 = vst [vmem:[%s4885_s20 + $0x9f0] sm:$0xff] %v3102_v25  ;;  %v2597_v57 = vsub.f32 %v2127_v55, %v4863_v15  ;;  %v2129_v59 = vpop.f32.mrb[209].mxu1  ;;  %3613 = vst [vmem:[%s4885_s20 + $0x9e8] sm:$0xff] %v3101_v52  ;;  %v2596_v60 = vsub.f32 %v1680_v58, %v4863_v15 }
 0x2c0   : > { %3615 = vst [vmem:[%s4885_s20 + $0x9f8] sm:$0xff] %v3103_v53  ;;  %v2598_v61 = vsub.f32 %v2129_v59, %v4863_v15  ;;  %v3108_v62 = vmul.f32 %v4870_v18, %v2595_v56 }
 0x2c1   : > { %v3110_v63 = vmul.f32 %v4870_v18, %v2597_v57  ;;  %v3109_v0 = vmul.f32 %v4870_v18, %v2596_v60  ;;  %v1684_v2 = vpop.f32.mrb[210].mxu0 }
 0x2c2   : > { %v3111_v1 = vmul.f32 %v4870_v18, %v2598_v61  ;;  %v2133_v3 = vpop.f32.mrb[210].mxu1  ;;  %3620 = vst [vmem:[%s4885_s20 + $0xa20] sm:$0xff] %v3108_v62  ;;  %v2603_v4 = vsub.f32 %v1684_v2, %v4863_v15  ;;  %v1686_v5 = vpop.f32.mrb[211].mxu0 }
 0x2c3   : > { %3622 = vst [vmem:[%s4885_s20 + $0xa30] sm:$0xff] %v3110_v63  ;;  %v2605_v7 = vsub.f32 %v2133_v3, %v4863_v15  ;;  %v2135_v6 = vpop.f32.mrb[211].mxu1  ;;  %3621 = vst [vmem:[%s4885_s20 + $0xa28] sm:$0xff] %v3109_v0  ;;  %v2604_v8 = vsub.f32 %v1686_v5, %v4863_v15 }
 0x2c4   : > { %3623 = vst [vmem:[%s4885_s20 + $0xa38] sm:$0xff] %v3111_v1  ;;  %v2606_v9 = vsub.f32 %v2135_v6, %v4863_v15  ;;  %v3116_v10 = vmul.f32 %v4870_v18, %v2603_v4 }
 0x2c5   : > { %v3118_v11 = vmul.f32 %v4870_v18, %v2605_v7  ;;  %v3117_v12 = vmul.f32 %v4870_v18, %v2604_v8  ;;  %v1690_v14 = vpop.f32.mrb[212].mxu0 }
 0x2c6   : > { %v3119_v13 = vmul.f32 %v4870_v18, %v2606_v9  ;;  %v2139_v16 = vpop.f32.mrb[212].mxu1  ;;  %3628 = vst [vmem:[%s4885_s20 + $0xa60] sm:$0xff] %v3116_v10  ;;  %v2611_v17 = vsub.f32 %v1690_v14, %v4863_v15  ;;  %v1692_v20 = vpop.f32.mrb[213].mxu0 }
 0x2c7   : > { %3630 = vst [vmem:[%s4885_s20 + $0xa70] sm:$0xff] %v3118_v11  ;;  %v2613_v19 = vsub.f32 %v2139_v16, %v4863_v15  ;;  %v2141_v21 = vpop.f32.mrb[213].mxu1  ;;  %3629 = vst [vmem:[%s4885_s20 + $0xa68] sm:$0xff] %v3117_v12  ;;  %v2612_v22 = vsub.f32 %v1692_v20, %v4863_v15 }
 0x2c8   : > { %3631 = vst [vmem:[%s4885_s20 + $0xa78] sm:$0xff] %v3119_v13  ;;  %v2614_v23 = vsub.f32 %v2141_v21, %v4863_v15  ;;  %v3124_v24 = vmul.f32 %v4870_v18, %v2611_v17 }
 0x2c9   : > { %v3126_v26 = vmul.f32 %v4870_v18, %v2613_v19  ;;  %v3125_v27 = vmul.f32 %v4870_v18, %v2612_v22  ;;  %v1696_v29 = vpop.f32.mrb[214].mxu0 }
 0x2ca   : > { %v3127_v28 = vmul.f32 %v4870_v18, %v2614_v23  ;;  %v2145_v30 = vpop.f32.mrb[214].mxu1  ;;  %3636 = vst [vmem:[%s4885_s20 + $0xaa0] sm:$0xff] %v3124_v24  ;;  %v2619_v31 = vsub.f32 %v1696_v29, %v4863_v15  ;;  %v1698_v33 = vpop.f32.mrb[215].mxu0 }
 0x2cb   : > { %3638 = vst [vmem:[%s4885_s20 + $0xab0] sm:$0xff] %v3126_v26  ;;  %v2621_v32 = vsub.f32 %v2145_v30, %v4863_v15  ;;  %v2147_v34 = vpop.f32.mrb[215].mxu1  ;;  %3637 = vst [vmem:[%s4885_s20 + $0xaa8] sm:$0xff] %v3125_v27  ;;  %v2620_v35 = vsub.f32 %v1698_v33, %v4863_v15 }
 0x2cc   : > { %3639 = vst [vmem:[%s4885_s20 + $0xab8] sm:$0xff] %v3127_v28  ;;  %v2622_v36 = vsub.f32 %v2147_v34, %v4863_v15  ;;  %v3132_v37 = vmul.f32 %v4870_v18, %v2619_v31 }
 0x2cd   : > { %v3134_v38 = vmul.f32 %v4870_v18, %v2621_v32  ;;  %v3133_v39 = vmul.f32 %v4870_v18, %v2620_v35  ;;  %v1702_v41 = vpop.f32.mrb[216].mxu0 }
 0x2ce   : > { %v3135_v40 = vmul.f32 %v4870_v18, %v2622_v36  ;;  %v2151_v42 = vpop.f32.mrb[216].mxu1  ;;  %3644 = vst [vmem:[%s4885_s20 + $0xae0] sm:$0xff] %v3132_v37  ;;  %v2627_v43 = vsub.f32 %v1702_v41, %v4863_v15  ;;  %v1704_v45 = vpop.f32.mrb[217].mxu0 }
 0x2cf   : > { %3646 = vst [vmem:[%s4885_s20 + $0xaf0] sm:$0xff] %v3134_v38  ;;  %v2629_v44 = vsub.f32 %v2151_v42, %v4863_v15  ;;  %v2153_v46 = vpop.f32.mrb[217].mxu1  ;;  %3645 = vst [vmem:[%s4885_s20 + $0xae8] sm:$0xff] %v3133_v39  ;;  %v2628_v47 = vsub.f32 %v1704_v45, %v4863_v15 }
 0x2d0   : > { %3647 = vst [vmem:[%s4885_s20 + $0xaf8] sm:$0xff] %v3135_v40  ;;  %v2630_v48 = vsub.f32 %v2153_v46, %v4863_v15  ;;  %v3140_v49 = vmul.f32 %v4870_v18, %v2627_v43 }
 0x2d1   : > { %v3142_v50 = vmul.f32 %v4870_v18, %v2629_v44  ;;  %v3141_v51 = vmul.f32 %v4870_v18, %v2628_v47  ;;  %v1708_v52 = vpop.f32.mrb[218].mxu0 }
 0x2d2   : > { %v3143_v25 = vmul.f32 %v4870_v18, %v2630_v48  ;;  %v2157_v53 = vpop.f32.mrb[218].mxu1  ;;  %3652 = vst [vmem:[%s4885_s20 + $0xb20] sm:$0xff] %v3140_v49  ;;  %v2635_v54 = vsub.f32 %v1708_v52, %v4863_v15  ;;  %v1710_v56 = vpop.f32.mrb[219].mxu0 }
 0x2d3   : > { %3654 = vst [vmem:[%s4885_s20 + $0xb30] sm:$0xff] %v3142_v50  ;;  %v2637_v55 = vsub.f32 %v2157_v53, %v4863_v15  ;;  %v2159_v57 = vpop.f32.mrb[219].mxu1  ;;  %3653 = vst [vmem:[%s4885_s20 + $0xb28] sm:$0xff] %v3141_v51  ;;  %v2636_v58 = vsub.f32 %v1710_v56, %v4863_v15 }
 0x2d4   : > { %3655 = vst [vmem:[%s4885_s20 + $0xb38] sm:$0xff] %v3143_v25  ;;  %v2638_v59 = vsub.f32 %v2159_v57, %v4863_v15  ;;  %v3148_v60 = vmul.f32 %v4870_v18, %v2635_v54 }
 0x2d5   : > { %v3150_v61 = vmul.f32 %v4870_v18, %v2637_v55  ;;  %v3149_v62 = vmul.f32 %v4870_v18, %v2636_v58  ;;  %v1714_v0 = vpop.f32.mrb[220].mxu0 }
 0x2d6   : > { %v3151_v63 = vmul.f32 %v4870_v18, %v2638_v59  ;;  %v2163_v1 = vpop.f32.mrb[220].mxu1  ;;  %3660 = vst [vmem:[%s4885_s20 + $0xb60] sm:$0xff] %v3148_v60  ;;  %v2643_v2 = vsub.f32 %v1714_v0, %v4863_v15  ;;  %v1716_v4 = vpop.f32.mrb[221].mxu0 }
 0x2d7   : > { %3662 = vst [vmem:[%s4885_s20 + $0xb70] sm:$0xff] %v3150_v61  ;;  %v2645_v3 = vsub.f32 %v2163_v1, %v4863_v15  ;;  %v2165_v7 = vpop.f32.mrb[221].mxu1  ;;  %3661 = vst [vmem:[%s4885_s20 + $0xb68] sm:$0xff] %v3149_v62  ;;  %v2644_v5 = vsub.f32 %v1716_v4, %v4863_v15 }
 0x2d8   : > { %3663 = vst [vmem:[%s4885_s20 + $0xb78] sm:$0xff] %v3151_v63  ;;  %v2646_v6 = vsub.f32 %v2165_v7, %v4863_v15  ;;  %v3156_v8 = vmul.f32 %v4870_v18, %v2643_v2 }
 0x2d9   : > { %v3158_v9 = vmul.f32 %v4870_v18, %v2645_v3  ;;  %v3157_v10 = vmul.f32 %v4870_v18, %v2644_v5  ;;  %v1720_v12 = vpop.f32.mrb[222].mxu0 }
 0x2da   : > { %v3159_v11 = vmul.f32 %v4870_v18, %v2646_v6  ;;  %v2169_v13 = vpop.f32.mrb[222].mxu1  ;;  %3668 = vst [vmem:[%s4885_s20 + $0xba0] sm:$0xff] %v3156_v8  ;;  %v2651_v14 = vsub.f32 %v1720_v12, %v4863_v15  ;;  %v1722_v17 = vpop.f32.mrb[223].mxu0 }
 0x2db   : > { %3670 = vst [vmem:[%s4885_s20 + $0xbb0] sm:$0xff] %v3158_v9  ;;  %v2653_v16 = vsub.f32 %v2169_v13, %v4863_v15  ;;  %v2171_v19 = vpop.f32.mrb[223].mxu1  ;;  %3669 = vst [vmem:[%s4885_s20 + $0xba8] sm:$0xff] %v3157_v10  ;;  %v2652_v20 = vsub.f32 %v1722_v17, %v4863_v15 }
 0x2dc   : > { %3671 = vst [vmem:[%s4885_s20 + $0xbb8] sm:$0xff] %v3159_v11  ;;  %v2654_v21 = vsub.f32 %v2171_v19, %v4863_v15  ;;  %v3164_v22 = vmul.f32 %v4870_v18, %v2651_v14 }
 0x2dd   : > { %v3166_v23 = vmul.f32 %v4870_v18, %v2653_v16  ;;  %v3165_v24 = vmul.f32 %v4870_v18, %v2652_v20  ;;  %v1726_v27 = vpop.f32.mrb[224].mxu0 }
 0x2de   : > { %v3167_v26 = vmul.f32 %v4870_v18, %v2654_v21  ;;  %v2175_v28 = vpop.f32.mrb[224].mxu1  ;;  %3676 = vst [vmem:[%s4885_s20 + $0xbe0] sm:$0xff] %v3164_v22  ;;  %v2659_v29 = vsub.f32 %v1726_v27, %v4863_v15  ;;  %v1728_v31 = vpop.f32.mrb[225].mxu0 }
 0x2df   : > { %3678 = vst [vmem:[%s4885_s20 + $0xbf0] sm:$0xff] %v3166_v23  ;;  %v2661_v30 = vsub.f32 %v2175_v28, %v4863_v15  ;;  %v2177_v32 = vpop.f32.mrb[225].mxu1  ;;  %3677 = vst [vmem:[%s4885_s20 + $0xbe8] sm:$0xff] %v3165_v24  ;;  %v2660_v33 = vsub.f32 %v1728_v31, %v4863_v15 }
 0x2e0   : > { %3679 = vst [vmem:[%s4885_s20 + $0xbf8] sm:$0xff] %v3167_v26  ;;  %v2662_v34 = vsub.f32 %v2177_v32, %v4863_v15  ;;  %v3172_v35 = vmul.f32 %v4870_v18, %v2659_v29 }
 0x2e1   : > { %v3174_v36 = vmul.f32 %v4870_v18, %v2661_v30  ;;  %v3173_v37 = vmul.f32 %v4870_v18, %v2660_v33  ;;  %v1732_v39 = vpop.f32.mrb[226].mxu0 }
 0x2e2   : > { %v3175_v38 = vmul.f32 %v4870_v18, %v2662_v34  ;;  %v2181_v40 = vpop.f32.mrb[226].mxu1  ;;  %3684 = vst [vmem:[%s4885_s20 + $0xc20] sm:$0xff] %v3172_v35  ;;  %v2667_v41 = vsub.f32 %v1732_v39, %v4863_v15  ;;  %v1734_v43 = vpop.f32.mrb[227].mxu0 }
 0x2e3   : > { %3686 = vst [vmem:[%s4885_s20 + $0xc30] sm:$0xff] %v3174_v36  ;;  %v2669_v42 = vsub.f32 %v2181_v40, %v4863_v15  ;;  %v2183_v44 = vpop.f32.mrb[227].mxu1  ;;  %3685 = vst [vmem:[%s4885_s20 + $0xc28] sm:$0xff] %v3173_v37  ;;  %v2668_v45 = vsub.f32 %v1734_v43, %v4863_v15 }
 0x2e4   : > { %3687 = vst [vmem:[%s4885_s20 + $0xc38] sm:$0xff] %v3175_v38  ;;  %v2670_v46 = vsub.f32 %v2183_v44, %v4863_v15  ;;  %v3180_v47 = vmul.f32 %v4870_v18, %v2667_v41 }
 0x2e5   : > { %v3182_v48 = vmul.f32 %v4870_v18, %v2669_v42  ;;  %v3181_v49 = vmul.f32 %v4870_v18, %v2668_v45  ;;  %v1738_v51 = vpop.f32.mrb[228].mxu0 }
 0x2e6   : > { %v3183_v50 = vmul.f32 %v4870_v18, %v2670_v46  ;;  %v2187_v25 = vpop.f32.mrb[228].mxu1  ;;  %3692 = vst [vmem:[%s4885_s20 + $0xc60] sm:$0xff] %v3180_v47  ;;  %v2675_v52 = vsub.f32 %v1738_v51, %v4863_v15  ;;  %v1740_v54 = vpop.f32.mrb[229].mxu0 }
 0x2e7   : > { %3694 = vst [vmem:[%s4885_s20 + $0xc70] sm:$0xff] %v3182_v48  ;;  %v2677_v53 = vsub.f32 %v2187_v25, %v4863_v15  ;;  %v2189_v55 = vpop.f32.mrb[229].mxu1  ;;  %3693 = vst [vmem:[%s4885_s20 + $0xc68] sm:$0xff] %v3181_v49  ;;  %v2676_v56 = vsub.f32 %v1740_v54, %v4863_v15 }
 0x2e8   : > { %3695 = vst [vmem:[%s4885_s20 + $0xc78] sm:$0xff] %v3183_v50  ;;  %v2678_v57 = vsub.f32 %v2189_v55, %v4863_v15  ;;  %v3188_v58 = vmul.f32 %v4870_v18, %v2675_v52 }
 0x2e9   : > { %v3190_v59 = vmul.f32 %v4870_v18, %v2677_v53  ;;  %v3189_v60 = vmul.f32 %v4870_v18, %v2676_v56  ;;  %v1744_v62 = vpop.f32.mrb[230].mxu0 }
 0x2ea   : > { %v3191_v61 = vmul.f32 %v4870_v18, %v2678_v57  ;;  %v2193_v63 = vpop.f32.mrb[230].mxu1  ;;  %3700 = vst [vmem:[%s4885_s20 + $0xca0] sm:$0xff] %v3188_v58  ;;  %v2683_v0 = vsub.f32 %v1744_v62, %v4863_v15  ;;  %v1746_v2 = vpop.f32.mrb[231].mxu0 }
 0x2eb   : > { %3702 = vst [vmem:[%s4885_s20 + $0xcb0] sm:$0xff] %v3190_v59  ;;  %v2685_v1 = vsub.f32 %v2193_v63, %v4863_v15  ;;  %v2195_v3 = vpop.f32.mrb[231].mxu1  ;;  %3701 = vst [vmem:[%s4885_s20 + $0xca8] sm:$0xff] %v3189_v60  ;;  %v2684_v4 = vsub.f32 %v1746_v2, %v4863_v15 }
 0x2ec   : > { %3703 = vst [vmem:[%s4885_s20 + $0xcb8] sm:$0xff] %v3191_v61  ;;  %v2686_v7 = vsub.f32 %v2195_v3, %v4863_v15  ;;  %v3196_v5 = vmul.f32 %v4870_v18, %v2683_v0 }
 0x2ed   : > { %v3198_v6 = vmul.f32 %v4870_v18, %v2685_v1  ;;  %v3197_v8 = vmul.f32 %v4870_v18, %v2684_v4  ;;  %v1750_v10 = vpop.f32.mrb[232].mxu0 }
 0x2ee   : > { %v3199_v9 = vmul.f32 %v4870_v18, %v2686_v7  ;;  %v2199_v11 = vpop.f32.mrb[232].mxu1  ;;  %3708 = vst [vmem:[%s4885_s20 + $0xce0] sm:$0xff] %v3196_v5  ;;  %v2691_v12 = vsub.f32 %v1750_v10, %v4863_v15  ;;  %v1752_v14 = vpop.f32.mrb[233].mxu0 }
 0x2ef   : > { %3710 = vst [vmem:[%s4885_s20 + $0xcf0] sm:$0xff] %v3198_v6  ;;  %v2693_v13 = vsub.f32 %v2199_v11, %v4863_v15  ;;  %v2201_v16 = vpop.f32.mrb[233].mxu1  ;;  %3709 = vst [vmem:[%s4885_s20 + $0xce8] sm:$0xff] %v3197_v8  ;;  %v2692_v17 = vsub.f32 %v1752_v14, %v4863_v15 }
 0x2f0   : > { %3711 = vst [vmem:[%s4885_s20 + $0xcf8] sm:$0xff] %v3199_v9  ;;  %v2694_v19 = vsub.f32 %v2201_v16, %v4863_v15  ;;  %v3204_v20 = vmul.f32 %v4870_v18, %v2691_v12 }
 0x2f1   : > { %v3206_v21 = vmul.f32 %v4870_v18, %v2693_v13  ;;  %v3205_v22 = vmul.f32 %v4870_v18, %v2692_v17  ;;  %v1756_v24 = vpop.f32.mrb[234].mxu0 }
 0x2f2   : > { %v3207_v23 = vmul.f32 %v4870_v18, %v2694_v19  ;;  %v2205_v26 = vpop.f32.mrb[234].mxu1  ;;  %3716 = vst [vmem:[%s4885_s20 + $0xd20] sm:$0xff] %v3204_v20  ;;  %v2699_v27 = vsub.f32 %v1756_v24, %v4863_v15  ;;  %v1758_v29 = vpop.f32.mrb[235].mxu0 }
 0x2f3   : > { %3718 = vst [vmem:[%s4885_s20 + $0xd30] sm:$0xff] %v3206_v21  ;;  %v2701_v28 = vsub.f32 %v2205_v26, %v4863_v15  ;;  %v2207_v30 = vpop.f32.mrb[235].mxu1  ;;  %3717 = vst [vmem:[%s4885_s20 + $0xd28] sm:$0xff] %v3205_v22  ;;  %v2700_v31 = vsub.f32 %v1758_v29, %v4863_v15 }
 0x2f4   : > { %3719 = vst [vmem:[%s4885_s20 + $0xd38] sm:$0xff] %v3207_v23  ;;  %v2702_v32 = vsub.f32 %v2207_v30, %v4863_v15  ;;  %v3212_v33 = vmul.f32 %v4870_v18, %v2699_v27 }
 0x2f5   : > { %v3214_v34 = vmul.f32 %v4870_v18, %v2701_v28  ;;  %v3213_v35 = vmul.f32 %v4870_v18, %v2700_v31  ;;  %v1762_v37 = vpop.f32.mrb[236].mxu0 }
 0x2f6   : > { %v3215_v36 = vmul.f32 %v4870_v18, %v2702_v32  ;;  %v2211_v38 = vpop.f32.mrb[236].mxu1  ;;  %3724 = vst [vmem:[%s4885_s20 + $0xd60] sm:$0xff] %v3212_v33  ;;  %v2707_v39 = vsub.f32 %v1762_v37, %v4863_v15  ;;  %v1764_v41 = vpop.f32.mrb[237].mxu0 }
 0x2f7   : > { %3726 = vst [vmem:[%s4885_s20 + $0xd70] sm:$0xff] %v3214_v34  ;;  %v2709_v40 = vsub.f32 %v2211_v38, %v4863_v15  ;;  %v2213_v42 = vpop.f32.mrb[237].mxu1  ;;  %3725 = vst [vmem:[%s4885_s20 + $0xd68] sm:$0xff] %v3213_v35  ;;  %v2708_v43 = vsub.f32 %v1764_v41, %v4863_v15 }
 0x2f8   : > { %3727 = vst [vmem:[%s4885_s20 + $0xd78] sm:$0xff] %v3215_v36  ;;  %v2710_v44 = vsub.f32 %v2213_v42, %v4863_v15  ;;  %v3220_v45 = vmul.f32 %v4870_v18, %v2707_v39 }
 0x2f9   : > { %v3222_v46 = vmul.f32 %v4870_v18, %v2709_v40  ;;  %v3221_v47 = vmul.f32 %v4870_v18, %v2708_v43  ;;  %v1768_v49 = vpop.f32.mrb[238].mxu0 }
 0x2fa   : > { %v3223_v48 = vmul.f32 %v4870_v18, %v2710_v44  ;;  %v2217_v50 = vpop.f32.mrb[238].mxu1  ;;  %3732 = vst [vmem:[%s4885_s20 + $0xda0] sm:$0xff] %v3220_v45  ;;  %v2715_v51 = vsub.f32 %v1768_v49, %v4863_v15  ;;  %v1770_v52 = vpop.f32.mrb[239].mxu0 }
 0x2fb   : > { %3734 = vst [vmem:[%s4885_s20 + $0xdb0] sm:$0xff] %v3222_v46  ;;  %v2717_v25 = vsub.f32 %v2217_v50, %v4863_v15  ;;  %v2219_v53 = vpop.f32.mrb[239].mxu1  ;;  %3733 = vst [vmem:[%s4885_s20 + $0xda8] sm:$0xff] %v3221_v47  ;;  %v2716_v54 = vsub.f32 %v1770_v52, %v4863_v15 }
 0x2fc   : > { %3735 = vst [vmem:[%s4885_s20 + $0xdb8] sm:$0xff] %v3223_v48  ;;  %v2718_v55 = vsub.f32 %v2219_v53, %v4863_v15  ;;  %v3228_v56 = vmul.f32 %v4870_v18, %v2715_v51 }
 0x2fd   : > { %v3230_v57 = vmul.f32 %v4870_v18, %v2717_v25  ;;  %v3229_v58 = vmul.f32 %v4870_v18, %v2716_v54  ;;  %v1774_v60 = vpop.f32.mrb[240].mxu0 }
 0x2fe   : > { %v3231_v59 = vmul.f32 %v4870_v18, %v2718_v55  ;;  %v2223_v61 = vpop.f32.mrb[240].mxu1  ;;  %3740 = vst [vmem:[%s4885_s20 + $0xde0] sm:$0xff] %v3228_v56  ;;  %v2723_v62 = vsub.f32 %v1774_v60, %v4863_v15  ;;  %v1776_v0 = vpop.f32.mrb[241].mxu0 }
 0x2ff   : > { %3742 = vst [vmem:[%s4885_s20 + $0xdf0] sm:$0xff] %v3230_v57  ;;  %v2725_v63 = vsub.f32 %v2223_v61, %v4863_v15  ;;  %v2225_v1 = vpop.f32.mrb[241].mxu1  ;;  %3741 = vst [vmem:[%s4885_s20 + $0xde8] sm:$0xff] %v3229_v58  ;;  %v2724_v2 = vsub.f32 %v1776_v0, %v4863_v15 }
 0x300   : > { %3743 = vst [vmem:[%s4885_s20 + $0xdf8] sm:$0xff] %v3231_v59  ;;  %v2726_v3 = vsub.f32 %v2225_v1, %v4863_v15  ;;  %v3236_v4 = vmul.f32 %v4870_v18, %v2723_v62 }
 0x301   : > { %v3238_v7 = vmul.f32 %v4870_v18, %v2725_v63  ;;  %v3237_v5 = vmul.f32 %v4870_v18, %v2724_v2  ;;  %v1780_v8 = vpop.f32.mrb[242].mxu0 }
 0x302   : > { %v3239_v6 = vmul.f32 %v4870_v18, %v2726_v3  ;;  %v2229_v9 = vpop.f32.mrb[242].mxu1  ;;  %3748 = vst [vmem:[%s4885_s20 + $0xe20] sm:$0xff] %v3236_v4  ;;  %v2731_v10 = vsub.f32 %v1780_v8, %v4863_v15  ;;  %v1782_v12 = vpop.f32.mrb[243].mxu0 }
 0x303   : > { %3750 = vst [vmem:[%s4885_s20 + $0xe30] sm:$0xff] %v3238_v7  ;;  %v2733_v11 = vsub.f32 %v2229_v9, %v4863_v15  ;;  %v2231_v13 = vpop.f32.mrb[243].mxu1  ;;  %3749 = vst [vmem:[%s4885_s20 + $0xe28] sm:$0xff] %v3237_v5  ;;  %v2732_v14 = vsub.f32 %v1782_v12, %v4863_v15 }
 0x304   : > { %3751 = vst [vmem:[%s4885_s20 + $0xe38] sm:$0xff] %v3239_v6  ;;  %v2734_v16 = vsub.f32 %v2231_v13, %v4863_v15  ;;  %v3244_v17 = vmul.f32 %v4870_v18, %v2731_v10 }
 0x305   : > { %v3246_v19 = vmul.f32 %v4870_v18, %v2733_v11  ;;  %v3245_v20 = vmul.f32 %v4870_v18, %v2732_v14  ;;  %v1786_v22 = vpop.f32.mrb[244].mxu0 }
 0x306   : > { %v3247_v21 = vmul.f32 %v4870_v18, %v2734_v16  ;;  %v2235_v23 = vpop.f32.mrb[244].mxu1  ;;  %3756 = vst [vmem:[%s4885_s20 + $0xe60] sm:$0xff] %v3244_v17  ;;  %v2739_v24 = vsub.f32 %v1786_v22, %v4863_v15  ;;  %v1788_v27 = vpop.f32.mrb[245].mxu0 }
 0x307   : > { %3758 = vst [vmem:[%s4885_s20 + $0xe70] sm:$0xff] %v3246_v19  ;;  %v2741_v26 = vsub.f32 %v2235_v23, %v4863_v15  ;;  %v2237_v28 = vpop.f32.mrb[245].mxu1  ;;  %3757 = vst [vmem:[%s4885_s20 + $0xe68] sm:$0xff] %v3245_v20  ;;  %v2740_v29 = vsub.f32 %v1788_v27, %v4863_v15 }
 0x308   : > { %3759 = vst [vmem:[%s4885_s20 + $0xe78] sm:$0xff] %v3247_v21  ;;  %v2742_v30 = vsub.f32 %v2237_v28, %v4863_v15  ;;  %v3252_v31 = vmul.f32 %v4870_v18, %v2739_v24 }
 0x309   : > { %v3254_v32 = vmul.f32 %v4870_v18, %v2741_v26  ;;  %v3253_v33 = vmul.f32 %v4870_v18, %v2740_v29  ;;  %v1792_v35 = vpop.f32.mrb[246].mxu0 }
 0x30a   : > { %v3255_v34 = vmul.f32 %v4870_v18, %v2742_v30  ;;  %v2241_v36 = vpop.f32.mrb[246].mxu1  ;;  %3764 = vst [vmem:[%s4885_s20 + $0xea0] sm:$0xff] %v3252_v31  ;;  %v2747_v37 = vsub.f32 %v1792_v35, %v4863_v15  ;;  %v1794_v39 = vpop.f32.mrb[247].mxu0 }
 0x30b   : > { %3766 = vst [vmem:[%s4885_s20 + $0xeb0] sm:$0xff] %v3254_v32  ;;  %v2749_v38 = vsub.f32 %v2241_v36, %v4863_v15  ;;  %v2243_v40 = vpop.f32.mrb[247].mxu1  ;;  %3765 = vst [vmem:[%s4885_s20 + $0xea8] sm:$0xff] %v3253_v33  ;;  %v2748_v41 = vsub.f32 %v1794_v39, %v4863_v15 }
 0x30c   : > { %3767 = vst [vmem:[%s4885_s20 + $0xeb8] sm:$0xff] %v3255_v34  ;;  %v2750_v42 = vsub.f32 %v2243_v40, %v4863_v15  ;;  %v3260_v43 = vmul.f32 %v4870_v18, %v2747_v37 }
 0x30d   : > { %v3262_v44 = vmul.f32 %v4870_v18, %v2749_v38  ;;  %v3261_v45 = vmul.f32 %v4870_v18, %v2748_v41  ;;  %v1798_v47 = vpop.f32.mrb[248].mxu0 }
 0x30e   : > { %v3263_v46 = vmul.f32 %v4870_v18, %v2750_v42  ;;  %v2247_v48 = vpop.f32.mrb[248].mxu1  ;;  %3772 = vst [vmem:[%s4885_s20 + $0xee0] sm:$0xff] %v3260_v43  ;;  %v2755_v49 = vsub.f32 %v1798_v47, %v4863_v15  ;;  %v1800_v51 = vpop.f32.mrb[249].mxu0 }
 0x30f   : > { %3774 = vst [vmem:[%s4885_s20 + $0xef0] sm:$0xff] %v3262_v44  ;;  %v2757_v50 = vsub.f32 %v2247_v48, %v4863_v15  ;;  %v2249_v25 = vpop.f32.mrb[249].mxu1  ;;  %3773 = vst [vmem:[%s4885_s20 + $0xee8] sm:$0xff] %v3261_v45  ;;  %v2756_v52 = vsub.f32 %v1800_v51, %v4863_v15 }
 0x310   : > { %3775 = vst [vmem:[%s4885_s20 + $0xef8] sm:$0xff] %v3263_v46  ;;  %v2758_v53 = vsub.f32 %v2249_v25, %v4863_v15  ;;  %v3268_v54 = vmul.f32 %v4870_v18, %v2755_v49 }
 0x311   : > { %v3270_v55 = vmul.f32 %v4870_v18, %v2757_v50  ;;  %v3269_v56 = vmul.f32 %v4870_v18, %v2756_v52  ;;  %v1804_v58 = vpop.f32.mrb[250].mxu0 }
 0x312   : > { %v3271_v57 = vmul.f32 %v4870_v18, %v2758_v53  ;;  %v2253_v59 = vpop.f32.mrb[250].mxu1  ;;  %3780 = vst [vmem:[%s4885_s20 + $0xf20] sm:$0xff] %v3268_v54  ;;  %v2763_v60 = vsub.f32 %v1804_v58, %v4863_v15  ;;  %v1806_v62 = vpop.f32.mrb[251].mxu0 }
 0x313   : > { %3782 = vst [vmem:[%s4885_s20 + $0xf30] sm:$0xff] %v3270_v55  ;;  %v2765_v61 = vsub.f32 %v2253_v59, %v4863_v15  ;;  %v2255_v63 = vpop.f32.mrb[251].mxu1  ;;  %3781 = vst [vmem:[%s4885_s20 + $0xf28] sm:$0xff] %v3269_v56  ;;  %v2764_v0 = vsub.f32 %v1806_v62, %v4863_v15 }
 0x314   : > { %3783 = vst [vmem:[%s4885_s20 + $0xf38] sm:$0xff] %v3271_v57  ;;  %v2766_v1 = vsub.f32 %v2255_v63, %v4863_v15  ;;  %v3276_v2 = vmul.f32 %v4870_v18, %v2763_v60 }
 0x315   : > { %v3278_v3 = vmul.f32 %v4870_v18, %v2765_v61  ;;  %v3277_v4 = vmul.f32 %v4870_v18, %v2764_v0  ;;  %v1810_v5 = vpop.f32.mrb[252].mxu0 }
 0x316   : > { %v3279_v7 = vmul.f32 %v4870_v18, %v2766_v1  ;;  %v2259_v6 = vpop.f32.mrb[252].mxu1  ;;  %3788 = vst [vmem:[%s4885_s20 + $0xf60] sm:$0xff] %v3276_v2  ;;  %v2771_v8 = vsub.f32 %v1810_v5, %v4863_v15  ;;  %v1812_v10 = vpop.f32.mrb[253].mxu0 }
 0x317   : > { %3790 = vst [vmem:[%s4885_s20 + $0xf70] sm:$0xff] %v3278_v3  ;;  %v2773_v9 = vsub.f32 %v2259_v6, %v4863_v15  ;;  %v2261_v11 = vpop.f32.mrb[253].mxu1  ;;  %3789 = vst [vmem:[%s4885_s20 + $0xf68] sm:$0xff] %v3277_v4  ;;  %v2772_v12 = vsub.f32 %v1812_v10, %v4863_v15 }
 0x318   : > { %3791 = vst [vmem:[%s4885_s20 + $0xf78] sm:$0xff] %v3279_v7  ;;  %v2774_v13 = vsub.f32 %v2261_v11, %v4863_v15  ;;  %v3284_v14 = vmul.f32 %v4870_v18, %v2771_v8 }
 0x319   : > { %v3286_v16 = vmul.f32 %v4870_v18, %v2773_v9  ;;  %v3285_v17 = vmul.f32 %v4870_v18, %v2772_v12  ;;  %v1816_v20 = vpop.f32.mrb[254].mxu0 }
 0x31a   : > { %v3287_v19 = vmul.f32 %v4870_v18, %v2774_v13  ;;  %v2265_v21 = vpop.f32.mrb[254].mxu1  ;;  %3796 = vst [vmem:[%s4885_s20 + $0xfa0] sm:$0xff] %v3284_v14  ;;  %v2779_v22 = vsub.f32 %v1816_v20, %v4863_v15  ;;  %v1818_v24 = vpop.f32.mrb[255].mxu0 }
 0x31b   : > { %3798 = vst [vmem:[%s4885_s20 + $0xfb0] sm:$0xff] %v3286_v16  ;;  %v2781_v23 = vsub.f32 %v2265_v21, %v4863_v15  ;;  %v2267_v26 = vpop.f32.mrb[255].mxu1  ;;  %3797 = vst [vmem:[%s4885_s20 + $0xfa8] sm:$0xff] %v3285_v17  ;;  %v2780_v27 = vsub.f32 %v1818_v24, %v4863_v15 }
 0x31c   : > { %3799 = vst [vmem:[%s4885_s20 + $0xfb8] sm:$0xff] %v3287_v19  ;;  %v2782_v28 = vsub.f32 %v2267_v26, %v4863_v15  ;;  %v3292_v29 = vmul.f32 %v4870_v18, %v2779_v22 }
 0x31d   : > { %v3294_v30 = vmul.f32 %v4870_v18, %v2781_v23  ;;  %v3293_v31 = vmul.f32 %v4870_v18, %v2780_v27 }
 0x31e   : > { %v3295_v32 = vmul.f32 %v4870_v18, %v2782_v28  ;;  %3804 = vst [vmem:[%s4885_s20 + $0xfe0] sm:$0xff] %v3292_v29 }
 0x31f   : > { %3806 = vst [vmem:[%s4885_s20 + $0xff0] sm:$0xff] %v3294_v30  ;;  %3805 = vst [vmem:[%s4885_s20 + $0xfe8] sm:$0xff] %v3293_v31 }
 0x320   : > { %3807 = vst [vmem:[%s4885_s20 + $0xff8] sm:$0xff] %v3295_v32 }
 0x321   : > { %4383 = shalt.err (!%p4380_p7)
}
 0x322   : > { %s4384_s24 = scalar_lea.hbm %s6782_s30, 65536  ;;  %s4388_s9 = scalar_lea.hbm %s6838_s3, 131072 }
 0x323   : > { %p4385_p8 = scmp.ne.s32.totalorder %s6782_s30, %s4384_s24  ;;  %p4389_p6 = scmp.lt.u32.totalorder %s6782_s30, %s6838_s3 }
 0x324   : > { %p4390_p10 = scmp.lt.u32.totalorder %s4388_s9, %s4384_s24  ;;  %p4392_p12 = scmp.lt.u32.totalorder %s4384_s24, %s6782_s30 }
 0x325   : > { %p4386_p0 = pnand %p4385_p8, %p4508_p5 }
 0x326   : > { %p4391_p9 = por %p4390_p10, %p4389_p6 }
 0x327   : > { %p4387_p11 = pneg %p4386_p0 }
 0x328   : > { %p4393_p13 = por %p4392_p12, %p4391_p9 }
 0x32a   : > { %p4394_p1 = pnand %p4393_p13, %p4387_p11 }
 0x32c   : > { %4397 = shalt.err (!%p4394_p1)
}
 0x32d   : > { %s4448_s17 = smov 1024   ;;  %s4449_s19 = smov 64  }
 0x32e   : > { %4209 = dma.vmem_to_hbm [thread:$0]  (%p4508_p5), %s6784_s28, 65536, %s6782_s30, %s6794_s4, %s4448_s17, %s4448_s17, %s4449_s19  }
 0x32f PF: > { %p4226_p2 = scmp.ge.s32.totalorder %s4440_s15, 2  ;;  %s3838_s20 = sand.u32 1, %s4428_s12  }
 0x330   : > { %p6848_p3 = scmp.ne.s32.totalorder %s6841_s23, 0  ;;  %s3839_s25 = scalar_lea.sflag [#allocation4], %s3838_s20 }
 0x332   : > { %p4219_p4 = pnand %p4226_p2, %p6848_p3 }
 0x334   : > { %4423 = dma.done.wait (!%p4219_p4), %s3839_s25, 65536  }
 0x335   : > { %4425 = vsyncadd (!%p4219_p4), %s3839_s25, 4294901760  ;;  %p15_p7 = scmp.ge.s32.totalorder %s4495_s18, 4   ;;  %s6849_s12 = smov %s4432_s13 }
 0x336   : > { %s6850_s13 = smov %s4436_s14  ;;  %s6851_s14 = smov %s4506_s21 }
 0x337   : > { %s6852_s15 = smov %s4495_s18  ;;  %17 = sbr.rel (!%p15_p7) target bundleno = 5 (0x5), region = 77 }
 0x33e   :  { %3844 = vsyncpa [#allocation3], 1 }
 0x33f   :  { %3846 = vsyncpa [#allocation3 + $0x1], 1 }
 0x340   :  { %3847 = vsyncpa [#allocation4], 1 }
 0x341   :  { %3849 = vsyncpa [#allocation4 + $0x1], 1 }
 0x342   :  { %3850 = vsyncpa [#allocation5], 1 }
 0x343   :  { %3852 = vsyncpa [#allocation5 + $0x1], 1 }

</bundles_post_ra>
